<compile_context>
chip_gen: v5e
topology: v5e:2x2
jax: 0.10.0
libtpu: 0.0.40
codegen_flags: <defaults>
</compile_context>

<pallas_src>
import numpy as np
import jax
import jax.numpy as jnp
from jax.experimental import pallas as pl
from jax.experimental.pallas import tpu as pltpu


# ---------------------------------------------------------------------------
# Host-side weight preprocessing (tiny, done once per call).
# ---------------------------------------------------------------------------
def _round_up(x, m):
    return ((x + m - 1) // m) * m


def _conv_toeplitz(w, h_in, pad=1):
    """(Cout,Cin,k,k) conv weight -> full Toeplitz matrix.

    Returns T of shape (Cin*h_in*h_in, Cout*h_out*h_out) such that
    flat_out = flat_in @ T reproduces Conv2d(stride=1, padding=pad) with the
    standard row-major (C, H, W) flatten order on both sides.
    """
    w = np.asarray(w, np.float32)
    cout, cin, k, _ = w.shape
    hp = h_in + 2 * pad
    h_out = hp - k + 1
    t = np.zeros((cin, h_in, h_in, cout, h_out, h_out), np.float32)
    for i in range(k):
        for j in range(k):
            for y in range(h_out):
                r = y + i - pad
                if not (0 <= r < h_in):
                    continue
                for x in range(h_out):
                    c = x + j - pad
                    if not (0 <= c < h_in):
                        continue
                    t[:, r, c, :, y, x] = w[:, :, i, j].T
    return t.reshape(cin * h_in * h_in, cout * h_out * h_out), h_out


def _prepare_fused_params(params, fusion_dim, node_dim, cut_dim, compute_dtype):
    f32 = np.float32
    conv_ws = [np.asarray(params[f"conv{i}_w"], f32) for i in (1, 2, 3)]
    conv_bs = [np.asarray(params[f"conv{i}_b"], f32) for i in (1, 2, 3)]

    w_pre = np.asarray(params["premlp_w"], f32)          # (cut+cell, F*F)
    b_pre = np.asarray(params["premlp_b"], f32)[None, :]

    # Full Toeplitz matrices per conv layer; conv-chain dims padded to x128
    # with zero rows/cols (numerically exact: padded activations are ReLU(0)=0
    # and padded weight rows are zero).
    ts, bs = [], []
    h = fusion_dim
    prev_cols = fusion_dim * fusion_dim                  # activation width into conv1
    for w, b in zip(conv_ws, conv_bs):
        t, h_out = _conv_toeplitz(w, h)
        rows, cols = t.shape
        cols_p = _round_up(cols, 128)
        t = np.pad(t, ((0, prev_cols - rows), (0, cols_p - cols)))
        bflat = np.pad(np.repeat(b, h_out * h_out), (0, cols_p - cols))[None, :]
        ts.append(t)
        bs.append(bflat)
        prev_cols, h = cols_p, h_out

    w1 = np.asarray(params["post_w1"], f32)              # (node + cnn_flat, hidden)
    w1_node = w1[:node_dim]
    w1_cnn = w1[node_dim:]                               # rows already in (C,H,W) order
    w1_cnn = np.pad(w1_cnn, ((0, prev_cols - w1_cnn.shape[0]), (0, 0)))

    mdt = compute_dtype                                  # MXU operand dtype
    arrs = dict(
        att_w=np.asarray(params["att_w"], f32).astype(mdt),
        wpre_cut=w_pre[:cut_dim].astype(mdt),
        wpre_cell=w_pre[cut_dim:].astype(mdt),
        bpre=b_pre,
        t1=ts[0].astype(mdt), b1f=bs[0],
        t2=ts[1].astype(mdt), b2f=bs[1],
        t3=ts[2].astype(mdt), b3f=bs[2],
        w1n=w1_node.astype(mdt), w1c=w1_cnn.astype(mdt),
        b1p=np.asarray(params["post_b1"], f32)[None, :],
        w2p=np.asarray(params["post_w2"], f32).astype(mdt),
        b2p=np.asarray(params["post_b2"], f32)[None, :],
    )
    return {name: jnp.asarray(v) for name, v in arrs.items()}


# ---------------------------------------------------------------------------
# Single fused kernel: one grid step == one batch block (TB rows).
# ---------------------------------------------------------------------------
def _fused_forward_kernel(
        nf_ref, cut_ref, cell_ref,
        attw_ref, wpc_ref, wpl_ref, bpre_ref,
        t1_ref, b1_ref, t2_ref, b2_ref, t3_ref, b3_ref,
        w1n_ref, w1c_ref, b1p_ref, w2p_ref, b2p_ref,
        out_ref):
    f32 = jnp.float32

    def mxu(a, w_ref):
        # MXU matmul: operands in the weight dtype (f32 or bf16), f32 accum.
        return jnp.dot(a.astype(w_ref.dtype), w_ref[...],
                       preferred_element_type=f32)

    # ----- attention (mean folded before the matmul; exact in real arith) ---
    emb = nf_ref[...]                                        # (TB, N, D)
    gmean = jnp.mean(emb, axis=1)                            # (TB, D)
    tg = jnp.tanh(mxu(gmean, attw_ref))                      # (TB, D)
    scores = jax.nn.sigmoid(jnp.sum(emb * tg[:, None, :], axis=2))   # (TB, N)
    rep = jnp.sum(scores[:, :, None] * emb, axis=1)          # (TB, D)

    # ----- pre-MLP (concat folded into two partial matmuls) -----------------
    fused = (mxu(cut_ref[...], wpc_ref) + mxu(cell_ref[...], wpl_ref)
             + bpre_ref[...])                                # (TB, F*F)

    # ----- conv stack: pad=1 conv + bias + ReLU == one flat matmul each -----
    a1 = jnp.maximum(mxu(fused, t1_ref) + b1_ref[...], 0.0)  # (TB, 768)
    a2 = jnp.maximum(mxu(a1, t2_ref) + b2_ref[...], 0.0)     # (TB, 896)
    a3 = jnp.maximum(mxu(a2, t3_ref) + b3_ref[...], 0.0)     # (TB, 384)

    # ----- post-MLP: concat + flatten folded into split matmuls -------------
    hid = jnp.maximum(mxu(rep, w1n_ref) + mxu(a3, w1c_ref) + b1p_ref[...], 0.0)
    out_ref[...] = (mxu(hid, w2p_ref) + b2p_ref[...]).astype(out_ref.dtype)


# ---------------------------------------------------------------------------
# Wrapper.
# ---------------------------------------------------------------------------
def fusion_forward(params, node_features, cut_features, cell_features, fusion_dim,
                   *, compute_dtype=jnp.float32, block_b=None):
    if node_features.ndim == 2:
        node_features = node_features[:, None, :]
        cut_features = cut_features[:, None, :]
        cell_features = cell_features[:, None, :]
    nf = jnp.asarray(node_features, jnp.float32)
    B, N, D = nf.shape
    cut = jnp.asarray(cut_features, jnp.float32).reshape(B, -1)
    cell = jnp.asarray(cell_features, jnp.float32).reshape(B, -1)
    d_cut, d_cell = cut.shape[1], cell.shape[1]

    arrs = _prepare_fused_params(params, fusion_dim, D, d_cut, compute_dtype)
    weight_order = ("att_w", "wpre_cut", "wpre_cell", "bpre",
                    "t1", "b1f", "t2", "b2f", "t3", "b3f",
                    "w1n", "w1c", "b1p", "w2p", "b2p")
    weights = [arrs[name] for name in weight_order]

    # Batch block: whole batch when small; otherwise a multiple-of-8 block so
    # v7x's two TensorCores both get grid steps and blocks stay small.
    if block_b is None:
        block_b = B if B <= 64 else 64
    tb = min(block_b, B)
    if tb != B:
        tb = max(8, (tb // 8) * 8)
    nb = pl.cdiv(B, tb)

    def _wspec(a):
        nd = a.ndim
        return pl.BlockSpec(a.shape, lambda b, _nd=nd: (0,) * _nd)

    in_specs = [
        pl.BlockSpec((tb, N, D), lambda b: (b, 0, 0)),
        pl.BlockSpec((tb, d_cut), lambda b: (b, 0)),
        pl.BlockSpec((tb, d_cell), lambda b: (b, 0)),
    ] + [_wspec(w) for w in weights]

    hidden = arrs["b1p"].shape[1]
    flops = 2 * B * (D * D
                     + (d_cut + d_cell) * fusion_dim * fusion_dim
                     + arrs["t1"].shape[0] * arrs["t1"].shape[1]
                     + arrs["t2"].shape[0] * arrs["t2"].shape[1]
                     + arrs["t3"].shape[0] * arrs["t3"].shape[1]
                     + (D + arrs["w1c"].shape[0]) * hidden + hidden)
    bytes_accessed = int(sum(int(np.prod(w.shape)) * w.dtype.itemsize for w in weights)
                         + (nf.size + cut.size + cell.size + B) * 4)

    out = pl.pallas_call(
        _fused_forward_kernel,
        out_shape=jax.ShapeDtypeStruct((B, 1), jnp.float32),
        grid=(nb,),
        in_specs=in_specs,
        out_specs=pl.BlockSpec((tb, 1), lambda b: (b, 0)),
        compiler_params=pltpu.CompilerParams(
            dimension_semantics=("parallel",)),
        cost_estimate=pl.CostEstimate(
            flops=int(flops),
            transcendentals=int(B * (D + N)),
            bytes_accessed=bytes_accessed),
    )(nf, cut, cell, *weights)
    return out                                                # (B, 1)


# ---------------------------------------------------------------------------
# Pure-JAX reference (mirrors PyTorch semantics) for a correctness check.
# ---------------------------------------------------------------------------
def reference_forward(params, nf, cut, cell, fusion_dim):
    ew = jnp.einsum("bnd,de->bne", nf, params["att_w"])
    tg = jnp.tanh(jnp.mean(ew, axis=1, keepdims=True))
    scores = jax.nn.sigmoid(jnp.einsum("bnd,bmd->bnm", nf, tg))          # (B,N,1)
    rep = jnp.einsum("bnd,bnm->bmd", nf, scores)[:, 0, :]                # (B,D)

    x = jnp.concatenate([cut, cell], axis=2).reshape(nf.shape[0], -1)
    fused = x @ params["premlp_w"] + params["premlp_b"]
    img = fused.reshape(-1, 1, fusion_dim, fusion_dim)

    def conv(x, w, b):
        y = jax.lax.conv_general_dilated(
            x, w, (1, 1), [(1, 1), (1, 1)],
            dimension_numbers=("NCHW", "OIHW", "NCHW"))
        return jax.nn.relu(y + b[None, :, None, None])

    img = conv(img, params["conv1_w"], params["conv1_b"])
    img = conv(img, params["conv2_w"], params["conv2_b"])
    img = conv(img, params["conv3_w"], params["conv3_b"])
    flat = img.reshape(img.shape[0], -1)

    e = jnp.concatenate([rep, flat], axis=-1)
    h = jax.nn.relu(e @ params["post_w1"] + params["post_b1"])
    return h @ params["post_w2"] + params["post_b2"]


# ---------------------------------------------------------------------------
# Deterministic parameter init (synthetic; mirrors PyTorch init schemes).
# ---------------------------------------------------------------------------
def init_params(key, node_dim, cut_dim, cell_dim, fusion_dim, postmlp_dim):
    ks = jax.random.split(key, 16)

    def unif(k, shape, bound):
        return jax.random.uniform(k, shape, jnp.float32, -bound, bound)

    p = {}
    p["att_w"] = unif(ks[0], (node_dim, node_dim), (6.0 / (2 * node_dim)) ** 0.5)
    din = cut_dim + cell_dim
    b = 1.0 / (din ** 0.5)
    p["premlp_w"] = unif(ks[1], (din, fusion_dim * fusion_dim), b)
    p["premlp_b"] = unif(ks[2], (fusion_dim * fusion_dim,), b)
    for i, (ci, co) in enumerate([(1, 3), (3, 4), (4, 2)], start=1):
        fan_in = ci * 16
        b = 1.0 / (fan_in ** 0.5)
        p[f"conv{i}_w"] = unif(ks[2 + 2 * i], (co, ci, 4, 4), b)
        p[f"conv{i}_b"] = unif(ks[3 + 2 * i], (co,), b)
    post_in = 2 * (fusion_dim - 3) * (fusion_dim - 3) + node_dim
    hidden = 2 * postmlp_dim
    b = 1.0 / (post_in ** 0.5)
    p["post_w1"] = unif(ks[10], (post_in, hidden), b)
    p["post_b1"] = unif(ks[11], (hidden,), b)
    b = 1.0 / (hidden ** 0.5)
    p["post_w2"] = unif(ks[12], (hidden, 1), b)
    p["post_b2"] = unif(ks[13], (1,), b)
    return p


if __name__ == "__main__":
    B, N = 2, 8
    node_dim, cut_dim, cell_dim = 32, 16, 16
    fusion_dim, postmlp_dim = 16, 32

    key = jax.random.PRNGKey(0)
    k_nf, k_cut, k_cell, k_par = jax.random.split(key, 4)

    node_features = jax.random.normal(k_nf, (B, N, node_dim), jnp.float32)
    cut_features = jax.random.normal(k_cut, (B, 1, cut_dim), jnp.float32)
    cell_features = jax.random.normal(k_cell, (B, 1, cell_dim), jnp.float32)

    params = init_params(k_par, node_dim, cut_dim, cell_dim, fusion_dim, postmlp_dim)

    # f32 MXU-operand path (bit-level parity target with the f32 reference).
    out = fusion_forward(params, node_features, cut_features, cell_features, fusion_dim)
    out = jax.block_until_ready(out)
    assert out.shape == (B, 1), out.shape
    assert bool(jnp.all(jnp.isfinite(out)))

    ref = reference_forward(params, node_features, cut_features, cell_features, fusion_dim)
    ref = jax.block_until_ready(ref)
    assert bool(jnp.allclose(out, ref, rtol=1e-3, atol=1e-3)), (
        "f32 max abs diff %e" % float(jnp.max(jnp.abs(out - ref))))

    # bf16 MXU-operand path (v6e/v7x throughput; f32 accumulation).
    out_bf16 = fusion_forward(params, node_features, cut_features, cell_features,
                              fusion_dim, compute_dtype=jnp.bfloat16)
    out_bf16 = jax.block_until_ready(out_bf16)
    assert bool(jnp.all(jnp.isfinite(out_bf16)))
    assert bool(jnp.allclose(out_bf16, ref, rtol=5e-2, atol=5e-2)), (
        "bf16 max abs diff %e" % float(jnp.max(jnp.abs(out_bf16 - ref))))

    print("KERNEL_OK")
</pallas_src>

<mosaic_0001>
module attributes {stable_mosaic.version = 11 : i64} {
  func.func @_fused_forward_kernel(%arg0: i32, %arg1: memref<2x8x32xf32, #tpu.memory_space<vmem>>, %arg2: memref<2x16xf32, #tpu.memory_space<vmem>>, %arg3: memref<2x16xf32, #tpu.memory_space<vmem>>, %arg4: memref<32x32xf32, #tpu.memory_space<vmem>>, %arg5: memref<16x256xf32, #tpu.memory_space<vmem>>, %arg6: memref<16x256xf32, #tpu.memory_space<vmem>>, %arg7: memref<1x256xf32, #tpu.memory_space<vmem>>, %arg8: memref<256x768xf32, #tpu.memory_space<vmem>>, %arg9: memref<1x768xf32, #tpu.memory_space<vmem>>, %arg10: memref<768x896xf32, #tpu.memory_space<vmem>>, %arg11: memref<1x896xf32, #tpu.memory_space<vmem>>, %arg12: memref<896x384xf32, #tpu.memory_space<vmem>>, %arg13: memref<1x384xf32, #tpu.memory_space<vmem>>, %arg14: memref<32x64xf32, #tpu.memory_space<vmem>>, %arg15: memref<384x64xf32, #tpu.memory_space<vmem>>, %arg16: memref<1x64xf32, #tpu.memory_space<vmem>>, %arg17: memref<64x1xf32, #tpu.memory_space<vmem>>, %arg18: memref<1x1xf32, #tpu.memory_space<vmem>>, %arg19: memref<2x1xf32, #tpu.memory_space<vmem>>) attributes {dimension_semantics = [#tpu.dimension_semantics<parallel>], iteration_bounds = array<i64: 1>, scalar_prefetch = 0 : i64, scratch_operands = 0 : i64, tpu.core_type = #tpu.core_type<tc>, window_params = [{transform_indices = @transform_0, window_bounds = array<i64: 2, 8, 32>}, {transform_indices = @transform_1, window_bounds = array<i64: 2, 16>}, {transform_indices = @transform_2, window_bounds = array<i64: 2, 16>}, {pipeline_mode = #tpu.pipeline_mode<synchronous>, transform_indices = @transform_3, window_bounds = array<i64: 32, 32>}, {pipeline_mode = #tpu.pipeline_mode<synchronous>, transform_indices = @transform_4, window_bounds = array<i64: 16, 256>}, {pipeline_mode = #tpu.pipeline_mode<synchronous>, transform_indices = @transform_5, window_bounds = array<i64: 16, 256>}, {pipeline_mode = #tpu.pipeline_mode<synchronous>, transform_indices = @transform_6, window_bounds = array<i64: 1, 256>}, {pipeline_mode = #tpu.pipeline_mode<synchronous>, transform_indices = @transform_7, window_bounds = array<i64: 256, 768>}, {pipeline_mode = #tpu.pipeline_mode<synchronous>, transform_indices = @transform_8, window_bounds = array<i64: 1, 768>}, {pipeline_mode = #tpu.pipeline_mode<synchronous>, transform_indices = @transform_9, window_bounds = array<i64: 768, 896>}, {pipeline_mode = #tpu.pipeline_mode<synchronous>, transform_indices = @transform_10, window_bounds = array<i64: 1, 896>}, {pipeline_mode = #tpu.pipeline_mode<synchronous>, transform_indices = @transform_11, window_bounds = array<i64: 896, 384>}, {pipeline_mode = #tpu.pipeline_mode<synchronous>, transform_indices = @transform_12, window_bounds = array<i64: 1, 384>}, {pipeline_mode = #tpu.pipeline_mode<synchronous>, transform_indices = @transform_13, window_bounds = array<i64: 32, 64>}, {pipeline_mode = #tpu.pipeline_mode<synchronous>, transform_indices = @transform_14, window_bounds = array<i64: 384, 64>}, {pipeline_mode = #tpu.pipeline_mode<synchronous>, transform_indices = @transform_15, window_bounds = array<i64: 1, 64>}, {pipeline_mode = #tpu.pipeline_mode<synchronous>, transform_indices = @transform_16, window_bounds = array<i64: 64, 1>}, {pipeline_mode = #tpu.pipeline_mode<synchronous>, transform_indices = @transform_17, window_bounds = array<i64: 1, 1>}, {transform_indices = @transform_18, window_bounds = array<i64: 2, 1>}]} {
    %c0 = arith.constant 0 : index
    %c0_0 = arith.constant 0 : index
    %c0_1 = arith.constant 0 : index
    %0 = vector.load %arg1[%c0, %c0_0, %c0_1] : memref<2x8x32xf32, #tpu.memory_space<vmem>>, vector<2x8x32xf32>
    %cst = arith.constant dense<0.000000e+00> : vector<2x32xf32>
    %1 = vector.multi_reduction <add>, %0, %cst [1] : vector<2x8x32xf32> to vector<2x32xf32>
    %cst_2 = arith.constant 8.000000e+00 : f32
    %2 = vector.broadcast %cst_2 : f32 to vector<2x32xf32>
    %3 = arith.divf %1, %2 : vector<2x32xf32>
    %c0_3 = arith.constant 0 : index
    %c0_4 = arith.constant 0 : index
    %4 = vector.load %arg4[%c0_3, %c0_4] : memref<32x32xf32, #tpu.memory_space<vmem>>, vector<32x32xf32>
    %cst_5 = arith.constant dense<0.000000e+00> : vector<2x32xf32>
    %5 = tpu.matmul %3, %4, %cst_5 {dimension_numbers = #tpu.dot_dimension_numbers<[1], [0], [0], [1], [0, 0, 1, 1], [], []>} : vector<2x32xf32>, vector<32x32xf32>, vector<2x32xf32> -> vector<2x32xf32>
    %6 = math.tanh %5 : vector<2x32xf32>
    %7 = vector.shape_cast %6 : vector<2x32xf32> to vector<2x1x32xf32>
    %8 = vector.broadcast %7 : vector<2x1x32xf32> to vector<2x8x32xf32>
    %9 = arith.mulf %0, %8 : vector<2x8x32xf32>
    %cst_6 = arith.constant dense<0.000000e+00> : vector<2x8xf32>
    %10 = vector.multi_reduction <add>, %9, %cst_6 [2] : vector<2x8x32xf32> to vector<2x8xf32>
    %11 = arith.negf %10 : vector<2x8xf32>
    %12 = math.exp %11 : vector<2x8xf32>
    %cst_7 = arith.constant 1.000000e+00 : f32
    %13 = vector.broadcast %cst_7 : f32 to vector<2x8xf32>
    %14 = arith.addf %13, %12 : vector<2x8xf32>
    %15 = arith.divf %13, %14 : vector<2x8xf32>
    %16 = vector.shape_cast %15 : vector<2x8xf32> to vector<2x8x1xf32>
    %17 = vector.broadcast %16 : vector<2x8x1xf32> to vector<2x8x32xf32>
    %18 = arith.mulf %17, %0 : vector<2x8x32xf32>
    %cst_8 = arith.constant dense<0.000000e+00> : vector<2x32xf32>
    %19 = vector.multi_reduction <add>, %18, %cst_8 [1] : vector<2x8x32xf32> to vector<2x32xf32>
    %c0_9 = arith.constant 0 : index
    %c0_10 = arith.constant 0 : index
    %20 = vector.load %arg2[%c0_9, %c0_10] : memref<2x16xf32, #tpu.memory_space<vmem>>, vector<2x16xf32>
    %c0_11 = arith.constant 0 : index
    %c0_12 = arith.constant 0 : index
    %21 = vector.load %arg5[%c0_11, %c0_12] : memref<16x256xf32, #tpu.memory_space<vmem>>, vector<16x256xf32>
    %cst_13 = arith.constant dense<0.000000e+00> : vector<2x256xf32>
    %22 = tpu.matmul %20, %21, %cst_13 {dimension_numbers = #tpu.dot_dimension_numbers<[1], [0], [0], [1], [0, 0, 1, 1], [], []>} : vector<2x16xf32>, vector<16x256xf32>, vector<2x256xf32> -> vector<2x256xf32>
    %c0_14 = arith.constant 0 : index
    %c0_15 = arith.constant 0 : index
    %23 = vector.load %arg3[%c0_14, %c0_15] : memref<2x16xf32, #tpu.memory_space<vmem>>, vector<2x16xf32>
    %c0_16 = arith.constant 0 : index
    %c0_17 = arith.constant 0 : index
    %24 = vector.load %arg6[%c0_16, %c0_17] : memref<16x256xf32, #tpu.memory_space<vmem>>, vector<16x256xf32>
    %cst_18 = arith.constant dense<0.000000e+00> : vector<2x256xf32>
    %25 = tpu.matmul %23, %24, %cst_18 {dimension_numbers = #tpu.dot_dimension_numbers<[1], [0], [0], [1], [0, 0, 1, 1], [], []>} : vector<2x16xf32>, vector<16x256xf32>, vector<2x256xf32> -> vector<2x256xf32>
    %26 = arith.addf %22, %25 : vector<2x256xf32>
    %c0_19 = arith.constant 0 : index
    %c0_20 = arith.constant 0 : index
    %27 = vector.load %arg7[%c0_19, %c0_20] : memref<1x256xf32, #tpu.memory_space<vmem>>, vector<1x256xf32>
    %28 = vector.broadcast %27 : vector<1x256xf32> to vector<2x256xf32>
    %29 = arith.addf %26, %28 : vector<2x256xf32>
    %c0_21 = arith.constant 0 : index
    %c0_22 = arith.constant 0 : index
    %30 = vector.load %arg8[%c0_21, %c0_22] : memref<256x768xf32, #tpu.memory_space<vmem>>, vector<256x768xf32>
    %cst_23 = arith.constant dense<0.000000e+00> : vector<2x768xf32>
    %31 = tpu.matmul %29, %30, %cst_23 {dimension_numbers = #tpu.dot_dimension_numbers<[1], [0], [0], [1], [0, 0, 1, 1], [], []>} : vector<2x256xf32>, vector<256x768xf32>, vector<2x768xf32> -> vector<2x768xf32>
    %c0_24 = arith.constant 0 : index
    %c0_25 = arith.constant 0 : index
    %32 = vector.load %arg9[%c0_24, %c0_25] : memref<1x768xf32, #tpu.memory_space<vmem>>, vector<1x768xf32>
    %33 = vector.broadcast %32 : vector<1x768xf32> to vector<2x768xf32>
    %34 = arith.addf %31, %33 : vector<2x768xf32>
    %cst_26 = arith.constant 0.000000e+00 : f32
    %35 = vector.broadcast %cst_26 : f32 to vector<2x768xf32>
    %36 = arith.maximumf %34, %35 : vector<2x768xf32>
    %c0_27 = arith.constant 0 : index
    %c0_28 = arith.constant 0 : index
    %37 = vector.load %arg10[%c0_27, %c0_28] : memref<768x896xf32, #tpu.memory_space<vmem>>, vector<768x896xf32>
    %cst_29 = arith.constant dense<0.000000e+00> : vector<2x896xf32>
    %38 = tpu.matmul %36, %37, %cst_29 {dimension_numbers = #tpu.dot_dimension_numbers<[1], [0], [0], [1], [0, 0, 1, 1], [], []>} : vector<2x768xf32>, vector<768x896xf32>, vector<2x896xf32> -> vector<2x896xf32>
    %c0_30 = arith.constant 0 : index
    %c0_31 = arith.constant 0 : index
    %39 = vector.load %arg11[%c0_30, %c0_31] : memref<1x896xf32, #tpu.memory_space<vmem>>, vector<1x896xf32>
    %40 = vector.broadcast %39 : vector<1x896xf32> to vector<2x896xf32>
    %41 = arith.addf %38, %40 : vector<2x896xf32>
    %cst_32 = arith.constant 0.000000e+00 : f32
    %42 = vector.broadcast %cst_32 : f32 to vector<2x896xf32>
    %43 = arith.maximumf %41, %42 : vector<2x896xf32>
    %c0_33 = arith.constant 0 : index
    %c0_34 = arith.constant 0 : index
    %44 = vector.load %arg12[%c0_33, %c0_34] : memref<896x384xf32, #tpu.memory_space<vmem>>, vector<896x384xf32>
    %cst_35 = arith.constant dense<0.000000e+00> : vector<2x384xf32>
    %45 = tpu.matmul %43, %44, %cst_35 {dimension_numbers = #tpu.dot_dimension_numbers<[1], [0], [0], [1], [0, 0, 1, 1], [], []>} : vector<2x896xf32>, vector<896x384xf32>, vector<2x384xf32> -> vector<2x384xf32>
    %c0_36 = arith.constant 0 : index
    %c0_37 = arith.constant 0 : index
    %46 = vector.load %arg13[%c0_36, %c0_37] : memref<1x384xf32, #tpu.memory_space<vmem>>, vector<1x384xf32>
    %47 = vector.broadcast %46 : vector<1x384xf32> to vector<2x384xf32>
    %48 = arith.addf %45, %47 : vector<2x384xf32>
    %cst_38 = arith.constant 0.000000e+00 : f32
    %49 = vector.broadcast %cst_38 : f32 to vector<2x384xf32>
    %50 = arith.maximumf %48, %49 : vector<2x384xf32>
    %c0_39 = arith.constant 0 : index
    %c0_40 = arith.constant 0 : index
    %51 = vector.load %arg14[%c0_39, %c0_40] : memref<32x64xf32, #tpu.memory_space<vmem>>, vector<32x64xf32>
    %cst_41 = arith.constant dense<0.000000e+00> : vector<2x64xf32>
    %52 = tpu.matmul %19, %51, %cst_41 {dimension_numbers = #tpu.dot_dimension_numbers<[1], [0], [0], [1], [0, 0, 1, 1], [], []>} : vector<2x32xf32>, vector<32x64xf32>, vector<2x64xf32> -> vector<2x64xf32>
    %c0_42 = arith.constant 0 : index
    %c0_43 = arith.constant 0 : index
    %53 = vector.load %arg15[%c0_42, %c0_43] : memref<384x64xf32, #tpu.memory_space<vmem>>, vector<384x64xf32>
    %cst_44 = arith.constant dense<0.000000e+00> : vector<2x64xf32>
    %54 = tpu.matmul %50, %53, %cst_44 {dimension_numbers = #tpu.dot_dimension_numbers<[1], [0], [0], [1], [0, 0, 1, 1], [], []>} : vector<2x384xf32>, vector<384x64xf32>, vector<2x64xf32> -> vector<2x64xf32>
    %55 = arith.addf %52, %54 : vector<2x64xf32>
    %c0_45 = arith.constant 0 : index
    %c0_46 = arith.constant 0 : index
    %56 = vector.load %arg16[%c0_45, %c0_46] : memref<1x64xf32, #tpu.memory_space<vmem>>, vector<1x64xf32>
    %57 = vector.broadcast %56 : vector<1x64xf32> to vector<2x64xf32>
    %58 = arith.addf %55, %57 : vector<2x64xf32>
    %cst_47 = arith.constant 0.000000e+00 : f32
    %59 = vector.broadcast %cst_47 : f32 to vector<2x64xf32>
    %60 = arith.maximumf %58, %59 : vector<2x64xf32>
    %c0_48 = arith.constant 0 : index
    %c0_49 = arith.constant 0 : index
    %61 = vector.load %arg17[%c0_48, %c0_49] : memref<64x1xf32, #tpu.memory_space<vmem>>, vector<64x1xf32>
    %cst_50 = arith.constant dense<0.000000e+00> : vector<2x1xf32>
    %62 = tpu.matmul %60, %61, %cst_50 {dimension_numbers = #tpu.dot_dimension_numbers<[1], [0], [0], [1], [0, 0, 1, 1], [], []>} : vector<2x64xf32>, vector<64x1xf32>, vector<2x1xf32> -> vector<2x1xf32>
    %c0_51 = arith.constant 0 : index
    %c0_52 = arith.constant 0 : index
    %63 = vector.load %arg18[%c0_51, %c0_52] : memref<1x1xf32, #tpu.memory_space<vmem>>, vector<1x1xf32>
    %64 = vector.broadcast %63 : vector<1x1xf32> to vector<2x1xf32>
    %65 = arith.addf %62, %64 : vector<2x1xf32>
    %c0_53 = arith.constant 0 : index
    %c0_54 = arith.constant 0 : index
    %66 = vector.load %arg19[%c0_53, %c0_54] : memref<2x1xf32, #tpu.memory_space<vmem>>, vector<2x1xf32>
    tpu.vector_store %arg19[%c0_53, %c0_54], %65 {strides = array<i32>} : memref<2x1xf32, #tpu.memory_space<vmem>>, vector<2x1xf32>,
    return
  }
  func.func @transform_0(%arg0: i32) -> (i32, i32, i32) {
    %c0_i32 = arith.constant 0 : i32
    %c0_i32_0 = arith.constant 0 : i32
    %c0_i32_1 = arith.constant 0 : i32
    return %arg0, %c0_i32, %c0_i32_0 : i32, i32, i32
  }
  func.func @transform_1(%arg0: i32) -> (i32, i32) {
    %c0_i32 = arith.constant 0 : i32
    %c0_i32_0 = arith.constant 0 : i32
    return %arg0, %c0_i32 : i32, i32
  }
  func.func @transform_2(%arg0: i32) -> (i32, i32) {
    %c0_i32 = arith.constant 0 : i32
    %c0_i32_0 = arith.constant 0 : i32
    return %arg0, %c0_i32 : i32, i32
  }
  func.func @transform_3(%arg0: i32) -> (i32, i32) {
    %c0_i32 = arith.constant 0 : i32
    %c0_i32_0 = arith.constant 0 : i32
    %c0_i32_1 = arith.constant 0 : i32
    return %c0_i32, %c0_i32_0 : i32, i32
  }
  func.func @transform_4(%arg0: i32) -> (i32, i32) {
    %c0_i32 = arith.constant 0 : i32
    %c0_i32_0 = arith.constant 0 : i32
    %c0_i32_1 = arith.constant 0 : i32
    return %c0_i32, %c0_i32_0 : i32, i32
  }
  func.func @transform_5(%arg0: i32) -> (i32, i32) {
    %c0_i32 = arith.constant 0 : i32
    %c0_i32_0 = arith.constant 0 : i32
    %c0_i32_1 = arith.constant 0 : i32
    return %c0_i32, %c0_i32_0 : i32, i32
  }
  func.func @transform_6(%arg0: i32) -> (i32, i32) {
    %c0_i32 = arith.constant 0 : i32
    %c0_i32_0 = arith.constant 0 : i32
    %c0_i32_1 = arith.constant 0 : i32
    return %c0_i32, %c0_i32_0 : i32, i32
  }
  func.func @transform_7(%arg0: i32) -> (i32, i32) {
    %c0_i32 = arith.constant 0 : i32
    %c0_i32_0 = arith.constant 0 : i32
    %c0_i32_1 = arith.constant 0 : i32
    return %c0_i32, %c0_i32_0 : i32, i32
  }
  func.func @transform_8(%arg0: i32) -> (i32, i32) {
    %c0_i32 = arith.constant 0 : i32
    %c0_i32_0 = arith.constant 0 : i32
    %c0_i32_1 = arith.constant 0 : i32
    return %c0_i32, %c0_i32_0 : i32, i32
  }
  func.func @transform_9(%arg0: i32) -> (i32, i32) {
    %c0_i32 = arith.constant 0 : i32
    %c0_i32_0 = arith.constant 0 : i32
    %c0_i32_1 = arith.constant 0 : i32
    return %c0_i32, %c0_i32_0 : i32, i32
  }
  func.func @transform_10(%arg0: i32) -> (i32, i32) {
    %c0_i32 = arith.constant 0 : i32
    %c0_i32_0 = arith.constant 0 : i32
    %c0_i32_1 = arith.constant 0 : i32
    return %c0_i32, %c0_i32_0 : i32, i32
  }
  func.func @transform_11(%arg0: i32) -> (i32, i32) {
    %c0_i32 = arith.constant 0 : i32
    %c0_i32_0 = arith.constant 0 : i32
    %c0_i32_1 = arith.constant 0 : i32
    return %c0_i32, %c0_i32_0 : i32, i32
  }
  func.func @transform_12(%arg0: i32) -> (i32, i32) {
    %c0_i32 = arith.constant 0 : i32
    %c0_i32_0 = arith.constant 0 : i32
    %c0_i32_1 = arith.constant 0 : i32
    return %c0_i32, %c0_i32_0 : i32, i32
  }
  func.func @transform_13(%arg0: i32) -> (i32, i32) {
    %c0_i32 = arith.constant 0 : i32
    %c0_i32_0 = arith.constant 0 : i32
    %c0_i32_1 = arith.constant 0 : i32
    return %c0_i32, %c0_i32_0 : i32, i32
  }
  func.func @transform_14(%arg0: i32) -> (i32, i32) {
    %c0_i32 = arith.constant 0 : i32
    %c0_i32_0 = arith.constant 0 : i32
    %c0_i32_1 = arith.constant 0 : i32
    return %c0_i32, %c0_i32_0 : i32, i32
  }
  func.func @transform_15(%arg0: i32) -> (i32, i32) {
    %c0_i32 = arith.constant 0 : i32
    %c0_i32_0 = arith.constant 0 : i32
    %c0_i32_1 = arith.constant 0 : i32
    return %c0_i32, %c0_i32_0 : i32, i32
  }
  func.func @transform_16(%arg0: i32) -> (i32, i32) {
    %c0_i32 = arith.constant 0 : i32
    %c0_i32_0 = arith.constant 0 : i32
    %c0_i32_1 = arith.constant 0 : i32
    return %c0_i32, %c0_i32_0 : i32, i32
  }
  func.func @transform_17(%arg0: i32) -> (i32, i32) {
    %c0_i32 = arith.constant 0 : i32
    %c0_i32_0 = arith.constant 0 : i32
    %c0_i32_1 = arith.constant 0 : i32
    return %c0_i32, %c0_i32_0 : i32, i32
  }
  func.func @transform_18(%arg0: i32) -> (i32, i32) {
    %c0_i32 = arith.constant 0 : i32
    %c0_i32_0 = arith.constant 0 : i32
    return %arg0, %c0_i32 : i32, i32
  }
}

</mosaic_0001>

<bundles_post_ra>
// kernel: tpu_custom_call.1
= control target key start
LH: loop header
LB: loop body
LE: loop exit
PB: predicated region body
PF: predicated region fallthrough
CT: control target
= control target key end

     0   :  { %s4483_s0 = inlined_call_operand.hbm [shape: f32[2,8,32], index: 0, kind: input, shape index: {}]   ;;  %s4484_s1 = inlined_call_operand.hbm [shape: f32[2,16], index: 1, kind: input, shape index: {}]   ;;  %s4485_s2 = inlined_call_operand.hbm [shape: f32[2,16], index: 2, kind: input, shape index: {}]   ;;  %s4486_s3 = inlined_call_operand.hbm [shape: f32[32,32], index: 3, kind: input, shape index: {}]   ;;  %s4487_s4 = inlined_call_operand.hbm [shape: f32[16,256], index: 4, kind: input, shape index: {}]   ;;  %s4488_s5 = inlined_call_operand.hbm [shape: f32[16,256], index: 5, kind: input, shape index: {}]   ;;  %s4489_s6 = inlined_call_operand.hbm [shape: f32[1,256], index: 6, kind: input, shape index: {}]   ;;  %s4490_s7 = inlined_call_operand.hbm [shape: f32[256,768], index: 7, kind: input, shape index: {}]   ;;  %s4491_s8 = inlined_call_operand.hbm [shape: f32[1,768], index: 8, kind: input, shape index: {}]   ;;  %s4492_s9 = inlined_call_operand.hbm [shape: f32[768,896], index: 9, kind: input, shape index: {}]   ;;  %s4493_s10 = inlined_call_operand.hbm [shape: f32[1,896], index: 10, kind: input, shape index: {}]   ;;  %s4494_s11 = inlined_call_operand.hbm [shape: f32[896,384], index: 11, kind: input, shape index: {}]   ;;  %s4495_s12 = inlined_call_operand.hbm [shape: f32[1,384], index: 12, kind: input, shape index: {}]   ;;  %s4496_s13 = inlined_call_operand.hbm [shape: f32[32,64], index: 13, kind: input, shape index: {}]   ;;  %s4497_s14 = inlined_call_operand.vmem [shape: f32[384,64], index: 14, kind: input, shape index: {}]   ;;  %s4498_s15 = inlined_call_operand.hbm [shape: f32[1,64], index: 15, kind: input, shape index: {}]   ;;  %s4499_s16 = inlined_call_operand.vmem [shape: f32[64,1], index: 16, kind: input, shape index: {}]   ;;  %s4500_s17 = inlined_call_operand.<no memory space> [shape: f32[1,1], index: 17, kind: input, shape index: {}]   ;;  %s4501_s18 = inlined_call_operand.vmem [shape: f32[2,1], index: 18, kind: output, shape index: {}]  }
   0x1   :  { %4503 = sst [smem:[#allocation34_spill]] %s4483_s0  ;;  %v23_v0 = vstv %s4500_s17 }
   0x2   :  { %4504 = sst [smem:[#allocation35_spill]] %s4484_s1  ;;  %24 = vst [vmem:[#allocation2] sm:$0x1] %v23_v0 }
   0x3   :  { %4505 = sst [smem:[#allocation36_spill]] %s4485_s2 }
   0x4   :  { %25 = vsyncpa [#allocation4], 0 }
   0x5   :  { %26 = vsyncpa [#allocation6], 0 }
   0x6   :  { %27 = vsyncpa [#allocation9], 0 }
   0x7   :  { %28 = vsyncpa [#allocation12], 0 }
   0x8   :  { %29 = vsyncpa [#allocation15], 0 }
   0x9   :  { %30 = vsyncpa [#allocation18], 0 }
   0xa   :  { %31 = vsyncpa [#allocation21], 0  ;;  %s4506_s0 = sld [smem:[#allocation35_spill]] }
  0x10   :  { %s51_s19 = sshll.u32 %s4506_s0, 4  ;;  %s52_s19 = int_to_ptr.hbm [resolvable:$true] %s51_s19 }
  0x11   :  { %32 = vsyncpa [#allocation24], 0  ;;  %s3885_s1 = smov [#allocation5]   ;;  %s72_s22 = sshll.u32 %s4486_s3, 4  ;;  %s73_s22 = int_to_ptr.hbm [resolvable:$true] %s72_s22 }
  0x12   :  { %s53_s20 = sshll.u32 %s3885_s1, 4  ;;  %s3886_s2 = smov [#allocation8]   ;;  %s54_s20 = int_to_ptr.vmem [resolvable:$true] %s53_s20 }
  0x13   :  { %56 = dma.hbm_to_vmem [thread:$0]  %s52_s19, 32, %s54_s20, [#allocation6]  }
  0x14   :  { %s74_s23 = sshll.u32 %s3886_s2, 4  ;;  %s3887_s24 = smov 128   ;;  %s75_s23 = int_to_ptr.vmem [resolvable:$true] %s74_s23 }
  0x15   :  { %s3888_s25 = smov 8   ;;  %s98_s28 = sshll.u32 %s4488_s5, 4  ;;  %s99_s28 = int_to_ptr.hbm [resolvable:$true] %s98_s28 }
  0x16   :  { %80 = dma.hbm_to_vmem [thread:$0]  %s73_s22, 512, %s75_s23, [#allocation9], %s3887_s24, %s3887_s24, %s3888_s25  }
  0x17   :  { %s3889_s29 = smov [#allocation11]   ;;  %s122_s19 = sshll.u32 %s4490_s7, 4  ;;  %s123_s19 = int_to_ptr.hbm [resolvable:$true] %s122_s19 }
  0x18   :  { %s100_s30 = sshll.u32 %s3889_s29, 4  ;;  %s4502_s1 = smov 256   ;;  %s101_s30 = int_to_ptr.vmem [resolvable:$true] %s100_s30 }
  0x19   :  { %s3891_s20 = smov 16   ;;  %s3892_s21 = smov [#allocation14]  }
  0x1a   :  { %106 = dma.hbm_to_vmem [thread:$0]  %s99_s28, 512, %s101_s30, [#allocation12], %s4502_s1, %s4502_s1, %s3891_s20  }
  0x1b   :  { %s124_s17 = sshll.u32 %s3892_s21, 4  ;;  %s3893_s22 = smov 768   ;;  %s125_s17 = int_to_ptr.vmem [resolvable:$true] %s124_s17 }
  0x1c   :  { %s3894_s5 = smov 48   ;;  %s146_s26 = sshll.u32 %s4492_s9, 4  ;;  %s147_s26 = int_to_ptr.hbm [resolvable:$true] %s146_s26 }
  0x1d   :  { %130 = dma.hbm_to_vmem [thread:$0]  %s123_s19, 24576, %s125_s17, [#allocation15], %s3893_s22, %s3893_s22, %s3894_s5  }
  0x1e   :  { %s3895_s27 = smov [#allocation17]   ;;  %s170_s3 = sshll.u32 %s4494_s11, 4  ;;  %s171_s3 = int_to_ptr.hbm [resolvable:$true] %s170_s3 }
  0x1f   :  { %s148_s7 = sshll.u32 %s3895_s27, 4  ;;  %s3896_s28 = smov 896   ;;  %s149_s7 = int_to_ptr.vmem [resolvable:$true] %s148_s7 }
  0x20   :  { %s3897_s30 = smov 56   ;;  %s3898_s21 = smov [#allocation20]  }
  0x21   :  { %154 = dma.hbm_to_vmem [thread:$0]  %s147_s26, 86016, %s149_s7, [#allocation18], %s3896_s28, %s3896_s28, %s3897_s30  }
  0x22   :  { %s172_s1 = sshll.u32 %s3898_s21, 4  ;;  %s3899_s19 = smov 384   ;;  %s173_s1 = int_to_ptr.vmem [resolvable:$true] %s172_s1 }
  0x23   :  { %s3900_s17 = smov 24   ;;  %s194_s5 = sshll.u32 %s4496_s13, 4  ;;  %s195_s5 = int_to_ptr.hbm [resolvable:$true] %s194_s5 }
  0x24   :  { %178 = dma.hbm_to_vmem [thread:$0]  %s171_s3, 43008, %s173_s1, [#allocation21], %s3899_s19, %s3899_s19, %s3900_s17  }
  0x25   :  { %s3901_s2 = smov [#allocation23]   ;;  %s4507_s29 = sld [smem:[#allocation34_spill]] }
  0x26   :  { %s196_s23 = sshll.u32 %s3901_s2, 4  ;;  %s3902_s26 = smov [#allocation3]   ;;  %s197_s23 = int_to_ptr.vmem [resolvable:$true] %s196_s23 }
  0x27   :  { %202 = dma.hbm_to_vmem [thread:$0]  %s195_s5, 512, %s197_s23, [#allocation24], %s3887_s24, %s3887_s24, %s3888_s25  }
  0x28   :  { %s39_s7 = sshll.u32 %s3902_s26, 4  ;;  %s4508_s28 = sld [smem:[#allocation36_spill]]  ;;  %s40_s7 = int_to_ptr.vmem [resolvable:$true] %s39_s7 }
  0x29   :  { %s85_s19 = sshll.u32 %s4487_s4, 4  ;;  %s3903_s17 = smov [#allocation7]   ;;  %s86_s19 = int_to_ptr.hbm [resolvable:$true] %s85_s19 }
  0x2a   :  { %s64_s22 = sshll.u32 %s3903_s17, 4  ;;  %s3904_s9 = smov [#allocation10]   ;;  %s65_s22 = int_to_ptr.vmem [resolvable:$true] %s64_s22 }
  0x2b   :  { %s37_s0 = sshll.u32 %s4507_s29, 4  ;;  %s87_s5 = sshll.u32 %s3904_s9, 4  ;;  %s38_s0 = int_to_ptr.hbm [resolvable:$true] %s37_s0  ;;  %s88_s5 = int_to_ptr.vmem [resolvable:$true] %s87_s5 }
  0x2c   :  { %45 = dma.hbm_to_vmem [thread:$0]  %s38_s0, 256, %s40_s7, [#allocation4], %s3887_s24, %s3887_s24, %s3888_s25  }
  0x2d   :  { %s112_s27 = sshll.u32 %s4489_s6, 4  ;;  %s4509_s11 = smov 256   ;;  %s113_s27 = int_to_ptr.hbm [resolvable:$true] %s112_s27 }
  0x2e   :  { %s62_s30 = sshll.u32 %s4508_s28, 4  ;;  %s136_s4 = sshll.u32 %s4491_s8, 4  ;;  %s63_s30 = int_to_ptr.hbm [resolvable:$true] %s62_s30  ;;  %s137_s4 = int_to_ptr.hbm [resolvable:$true] %s136_s4 }
  0x2f   :  { %67 = dma.hbm_to_vmem [thread:$0]  %s63_s30, 32, %s65_s22, [#allocation6]  }
  0x30   :  { %93 = dma.hbm_to_vmem [thread:$0]  %s86_s19, 512, %s88_s5, [#allocation9], %s4509_s11, %s4509_s11, %s3891_s20  }
  0x31   :  { %s3905_s29 = smov [#allocation13]   ;;  %s3906_s26 = smov [#allocation16]  }
  0x32   :  { %s114_s0 = sshll.u32 %s3905_s29, 4  ;;  %s138_s7 = sshll.u32 %s3906_s26, 4  ;;  %s115_s0 = int_to_ptr.vmem [resolvable:$true] %s114_s0  ;;  %s139_s7 = int_to_ptr.vmem [resolvable:$true] %s138_s7 }
  0x33   :  { %117 = dma.hbm_to_vmem [thread:$0]  %s113_s27, 32, %s115_s0, [#allocation12]  }
  0x34   :  { %s160_s6 = sshll.u32 %s4493_s10, 4  ;;  %s184_s30 = sshll.u32 %s4495_s12, 4  ;;  %s161_s6 = int_to_ptr.hbm [resolvable:$true] %s160_s6  ;;  %s185_s30 = int_to_ptr.hbm [resolvable:$true] %s184_s30 }
  0x35   :  { %141 = dma.hbm_to_vmem [thread:$0]  %s137_s4, 96, %s139_s7, [#allocation15]  }
  0x36   :  { %s3907_s13 = smov [#allocation19]   ;;  %s3908_s21 = smov [#allocation22]  }
  0x37   :  { %s162_s8 = sshll.u32 %s3907_s13, 4  ;;  %s186_s19 = sshll.u32 %s3908_s21, 4  ;;  %s163_s8 = int_to_ptr.vmem [resolvable:$true] %s162_s8  ;;  %s187_s19 = int_to_ptr.vmem [resolvable:$true] %s186_s19 }
  0x38   :  { %165 = dma.hbm_to_vmem [thread:$0]  %s161_s6, 112, %s163_s8, [#allocation18]  }
  0x39   :  { %s210_s9 = sshll.u32 %s4498_s15, 4  ;;  %s3909_s10 = smov [#allocation25]   ;;  %s211_s9 = int_to_ptr.hbm [resolvable:$true] %s210_s9 }
  0x3a   :  { %189 = dma.hbm_to_vmem [thread:$0]  %s185_s30, 48, %s187_s19, [#allocation21]  }
  0x3b   :  { %s212_s5 = sshll.u32 %s3909_s10, 4  ;;  %s213_s5 = int_to_ptr.vmem [resolvable:$true] %s212_s5 }
  0x3c   :  { %215 = dma.hbm_to_vmem [thread:$0]  %s211_s9, 16, %s213_s5, [#allocation24]  }
  0x3d   :  { %3869 = dma.done.wait [#allocation4], 256  }
  0x3e   :  { %3870 = vsyncadd [#allocation4], 4294967040 }
  0x3f   :  { %3871 = dma.done.wait [#allocation6], 64  }
  0x40   :  { %3872 = vsyncadd [#allocation6], 4294967232 }
  0x41   :  { %3873 = dma.done.wait [#allocation9], 1024  }
  0x42   :  { %3874 = vsyncadd [#allocation9], 4294966272 }
  0x43   :  { %3875 = dma.done.wait [#allocation12], 544  }
  0x44   :  { %3876 = vsyncadd [#allocation12], 4294966752 }
  0x45   :  { %3877 = dma.done.wait [#allocation15], 24672  }
  0x46   :  { %3878 = vsyncadd [#allocation15], 4294942624 }
  0x47   :  { %3879 = dma.done.wait [#allocation18], 86128  }
  0x48   :  { %3880 = vsyncadd [#allocation18], 4294881168 }
  0x49   :  { %3881 = dma.done.wait [#allocation21], 43056  }
  0x4a   :  { %3882 = vsyncadd [#allocation21], 4294924240 }
  0x4b   :  { %3883 = dma.done.wait [#allocation24], 528  }
  0x4c   :  { %3884 = vsyncadd [#allocation24], 4294966768  ;;  %v3910_v1 = vmov 8.0   ;;  %v309_v3 = vld [vmem:[#allocation8 + $0x18] sm:$0xff]  ;;  %v308_v4 = vld [vmem:[#allocation8 + $0x10] sm:$0xff]  ;;  %vm282_vm0 = vcmask 261120  }
  0x4d   :  { %3494 = vrcp.f32 %v3910_v1  ;;  %328 = vmatpush.msra.mxu0 %v309_v3  ;;  %v307_v5 = vld [vmem:[#allocation8 + $0x8] sm:$0xff]  ;;  %v413_v6 = vld [vmem:[#allocation11 + $0x10] sm:$0xff]  ;;  %v411_v7 = vld [vmem:[#allocation11] sm:$0xff]  ;;  %vm415_vm1 = vcmask 130048   ;;  %vm312_vm3 = vcmask 1041409   ;;  %vm3419_vm12 = vcmask 523264  }
  0x4e   :  { %433 = vmatpush.msra.mxu1 %v413_v6  ;;  %v4072_v9 = vld [vmem:[#allocation3] sm:$0xff]  ;;  %v4074_v10 = vld [vmem:[#allocation3 + $0x8] sm:$0xff]  ;;  %v4076_v11 = vld [vmem:[#allocation7] sm:$0x3]  ;;  %vm3443_vm13 = vcmask 1024  }
  0x4f   :  { %329 = vmatpush.msra.mxu0 %v308_v4  ;;  %v283_v12 = vsel %vm282_vm0, %v4072_v9, 0.0  ;;  %v290_v13 = vsel %vm282_vm0, %v4074_v10, 0.0  ;;  %v409_v15 = vld [vmem:[#allocation10 + $0x18] sm:$0xff]  ;;  %v306_v16 = vld [vmem:[#allocation8] sm:$0xff]  ;;  %v407_v21 = vld [vmem:[#allocation10 + $0x8] sm:$0xff] }
  0x50   :  { %434 = vmatpush.msra.mxu1 %v411_v7  ;;  %v284_v17 = vrot.slane %v283_v12, 4  ;;  %v291_v18 = vrot.slane %v290_v13, 4  ;;  %v414_v20 = vld [vmem:[#allocation11 + $0x18] sm:$0xff]  ;;  %v690_v26 = vld [vmem:[#allocation14 + $0x5a0] sm:$0xff]  ;;  %v691_v30 = vld [vmem:[#allocation14 + $0x5a8] sm:$0xff] }
  0x51   :  { %330 = vmatpush.msra.mxu0 %v307_v5  ;;  %3460 = vmatmul.msk.f32.vlgmr.msra.gmra.mxu1 %vm415_vm1, %v4076_v11  ;;  %v696_v22 = vld [vmem:[#allocation14 + $0x5d0] sm:$0xff]  ;;  %v697_v25 = vld [vmem:[#allocation14 + $0x5d8] sm:$0xff]  ;;  %v412_v27 = vld [vmem:[#allocation11 + $0x8] sm:$0xff] }
  0x52   :  { %v285_v23 = vadd.f32 %v284_v17, %v283_v12  ;;  %v292_v24 = vadd.f32 %v291_v18, %v290_v13  ;;  %496 = vmatpush.msrb.mxu1 %v409_v15  ;;  %736 = vmatpush.msra.mxu3 %v696_v22  ;;  %v684_v31 = vld [vmem:[#allocation14 + $0x570] sm:$0xff]  ;;  %v594_v34 = vld [vmem:[#allocation14 + $0x2a0] sm:$0xff]  ;;  %v4087_v37 = vld [vmem:[#allocation5] sm:$0x3] }
  0x53   :  { %v4069_v2 = vpop.eup %3494  ;;  %331 = vmatpush.msra.mxu0 %v306_v16  ;;  %v600_v32 = vld [vmem:[#allocation14 + $0x2d0] sm:$0xff]  ;;  %v678_v38 = vld [vmem:[#allocation14 + $0x540] sm:$0xff]  ;;  %v685_v39 = vld [vmem:[#allocation14 + $0x578] sm:$0xff] }
  0x54   :  { %v298_v8 = vmul.f32 8.0, %v4069_v2  ;;  %v286_v28 = vrot.slane %v285_v23, 2  ;;  %v293_v29 = vrot.slane %v292_v24, 2  ;;  %497 = vmatpush.msrb.mxu1 %v407_v21  ;;  %737 = vmatpush.msra.mxu3 %v690_v26  ;;  %vm302_vm2 = vweird.f32 %v4069_v2  ;;  %v588_v40 = vld [vmem:[#allocation14 + $0x270] sm:$0xff]  ;;  %v679_v45 = vld [vmem:[#allocation14 + $0x548] sm:$0xff]  ;;  %v582_v46 = vld [vmem:[#allocation14 + $0x240] sm:$0xff] }
  0x55   :  { %453 = vmatpush.msrb.mxu0 %v414_v20  ;;  %716 = vmatpush.msra.mxu2 %v600_v32  ;;  %v672_v43 = vld [vmem:[#allocation14 + $0x510] sm:$0xff]  ;;  %v666_v49 = vld [vmem:[#allocation14 + $0x4e0] sm:$0xff]  ;;  %v673_v50 = vld [vmem:[#allocation14 + $0x518] sm:$0xff] }
  0x56   :  { %v299_v14 = vsub.f32 1.0, %v298_v8  ;;  %776 = vmatpush.msra.mxu1 %v697_v25  ;;  %v287_v35 = vadd.f32 %v286_v28, %v285_v23  ;;  %v294_v36 = vadd.f32 %v293_v29, %v292_v24  ;;  %738 = vmatpush.msra.mxu3 %v684_v31  ;;  %v576_v51 = vld [vmem:[#allocation14 + $0x210] sm:$0xff]  ;;  %v667_v56 = vld [vmem:[#allocation14 + $0x4e8] sm:$0xff]  ;;  %v654_v58 = vld [vmem:[#allocation14 + $0x480] sm:$0xff] }
  0x57   :  { %454 = vmatpush.msrb.mxu0 %v412_v27  ;;  %717 = vmatpush.msra.mxu2 %v594_v34  ;;  %v660_v54 = vld [vmem:[#allocation14 + $0x4b0] sm:$0xff]  ;;  %v570_v59 = vld [vmem:[#allocation14 + $0x1e0] sm:$0xff]  ;;  %v661_v61 = vld [vmem:[#allocation14 + $0x4b8] sm:$0xff] }
  0x58   :  { %v300_v19 = vmul.f32 %v4069_v2, %v299_v14  ;;  %777 = vmatpush.msra.mxu1 %v691_v30  ;;  %v288_v41 = vrot.slane %v287_v35, 1  ;;  %v295_v42 = vrot.slane %v294_v36, 1  ;;  %739 = vmatpush.msra.mxu3 %v678_v38  ;;  %v408_v55 = vld [vmem:[#allocation10 + $0x10] sm:$0xff]  ;;  %v406_v60 = vld [vmem:[#allocation10] sm:$0xff] }
  0x59   :  { %3463 = vmatmul.msk.f32.vlgmr.msrb.gmra.mxu1 %vm415_vm1, %v4087_v37  ;;  %718 = vmatpush.msra.mxu2 %v588_v40  ;;  %v648_v62 = vld [vmem:[#allocation14 + $0x450] sm:$0xff]  ;;  %v655_v0 = vld [vmem:[#allocation14 + $0x488] sm:$0xff]  ;;  %v642_v1 = vld [vmem:[#allocation14 + $0x420] sm:$0xff] }
  0x5a   :  { %v301_v33 = vadd.f32 %v4069_v2, %v300_v19  ;;  %v289_v47 = vadd.f32 %v288_v41, %v287_v35  ;;  %v296_v48 = vadd.f32 %v295_v42, %v294_v36  ;;  %778 = vmatpush.msra.mxu1 %v685_v39  ;;  %740 = vmatpush.msra.mxu3 %v672_v43  ;;  %v564_v63 = vld [vmem:[#allocation14 + $0x1b0] sm:$0xff]  ;;  %v649_v3 = vld [vmem:[#allocation14 + $0x458] sm:$0xff]  ;;  %v643_v6 = vld [vmem:[#allocation14 + $0x428] sm:$0xff] }
  0x5b   :  { %719 = vmatpush.msra.mxu2 %v582_v46  ;;  %v636_v4 = vld [vmem:[#allocation14 + $0x3f0] sm:$0xff]  ;;  %v601_v5 = vld [vmem:[#allocation14 + $0x2d8] sm:$0xff]  ;;  %v630_v7 = vld [vmem:[#allocation14 + $0x3c0] sm:$0xff] }
  0x5c   :  { %v303_v44 = vsel %vm302_vm2, %v4069_v2, %v301_v33  ;;  %779 = vmatpush.msra.mxu1 %v679_v45  ;;  %741 = vmatpush.msra.mxu3 %v666_v49  ;;  %v558_v2 = vld [vmem:[#allocation14 + $0x180] sm:$0xff]  ;;  %v552_v8 = vld [vmem:[#allocation14 + $0x150] sm:$0xff]  ;;  %v595_v12 = vld [vmem:[#allocation14 + $0x2a8] sm:$0xff] }
  0x5d   :  { %v304_v52 = vmul.f32 %v303_v44, %v289_v47  ;;  %v305_v53 = vmul.f32 %v303_v44, %v296_v48  ;;  %720 = vmatpush.msra.mxu2 %v576_v51  ;;  %v637_v13 = vld [vmem:[#allocation14 + $0x3f8] sm:$0xff]  ;;  %v624_v14 = vld [vmem:[#allocation14 + $0x390] sm:$0xff]  ;;  %v546_v15 = vld [vmem:[#allocation14 + $0x120] sm:$0xff] }
  0x5e   :  { %780 = vmatpush.msra.mxu1 %v673_v50  ;;  %742 = vmatpush.msra.mxu3 %v660_v54  ;;  %v589_v16 = vld [vmem:[#allocation14 + $0x278] sm:$0xff]  ;;  %v631_v17 = vld [vmem:[#allocation14 + $0x3c8] sm:$0xff]  ;;  %v618_v18 = vld [vmem:[#allocation14 + $0x360] sm:$0xff] }
  0x5f   :  { %v313_v57 = vsel %vm312_vm3, %v305_v53, %v304_v52  ;;  %721 = vmatpush.msra.mxu2 %v570_v59  ;;  %v540_v19 = vld [vmem:[#allocation14 + $0xf0] sm:$0xff]  ;;  %v583_v20 = vld [vmem:[#allocation14 + $0x248] sm:$0xff]  ;;  %v625_v21 = vld [vmem:[#allocation14 + $0x398] sm:$0xff] }
  0x60   :  { %3457 = vmatmul.msk.f32.vlgmr.msra.gmra.mxu0 %vm282_vm0, %v313_v57  ;;  %781 = vmatpush.msra.mxu1 %v667_v56  ;;  %v577_v22 = vld [vmem:[#allocation14 + $0x218] sm:$0xff]  ;;  %v619_v23 = vld [vmem:[#allocation14 + $0x368] sm:$0xff]  ;;  %v534_v24 = vld [vmem:[#allocation14 + $0xc0] sm:$0xff] }
  0x61   :  { %476 = vmatpush.msra.mxu0 %v408_v55  ;;  %743 = vmatpush.msra.mxu3 %v654_v58  ;;  %v606_v25 = vld [vmem:[#allocation14 + $0x300] sm:$0xff]  ;;  %v571_v26 = vld [vmem:[#allocation14 + $0x1e8] sm:$0xff]  ;;  %v613_v27 = vld [vmem:[#allocation14 + $0x338] sm:$0xff] }
  0x62   :  { %782 = vmatpush.msra.mxu1 %v661_v61  ;;  %722 = vmatpush.msra.mxu2 %v564_v63  ;;  %v698_v28 = vld [vmem:[#allocation14 + $0x5e0] sm:$0xff]  ;;  %v528_v29 = vld [vmem:[#allocation14 + $0x90] sm:$0xff]  ;;  %v565_v30 = vld [vmem:[#allocation14 + $0x1b8] sm:$0xff] }
  0x63   :  { %477 = vmatpush.msra.mxu0 %v406_v60  ;;  %744 = vmatpush.msra.mxu3 %v648_v62  ;;  %v607_v31 = vld [vmem:[#allocation14 + $0x308] sm:$0xff]  ;;  %v692_v33 = vld [vmem:[#allocation14 + $0x5b0] sm:$0xff]  ;;  %v522_v35 = vld [vmem:[#allocation14 + $0x60] sm:$0xff] }
  0x64   :  { %783 = vmatpush.msra.mxu1 %v655_v0  ;;  %723 = vmatpush.msra.mxu2 %v558_v2  ;;  %v699_v32 = vld [vmem:[#allocation14 + $0x5e8] sm:$0xff]  ;;  %v693_v36 = vld [vmem:[#allocation14 + $0x5b8] sm:$0xff]  ;;  %v516_v39 = vld [vmem:[#allocation14 + $0x30] sm:$0xff] }
  0x65   :  { %745 = vmatpush.msra.mxu3 %v642_v1  ;;  %v559_v34 = vld [vmem:[#allocation14 + $0x188] sm:$0xff]  ;;  %v553_v38 = vld [vmem:[#allocation14 + $0x158] sm:$0xff]  ;;  %v680_v41 = vld [vmem:[#allocation14 + $0x550] sm:$0xff] }
  0x66   :  { %784 = vmatpush.msra.mxu1 %v649_v3  ;;  %724 = vmatpush.msra.mxu2 %v552_v8  ;;  %v687_v40 = vld [vmem:[#allocation14 + $0x588] sm:$0xff]  ;;  %v510_v43 = vld [vmem:[#allocation14] sm:$0xff]  ;;  %v681_v44 = vld [vmem:[#allocation14 + $0x558] sm:$0xff] }
  0x67   :  { %746 = vmatpush.msra.mxu3 %v636_v4  ;;  %v547_v42 = vld [vmem:[#allocation14 + $0x128] sm:$0xff]  ;;  %v602_v45 = vld [vmem:[#allocation14 + $0x2e0] sm:$0xff]  ;;  %v541_v46 = vld [vmem:[#allocation14 + $0xf8] sm:$0xff] }
  0x68   :  { %3461 = vmatmul.msk.f32.vlgmr.msrb.gmra.mxu0 %vm415_vm1, %v4076_v11  ;;  %785 = vmatpush.msra.mxu1 %v643_v6  ;;  %v612_v11 = vld [vmem:[#allocation14 + $0x330] sm:$0xff]  ;;  %v674_v47 = vld [vmem:[#allocation14 + $0x520] sm:$0xff]  ;;  %v675_v48 = vld [vmem:[#allocation14 + $0x528] sm:$0xff] }
  0x69   :  { %756 = vmatpush.msrb.mxu0 %v601_v5  ;;  %747 = vmatpush.msra.mxu3 %v630_v7  ;;  %v596_v49 = vld [vmem:[#allocation14 + $0x2b0] sm:$0xff]  ;;  %v535_v50 = vld [vmem:[#allocation14 + $0xc8] sm:$0xff]  ;;  %v669_v52 = vld [vmem:[#allocation14 + $0x4f8] sm:$0xff] }
  0x6a   :  { %786 = vmatpush.msra.mxu1 %v637_v13  ;;  %725 = vmatpush.msra.mxu2 %v546_v15  ;;  %v668_v51 = vld [vmem:[#allocation14 + $0x4f0] sm:$0xff]  ;;  %v590_v53 = vld [vmem:[#allocation14 + $0x280] sm:$0xff]  ;;  %v529_v54 = vld [vmem:[#allocation14 + $0x98] sm:$0xff] }
  0x6b   :  { %757 = vmatpush.msrb.mxu0 %v595_v12  ;;  %748 = vmatpush.msra.mxu3 %v624_v14  ;;  %v662_v55 = vld [vmem:[#allocation14 + $0x4c0] sm:$0xff]  ;;  %v663_v56 = vld [vmem:[#allocation14 + $0x4c8] sm:$0xff]  ;;  %v584_v57 = vld [vmem:[#allocation14 + $0x250] sm:$0xff] }
  0x6c   :  { %787 = vmatpush.msra.mxu1 %v631_v17  ;;  %726 = vmatpush.msra.mxu2 %v540_v19  ;;  %v523_v58 = vld [vmem:[#allocation14 + $0x68] sm:$0xff]  ;;  %v656_v59 = vld [vmem:[#allocation14 + $0x490] sm:$0xff]  ;;  %v657_v60 = vld [vmem:[#allocation14 + $0x498] sm:$0xff] }
  0x6d   :  { %758 = vmatpush.msrb.mxu0 %v589_v16  ;;  %749 = vmatpush.msra.mxu3 %v618_v18  ;;  %v578_v61 = vld [vmem:[#allocation14 + $0x220] sm:$0xff]  ;;  %v517_v62 = vld [vmem:[#allocation14 + $0x38] sm:$0xff]  ;;  %v651_v0 = vld [vmem:[#allocation14 + $0x468] sm:$0xff] }
  0x6e   :  { %788 = vmatpush.msra.mxu1 %v625_v21  ;;  %727 = vmatpush.msra.mxu2 %v534_v24  ;;  %v650_v63 = vld [vmem:[#allocation14 + $0x460] sm:$0xff]  ;;  %v511_v1 = vld [vmem:[#allocation14 + $0x8] sm:$0xff]  ;;  %v597_v3 = vld [vmem:[#allocation14 + $0x2b8] sm:$0xff] }
  0x6f   :  { %759 = vmatpush.msrb.mxu0 %v583_v20  ;;  %750 = vmatpush.msra.mxu3 %v612_v11  ;;  %v603_v2 = vld [vmem:[#allocation14 + $0x2e8] sm:$0xff]  ;;  %v585_v5 = vld [vmem:[#allocation14 + $0x258] sm:$0xff]  ;;  %v572_v7 = vld [vmem:[#allocation14 + $0x1f0] sm:$0xff] }
  0x70   :  { %3462 = vmatmul.msk.f32.vlgmr.msra.gmra.mxu0 %vm415_vm1, %v4087_v37  ;;  %789 = vmatpush.msra.mxu1 %v619_v23  ;;  %v686_v37 = vld [vmem:[#allocation14 + $0x580] sm:$0xff]  ;;  %v591_v4 = vld [vmem:[#allocation14 + $0x288] sm:$0xff]  ;;  %v644_v8 = vld [vmem:[#allocation14 + $0x430] sm:$0xff] }
  0x71   :  { %760 = vmatpush.msrb.mxu0 %v577_v22  ;;  %751 = vmatpush.msra.mxu3 %v606_v25  ;;  %v579_v6 = vld [vmem:[#allocation14 + $0x228] sm:$0xff]  ;;  %v573_v12 = vld [vmem:[#allocation14 + $0x1f8] sm:$0xff]  ;;  %v566_v14 = vld [vmem:[#allocation14 + $0x1c0] sm:$0xff] }
  0x72   :  { %790 = vmatpush.msra.mxu1 %v613_v27  ;;  %728 = vmatpush.msra.mxu2 %v528_v29  ;;  %v645_v13 = vld [vmem:[#allocation14 + $0x438] sm:$0xff]  ;;  %v638_v15 = vld [vmem:[#allocation14 + $0x400] sm:$0xff]  ;;  %v567_v16 = vld [vmem:[#allocation14 + $0x1c8] sm:$0xff] }
  0x73   :  { %761 = vmatpush.msrb.mxu0 %v571_v26  ;;  %816 = vmatpush.msrb.mxu3 %v698_v28  ;;  %v639_v17 = vld [vmem:[#allocation14 + $0x408] sm:$0xff]  ;;  %v560_v18 = vld [vmem:[#allocation14 + $0x190] sm:$0xff]  ;;  %v561_v20 = vld [vmem:[#allocation14 + $0x198] sm:$0xff] }
  0x74   :  { %791 = vmatpush.msra.mxu1 %v607_v31  ;;  %729 = vmatpush.msra.mxu2 %v522_v35  ;;  %v632_v19 = vld [vmem:[#allocation14 + $0x3d0] sm:$0xff]  ;;  %v633_v21 = vld [vmem:[#allocation14 + $0x3d8] sm:$0xff]  ;;  %v554_v11 = vld [vmem:[#allocation14 + $0x160] sm:$0xff] }
  0x75   :  { %762 = vmatpush.msrb.mxu0 %v565_v30  ;;  %817 = vmatpush.msrb.mxu3 %v692_v33  ;;  %v626_v22 = vld [vmem:[#allocation14 + $0x3a0] sm:$0xff]  ;;  %v555_v23 = vld [vmem:[#allocation14 + $0x168] sm:$0xff]  ;;  %v548_v25 = vld [vmem:[#allocation14 + $0x130] sm:$0xff] }
  0x76   :  { %856 = vmatpush.msrb.mxu1 %v699_v32  ;;  %730 = vmatpush.msra.mxu2 %v516_v39  ;;  %v627_v24 = vld [vmem:[#allocation14 + $0x3a8] sm:$0xff]  ;;  %v620_v26 = vld [vmem:[#allocation14 + $0x370] sm:$0xff]  ;;  %v549_v27 = vld [vmem:[#allocation14 + $0x138] sm:$0xff] }
  0x77   :  { %763 = vmatpush.msrb.mxu0 %v559_v34  ;;  %818 = vmatpush.msrb.mxu3 %v686_v37  ;;  %v621_v28 = vld [vmem:[#allocation14 + $0x378] sm:$0xff]  ;;  %v542_v29 = vld [vmem:[#allocation14 + $0x100] sm:$0xff]  ;;  %v543_v31 = vld [vmem:[#allocation14 + $0x108] sm:$0xff] }
  0x78   :  { %857 = vmatpush.msrb.mxu1 %v693_v36  ;;  %731 = vmatpush.msra.mxu2 %v510_v43  ;;  %v614_v30 = vld [vmem:[#allocation14 + $0x340] sm:$0xff]  ;;  %v615_v32 = vld [vmem:[#allocation14 + $0x348] sm:$0xff]  ;;  %v536_v33 = vld [vmem:[#allocation14 + $0xd0] sm:$0xff] }
  0x79   :  { %764 = vmatpush.msrb.mxu0 %v553_v38  ;;  %819 = vmatpush.msrb.mxu3 %v680_v41  ;;  %v608_v34 = vld [vmem:[#allocation14 + $0x310] sm:$0xff]  ;;  %v537_v35 = vld [vmem:[#allocation14 + $0xd8] sm:$0xff]  ;;  %v530_v37 = vld [vmem:[#allocation14 + $0xa0] sm:$0xff] }
  0x7a   :  { %858 = vmatpush.msrb.mxu1 %v687_v40  ;;  %796 = vmatpush.msrb.mxu2 %v602_v45  ;;  %v609_v36 = vld [vmem:[#allocation14 + $0x318] sm:$0xff]  ;;  %v531_v38 = vld [vmem:[#allocation14 + $0xa8] sm:$0xff]  ;;  %v524_v39 = vld [vmem:[#allocation14 + $0x70] sm:$0xff] }
  0x7b   :  { %765 = vmatpush.msrb.mxu0 %v547_v42  ;;  %820 = vmatpush.msrb.mxu3 %v674_v47  ;;  %v525_v40 = vld [vmem:[#allocation14 + $0x78] sm:$0xff]  ;;  %v518_v41 = vld [vmem:[#allocation14 + $0x40] sm:$0xff]  ;;  %v519_v42 = vld [vmem:[#allocation14 + $0x48] sm:$0xff] }
  0x7c   :  { %859 = vmatpush.msrb.mxu1 %v681_v44  ;;  %797 = vmatpush.msrb.mxu2 %v596_v49  ;;  %v512_v43 = vld [vmem:[#allocation14 + $0x10] sm:$0xff]  ;;  %v513_v44 = vld [vmem:[#allocation14 + $0x18] sm:$0xff] }
  0x7d   :  { %766 = vmatpush.msrb.mxu0 %v541_v46  ;;  %821 = vmatpush.msrb.mxu3 %v668_v51  ;;  %v502_v47 = vld [vmem:[#allocation13] sm:$0x3] }
  0x7e   :  { %860 = vmatpush.msrb.mxu1 %v675_v48  ;;  %798 = vmatpush.msrb.mxu2 %v590_v53 }
  0x7f   :  { %767 = vmatpush.msrb.mxu0 %v535_v50  ;;  %822 = vmatpush.msrb.mxu3 %v662_v55  ;;  %v505_v50 = vperm.slane %v502_v47, 1 }
  0x80   :  { %861 = vmatpush.msrb.mxu1 %v669_v52  ;;  %799 = vmatpush.msrb.mxu2 %v584_v57  ;;  %v701_v57 = vld [vmem:[#allocation14 + $0x5f8] sm:$0xff] }
  0x81   :  { %768 = vmatpush.msrb.mxu0 %v529_v54  ;;  %823 = vmatpush.msrb.mxu3 %v656_v59 }
  0x82   :  { %862 = vmatpush.msrb.mxu1 %v663_v56  ;;  %800 = vmatpush.msrb.mxu2 %v578_v61  ;;  %v700_v56 = vld [vmem:[#allocation14 + $0x5f0] sm:$0xff]  ;;  %v695_v61 = vld [vmem:[#allocation14 + $0x5c8] sm:$0xff] }
  0x83   :  { %769 = vmatpush.msrb.mxu0 %v523_v58  ;;  %824 = vmatpush.msrb.mxu3 %v650_v63  ;;  %v688_v63 = vld [vmem:[#allocation14 + $0x590] sm:$0xff] }
  0x84   :  { %863 = vmatpush.msrb.mxu1 %v657_v60  ;;  %801 = vmatpush.msrb.mxu2 %v572_v7  ;;  %v694_v60 = vld [vmem:[#allocation14 + $0x5c0] sm:$0xff]  ;;  %v676_v7 = vld [vmem:[#allocation14 + $0x530] sm:$0xff] }
  0x85   :  { %770 = vmatpush.msrb.mxu0 %v517_v62  ;;  %825 = vmatpush.msrb.mxu3 %v644_v8  ;;  %v504_v62 = vperm.slane %v502_v47, 0  ;;  %v551_v47 = vld [vmem:[#allocation14 + $0x148] sm:$0xff] }
  0x86   :  { %864 = vmatpush.msrb.mxu1 %v651_v0  ;;  %802 = vmatpush.msrb.mxu2 %v566_v14  ;;  %v689_v0 = vld [vmem:[#allocation14 + $0x598] sm:$0xff]  ;;  %v598_v14 = vld [vmem:[#allocation14 + $0x2c0] sm:$0xff] }
  0x87   :  { %771 = vmatpush.msrb.mxu0 %v511_v1  ;;  %826 = vmatpush.msrb.mxu3 %v638_v15  ;;  %v670_v15 = vld [vmem:[#allocation14 + $0x500] sm:$0xff] }
  0x88   :  { %865 = vmatpush.msrb.mxu1 %v645_v13  ;;  %803 = vmatpush.msrb.mxu2 %v560_v18  ;;  %v677_v13 = vld [vmem:[#allocation14 + $0x538] sm:$0xff]  ;;  %v592_v18 = vld [vmem:[#allocation14 + $0x290] sm:$0xff] }
  0x89   :  { %836 = vmatpush.msra.mxu0 %v603_v2  ;;  %827 = vmatpush.msrb.mxu3 %v632_v19  ;;  %v664_v19 = vld [vmem:[#allocation14 + $0x4d0] sm:$0xff] }
  0x8a   :  { %866 = vmatpush.msrb.mxu1 %v639_v17  ;;  %804 = vmatpush.msrb.mxu2 %v554_v11  ;;  %v586_v11 = vld [vmem:[#allocation14 + $0x260] sm:$0xff] }
  0x8b   :  { %837 = vmatpush.msra.mxu0 %v597_v3  ;;  %828 = vmatpush.msrb.mxu3 %v626_v22  ;;  %v682_v3 = vld [vmem:[#allocation14 + $0x560] sm:$0xff] }
  0x8c   :  { %867 = vmatpush.msrb.mxu1 %v633_v21  ;;  %805 = vmatpush.msrb.mxu2 %v548_v25  ;;  %v665_v21 = vld [vmem:[#allocation14 + $0x4d8] sm:$0xff]  ;;  %v658_v22 = vld [vmem:[#allocation14 + $0x4a0] sm:$0xff]  ;;  %v580_v25 = vld [vmem:[#allocation14 + $0x230] sm:$0xff] }
  0x8d   :  { %838 = vmatpush.msra.mxu0 %v591_v4  ;;  %829 = vmatpush.msrb.mxu3 %v620_v26  ;;  %v683_v4 = vld [vmem:[#allocation14 + $0x568] sm:$0xff]  ;;  %v652_v26 = vld [vmem:[#allocation14 + $0x470] sm:$0xff] }
  0x8e   :  { %868 = vmatpush.msrb.mxu1 %v627_v24  ;;  %806 = vmatpush.msrb.mxu2 %v542_v29  ;;  %v659_v24 = vld [vmem:[#allocation14 + $0x4a8] sm:$0xff]  ;;  %v574_v29 = vld [vmem:[#allocation14 + $0x200] sm:$0xff] }
  0x8f   :  { %839 = vmatpush.msra.mxu0 %v585_v5  ;;  %830 = vmatpush.msrb.mxu3 %v614_v30  ;;  %v646_v30 = vld [vmem:[#allocation14 + $0x440] sm:$0xff] }
  0x90   :  { %869 = vmatpush.msrb.mxu1 %v621_v28  ;;  %807 = vmatpush.msrb.mxu2 %v536_v33  ;;  %v653_v28 = vld [vmem:[#allocation14 + $0x478] sm:$0xff]  ;;  %v568_v33 = vld [vmem:[#allocation14 + $0x1d0] sm:$0xff] }
  0x91   :  { %840 = vmatpush.msra.mxu0 %v579_v6  ;;  %831 = vmatpush.msrb.mxu3 %v608_v34  ;;  %v604_v6 = vld [vmem:[#allocation14 + $0x2f0] sm:$0xff] }
  0x92   :  { %870 = vmatpush.msrb.mxu1 %v615_v32  ;;  %808 = vmatpush.msrb.mxu2 %v530_v37  ;;  %v647_v32 = vld [vmem:[#allocation14 + $0x448] sm:$0xff]  ;;  %v640_v34 = vld [vmem:[#allocation14 + $0x410] sm:$0xff]  ;;  %v562_v37 = vld [vmem:[#allocation14 + $0x1a0] sm:$0xff] }
  0x93   :  { %841 = vmatpush.msra.mxu0 %v573_v12  ;;  %v605_v12 = vld [vmem:[#allocation14 + $0x2f8] sm:$0xff] }
  0x94   :  { %871 = vmatpush.msrb.mxu1 %v609_v36  ;;  %809 = vmatpush.msrb.mxu2 %v524_v39  ;;  %v641_v36 = vld [vmem:[#allocation14 + $0x418] sm:$0xff]  ;;  %v563_v39 = vld [vmem:[#allocation14 + $0x1a8] sm:$0xff] }
  0x95   :  { %842 = vmatpush.msra.mxu0 %v567_v16  ;;  %v599_v16 = vld [vmem:[#allocation14 + $0x2c8] sm:$0xff] }
  0x96   :  { %810 = vmatpush.msrb.mxu2 %v518_v41  ;;  %v556_v41 = vld [vmem:[#allocation14 + $0x170] sm:$0xff] }
  0x97   :  { %843 = vmatpush.msra.mxu0 %v561_v20  ;;  %v593_v20 = vld [vmem:[#allocation14 + $0x298] sm:$0xff] }
  0x98   :  { %811 = vmatpush.msrb.mxu2 %v512_v43  ;;  %v557_v43 = vld [vmem:[#allocation14 + $0x178] sm:$0xff] }
  0x99   :  { %844 = vmatpush.msra.mxu0 %v555_v23  ;;  %v587_v23 = vld [vmem:[#allocation14 + $0x268] sm:$0xff] }
  0x9b   :  { %845 = vmatpush.msra.mxu0 %v549_v27  ;;  %v581_v27 = vld [vmem:[#allocation14 + $0x238] sm:$0xff] }
  0x9d   :  { %846 = vmatpush.msra.mxu0 %v543_v31  ;;  %v575_v31 = vld [vmem:[#allocation14 + $0x208] sm:$0xff] }
  0x9f   :  { %847 = vmatpush.msra.mxu0 %v537_v35  ;;  %v569_v35 = vld [vmem:[#allocation14 + $0x1d8] sm:$0xff] }
  0xa1   :  { %848 = vmatpush.msra.mxu0 %v531_v38  ;;  %v634_v38 = vld [vmem:[#allocation14 + $0x3e0] sm:$0xff] }
  0xa3   :  { %849 = vmatpush.msra.mxu0 %v525_v40  ;;  %v635_v40 = vld [vmem:[#allocation14 + $0x3e8] sm:$0xff] }
  0xa5   :  { %850 = vmatpush.msra.mxu0 %v519_v42  ;;  %v628_v42 = vld [vmem:[#allocation14 + $0x3b0] sm:$0xff] }
  0xa7   :  { %851 = vmatpush.msra.mxu0 %v513_v44  ;;  %v629_v44 = vld [vmem:[#allocation14 + $0x3b8] sm:$0xff] }
  0xce   :  { %v436_v45 = vpop.f32.mrf.mxu1 }
  0xd6   :  { %v499_v48 = vpop.f32.mrf.mxu1 }
  0xdd   :  { %v333_v46 = vpop.f32.mrf.mxu0 }
  0xde   :  { %3496 = vtanh.f32 %v333_v46  ;;  %v622_v46 = vld [vmem:[#allocation14 + $0x380] sm:$0xff] }
  0xe4   :  { %v3497_v49 = vpop.eup %3496 }
  0xe5   :  { %v456_v51 = vpop.f32.mrf.mxu0  ;;  %v339_v52 = vperm.slane %v3497_v49, 0  ;;  %v338_v59 = vrot.slane %v3497_v49, 1  ;;  %v544_v49 = vld [vmem:[#allocation14 + $0x110] sm:$0xff] }
  0xe6   :  { %v500_v53 = vadd.f32 %v499_v48, %v456_v51  ;;  %v623_v48 = vld [vmem:[#allocation14 + $0x388] sm:$0xff]  ;;  %v545_v51 = vld [vmem:[#allocation14 + $0x118] sm:$0xff] }
  0xe7   :  { %v343_v54 = vmul.f32 %v339_v52, %v4072_v9  ;;  %v340_v1 = vperm.slane %v338_v59, 0  ;;  %v617_v52 = vld [vmem:[#allocation14 + $0x358] sm:$0xff] }
  0xe8   :  { %v4099_v55 = vadd.f32 %v505_v50, %v500_v53  ;;  %v616_v50 = vld [vmem:[#allocation14 + $0x350] sm:$0xff]  ;;  %v538_v53 = vld [vmem:[#allocation14 + $0xe0] sm:$0xff]  ;;  %v533_v59 = vld [vmem:[#allocation14 + $0xb8] sm:$0xff] }
  0xe9   :  { %v345_v58 = vsel %vm282_vm0, %v343_v54, 0.0  ;;  %v344_v8 = vmul.f32 %v340_v1, %v4074_v10  ;;  %v671_v10 = vld [vmem:[#allocation14 + $0x508] sm:$0xff]  ;;  %v610_v54 = vld [vmem:[#allocation14 + $0x320] sm:$0xff]  ;;  %v1396_v1 = vld [vmem:[#allocation17 + $0xd90] sm:$0xff] }
  0xea   :  { %752 = vmatmul.f32.vlgmr.msra.gmra.mxu3 %v4099_v55  ;;  %792 = vmatmul.f32.vlgmr.msra.gmra.mxu1 %v4099_v55 }
  0xeb   :  { %896 = vmatpush.msra.mxu3 %v700_v56  ;;  %936 = vmatpush.msra.mxu1 %v701_v57  ;;  %v348_v17 = vsel %vm282_vm0, %v344_v8, 0.0  ;;  %v539_v56 = vld [vmem:[#allocation14 + $0xe8] sm:$0xff] }
  0xec   :  { %346 = vadd.xlane.f32.xlu0 %v345_v58  ;;  %v611_v57 = vld [vmem:[#allocation14 + $0x328] sm:$0xff]  ;;  %v532_v58 = vld [vmem:[#allocation14 + $0xb0] sm:$0xff] }
  0xed   :  { %897 = vmatpush.msra.mxu3 %v694_v60  ;;  %937 = vmatpush.msra.mxu1 %v695_v61  ;;  %v479_v9 = vpop.f32.mrf.mxu0  ;;  %v1179_v60 = vld [vmem:[#allocation17 + $0x6c8] sm:$0xff]  ;;  %v526_v61 = vld [vmem:[#allocation14 + $0x80] sm:$0xff] }
  0xee   :  { %v480_v2 = vadd.f32 %v479_v9, %v436_v45  ;;  %v550_v45 = vld [vmem:[#allocation14 + $0x140] sm:$0xff]  ;;  %v520_v9 = vld [vmem:[#allocation14 + $0x50] sm:$0xff] }
  0xef   :  { %898 = vmatpush.msra.mxu3 %v688_v63  ;;  %938 = vmatpush.msra.mxu1 %v689_v0  ;;  %v527_v63 = vld [vmem:[#allocation14 + $0x88] sm:$0xff]  ;;  %v1172_v0 = vld [vmem:[#allocation17 + $0x690] sm:$0xff] }
  0xf0   :  { %v4104_v5 = vadd.f32 %v504_v62, %v480_v2  ;;  %v1403_v62 = vld [vmem:[#allocation17 + $0xdc8] sm:$0xff]  ;;  %v521_v2 = vld [vmem:[#allocation14 + $0x58] sm:$0xff]  ;;  %v1158_v8 = vld [vmem:[#allocation17 + $0x620] sm:$0xff] }
  0xf1   :  { %899 = vmatpush.msra.mxu3 %v682_v3  ;;  %939 = vmatpush.msra.mxu1 %v683_v4  ;;  %v1165_v3 = vld [vmem:[#allocation17 + $0x658] sm:$0xff] }
  0xf2   :  { %732 = vmatmul.f32.vlgmr.msra.gmra.mxu2 %v4104_v5  ;;  %772 = vmatmul.f32.vlgmr.msrb.gmra.mxu0 %v4104_v5  ;;  %v514_v4 = vld [vmem:[#allocation14 + $0x20] sm:$0xff] }
  0xf3   :  { %832 = vmatmul.f32.vlgmr.msrb.gmra.mxu3 %v4099_v55  ;;  %872 = vmatmul.f32.vlgmr.msrb.gmra.mxu1 %v4099_v55 }
  0xf4   :  { %876 = vmatpush.msra.mxu2 %v604_v6  ;;  %900 = vmatpush.msra.mxu3 %v676_v7  ;;  %v1389_v6 = vld [vmem:[#allocation17 + $0xd58] sm:$0xff]  ;;  %v515_v7 = vld [vmem:[#allocation14 + $0x28] sm:$0xff] }
  0xf5   :  { %916 = vmatpush.msrb.mxu0 %v605_v12  ;;  %940 = vmatpush.msra.mxu1 %v677_v13  ;;  %v1291_v12 = vld [vmem:[#allocation17 + $0xa48] sm:$0xff]  ;;  %v1060_v13 = vld [vmem:[#allocation17 + $0x310] sm:$0xff] }
  0xf6   :  { %349 = vadd.xlane.f32.xlu0 %v348_v17  ;;  %877 = vmatpush.msra.mxu2 %v598_v14  ;;  %v1382_v14 = vld [vmem:[#allocation17 + $0xd20] sm:$0xff]  ;;  %v1053_v17 = vld [vmem:[#allocation17 + $0x2d8] sm:$0xff] }
  0xf7   :  { %901 = vmatpush.msra.mxu3 %v670_v15  ;;  %917 = vmatpush.msrb.mxu0 %v599_v16  ;;  %v1151_v15 = vld [vmem:[#allocation17 + $0x5e8] sm:$0xff]  ;;  %v1284_v16 = vld [vmem:[#allocation17 + $0xa10] sm:$0xff] }
  0xf8   :  { %941 = vmatpush.msra.mxu1 %v671_v10  ;;  %878 = vmatpush.msra.mxu2 %v592_v18  ;;  %v1375_v10 = vld [vmem:[#allocation17 + $0xce8] sm:$0xff]  ;;  %v1144_v18 = vld [vmem:[#allocation17 + $0x5b0] sm:$0xff] }
  0xf9   :  { %902 = vmatpush.msra.mxu3 %v664_v19  ;;  %918 = vmatpush.msrb.mxu0 %v593_v20  ;;  %v1277_v19 = vld [vmem:[#allocation17 + $0x9d8] sm:$0xff]  ;;  %v1046_v20 = vld [vmem:[#allocation17 + $0x2a0] sm:$0xff] }
  0xfa   :  { %942 = vmatpush.msra.mxu1 %v665_v21  ;;  %879 = vmatpush.msra.mxu2 %v586_v11  ;;  %v1368_v21 = vld [vmem:[#allocation17 + $0xcb0] sm:$0xff]  ;;  %v1137_v11 = vld [vmem:[#allocation17 + $0x578] sm:$0xff] }
  0xfb   :  { %903 = vmatpush.msra.mxu3 %v658_v22  ;;  %919 = vmatpush.msrb.mxu0 %v587_v23  ;;  %v1270_v22 = vld [vmem:[#allocation17 + $0x9a0] sm:$0xff]  ;;  %v1361_v23 = vld [vmem:[#allocation17 + $0xc78] sm:$0xff] }
  0xfc   :  { %943 = vmatpush.msra.mxu1 %v659_v24  ;;  %812 = vmatmul.f32.vlgmr.msrb.gmra.mxu2 %v4104_v5  ;;  %v1130_v24 = vld [vmem:[#allocation17 + $0x540] sm:$0xff] }
  0xfd   :  { %852 = vmatmul.f32.vlgmr.msra.gmra.mxu0 %v4104_v5  ;;  %880 = vmatpush.msra.mxu2 %v580_v25  ;;  %v1263_v25 = vld [vmem:[#allocation17 + $0x968] sm:$0xff] }
  0xfe   :  { %904 = vmatpush.msra.mxu3 %v652_v26  ;;  %920 = vmatpush.msrb.mxu0 %v581_v27  ;;  %v1032_v26 = vld [vmem:[#allocation17 + $0x230] sm:$0xff]  ;;  %v1354_v27 = vld [vmem:[#allocation17 + $0xc40] sm:$0xff] }
  0xff   :  { %944 = vmatpush.msra.mxu1 %v653_v28  ;;  %881 = vmatpush.msra.mxu2 %v574_v29  ;;  %v1123_v28 = vld [vmem:[#allocation17 + $0x508] sm:$0xff]  ;;  %v1256_v29 = vld [vmem:[#allocation17 + $0x930] sm:$0xff] }
 0x100   :  { %905 = vmatpush.msra.mxu3 %v646_v30  ;;  %921 = vmatpush.msrb.mxu0 %v575_v31  ;;  %v1025_v30 = vld [vmem:[#allocation17 + $0x1f8] sm:$0xff]  ;;  %v1347_v31 = vld [vmem:[#allocation17 + $0xc08] sm:$0xff] }
 0x101   :  { %945 = vmatpush.msra.mxu1 %v647_v32  ;;  %882 = vmatpush.msra.mxu2 %v568_v33  ;;  %v1116_v32 = vld [vmem:[#allocation17 + $0x4d0] sm:$0xff]  ;;  %v1249_v33 = vld [vmem:[#allocation17 + $0x8f8] sm:$0xff] }
 0x102   :  { %906 = vmatpush.msra.mxu3 %v640_v34  ;;  %922 = vmatpush.msrb.mxu0 %v569_v35  ;;  %v1018_v34 = vld [vmem:[#allocation17 + $0x1c0] sm:$0xff]  ;;  %v1340_v35 = vld [vmem:[#allocation17 + $0xbd0] sm:$0xff] }
 0x103   :  { %946 = vmatpush.msra.mxu1 %v641_v36  ;;  %883 = vmatpush.msra.mxu2 %v562_v37  ;;  %v1109_v36 = vld [vmem:[#allocation17 + $0x498] sm:$0xff]  ;;  %v1242_v37 = vld [vmem:[#allocation17 + $0x8c0] sm:$0xff] }
 0x104   :  { %907 = vmatpush.msra.mxu3 %v634_v38  ;;  %923 = vmatpush.msrb.mxu0 %v563_v39  ;;  %v1011_v38 = vld [vmem:[#allocation17 + $0x188] sm:$0xff]  ;;  %v1333_v39 = vld [vmem:[#allocation17 + $0xb98] sm:$0xff] }
 0x105   :  { %947 = vmatpush.msra.mxu1 %v635_v40  ;;  %884 = vmatpush.msra.mxu2 %v556_v41  ;;  %v1102_v40 = vld [vmem:[#allocation17 + $0x460] sm:$0xff]  ;;  %v1235_v41 = vld [vmem:[#allocation17 + $0x888] sm:$0xff] }
 0x106   :  { %908 = vmatpush.msra.mxu3 %v628_v42  ;;  %924 = vmatpush.msrb.mxu0 %v557_v43  ;;  %v1004_v42 = vld [vmem:[#allocation17 + $0x150] sm:$0xff]  ;;  %v1326_v43 = vld [vmem:[#allocation17 + $0xb60] sm:$0xff] }
 0x107   :  { %948 = vmatpush.msra.mxu1 %v629_v44  ;;  %885 = vmatpush.msra.mxu2 %v550_v45  ;;  %v1095_v44 = vld [vmem:[#allocation17 + $0x428] sm:$0xff]  ;;  %v1228_v45 = vld [vmem:[#allocation17 + $0x850] sm:$0xff] }
 0x108   :  { %909 = vmatpush.msra.mxu3 %v622_v46  ;;  %925 = vmatpush.msrb.mxu0 %v551_v47  ;;  %v997_v46 = vld [vmem:[#allocation17 + $0x118] sm:$0xff]  ;;  %v1319_v47 = vld [vmem:[#allocation17 + $0xb28] sm:$0xff] }
 0x109   :  { %949 = vmatpush.msra.mxu1 %v623_v48  ;;  %886 = vmatpush.msra.mxu2 %v544_v49  ;;  %v1088_v48 = vld [vmem:[#allocation17 + $0x3f0] sm:$0xff]  ;;  %v1221_v49 = vld [vmem:[#allocation17 + $0x818] sm:$0xff] }
 0x10a   :  { %910 = vmatpush.msra.mxu3 %v616_v50  ;;  %926 = vmatpush.msrb.mxu0 %v545_v51  ;;  %v990_v50 = vld [vmem:[#allocation17 + $0xe0] sm:$0xff]  ;;  %v1312_v51 = vld [vmem:[#allocation17 + $0xaf0] sm:$0xff] }
 0x10b   :  { %950 = vmatpush.msra.mxu1 %v617_v52  ;;  %887 = vmatpush.msra.mxu2 %v538_v53  ;;  %v1081_v52 = vld [vmem:[#allocation17 + $0x3b8] sm:$0xff]  ;;  %v1214_v53 = vld [vmem:[#allocation17 + $0x7e0] sm:$0xff] }
 0x10c   :  { %911 = vmatpush.msra.mxu3 %v610_v54  ;;  %927 = vmatpush.msrb.mxu0 %v539_v56  ;;  %v983_v54 = vld [vmem:[#allocation17 + $0xa8] sm:$0xff]  ;;  %v1305_v56 = vld [vmem:[#allocation17 + $0xab8] sm:$0xff] }
 0x10d   :  { %951 = vmatpush.msra.mxu1 %v611_v57  ;;  %912 = vmatmul.f32.vlgmr.msra.gmra.mxu3 %v4099_v55  ;;  %v1074_v57 = vld [vmem:[#allocation17 + $0x380] sm:$0xff] }
 0x10e   :  { %952 = vmatmul.f32.vlgmr.msra.gmra.mxu1 %v4099_v55  ;;  %888 = vmatpush.msra.mxu2 %v532_v58  ;;  %v1067_v55 = vld [vmem:[#allocation17 + $0x348] sm:$0xff] }
 0x10f   :  { %928 = vmatpush.msrb.mxu0 %v533_v59  ;;  %1670 = vmatpush.msrb.mxu3 %v1179_v60  ;;  %v1627_v58 = vld [vmem:[#allocation17 + $0x14c8] sm:$0xff]  ;;  %v976_v59 = vld [vmem:[#allocation17 + $0x70] sm:$0xff] }
 0x110   :  { %889 = vmatpush.msra.mxu2 %v526_v61  ;;  %1710 = vmatpush.msrb.mxu1 %v1403_v62  ;;  %v1620_v60 = vld [vmem:[#allocation17 + $0x1490] sm:$0xff]  ;;  %v969_v61 = vld [vmem:[#allocation17 + $0x38] sm:$0xff] }
 0x111   :  { %929 = vmatpush.msrb.mxu0 %v527_v63  ;;  %1671 = vmatpush.msrb.mxu3 %v1172_v0  ;;  %v1613_v62 = vld [vmem:[#allocation17 + $0x1458] sm:$0xff]  ;;  %v962_v63 = vld [vmem:[#allocation17] sm:$0xff]  ;;  %v1515_v0 = vld [vmem:[#allocation17 + $0x1148] sm:$0xff] }
 0x112   :  { %890 = vmatpush.msra.mxu2 %v520_v9  ;;  %1711 = vmatpush.msrb.mxu1 %v1396_v1  ;;  %v1606_v9 = vld [vmem:[#allocation17 + $0x1420] sm:$0xff]  ;;  %v1207_v1 = vld [vmem:[#allocation17 + $0x7a8] sm:$0xff] }
 0x113   :  { %930 = vmatpush.msrb.mxu0 %v521_v2  ;;  %1672 = vmatpush.msrb.mxu3 %v1165_v3  ;;  %v1298_v2 = vld [vmem:[#allocation17 + $0xa80] sm:$0xff]  ;;  %v1508_v3 = vld [vmem:[#allocation17 + $0x1110] sm:$0xff] }
 0x114   :  { %891 = vmatpush.msra.mxu2 %v514_v4  ;;  %1712 = vmatpush.msrb.mxu1 %v1389_v6  ;;  %v1599_v4 = vld [vmem:[#allocation17 + $0x13e8] sm:$0xff]  ;;  %v1180_v6 = vld [vmem:[#allocation17 + $0x6d0] sm:$0xff] }
 0x115   :  { %931 = vmatpush.msrb.mxu0 %v515_v7  ;;  %892 = vmatmul.f32.vlgmr.msra.gmra.mxu2 %v4104_v5  ;;  %v1200_v7 = vld [vmem:[#allocation17 + $0x770] sm:$0xff] }
 0x116   :  { %932 = vmatmul.f32.vlgmr.msrb.gmra.mxu0 %v4104_v5  ;;  %1650 = vmatpush.msrb.mxu2 %v1067_v55  ;;  %v1039_v5 = vld [vmem:[#allocation17 + $0x268] sm:$0xff]  ;;  %v1501_v55 = vld [vmem:[#allocation17 + $0x10d8] sm:$0xff] }
 0x117   :  { %1673 = vmatpush.msrb.mxu3 %v1158_v8  ;;  %1690 = vmatpush.msra.mxu0 %v1291_v12  ;;  %v1592_v8 = vld [vmem:[#allocation17 + $0x13b0] sm:$0xff]  ;;  %v1173_v12 = vld [vmem:[#allocation17 + $0x698] sm:$0xff] }
 0x118   :  { %1651 = vmatpush.msrb.mxu2 %v1060_v13  ;;  %1713 = vmatpush.msrb.mxu1 %v1382_v14  ;;  %v1193_v13 = vld [vmem:[#allocation17 + $0x738] sm:$0xff]  ;;  %v1494_v14 = vld [vmem:[#allocation17 + $0x10a0] sm:$0xff] }
 0x119   :  { %1674 = vmatpush.msrb.mxu3 %v1151_v15  ;;  %1691 = vmatpush.msra.mxu0 %v1284_v16  ;;  %v1585_v15 = vld [vmem:[#allocation17 + $0x1378] sm:$0xff]  ;;  %v1166_v16 = vld [vmem:[#allocation17 + $0x660] sm:$0xff] }
 0x11a   :  { %1652 = vmatpush.msrb.mxu2 %v1053_v17  ;;  %1714 = vmatpush.msrb.mxu1 %v1375_v10  ;;  %v1186_v17 = vld [vmem:[#allocation17 + $0x700] sm:$0xff]  ;;  %v1487_v10 = vld [vmem:[#allocation17 + $0x1068] sm:$0xff] }
 0x11b   :  { %1675 = vmatpush.msrb.mxu3 %v1144_v18  ;;  %1692 = vmatpush.msra.mxu0 %v1277_v19  ;;  %v1578_v18 = vld [vmem:[#allocation17 + $0x1340] sm:$0xff]  ;;  %v1068_v19 = vld [vmem:[#allocation17 + $0x350] sm:$0xff] }
 0x11c   :  { %1653 = vmatpush.msrb.mxu2 %v1046_v20  ;;  %1715 = vmatpush.msrb.mxu1 %v1368_v21  ;;  %v1159_v20 = vld [vmem:[#allocation17 + $0x628] sm:$0xff]  ;;  %v1480_v21 = vld [vmem:[#allocation17 + $0x1030] sm:$0xff] }
 0x11d   :  { %1676 = vmatpush.msrb.mxu3 %v1137_v11  ;;  %1693 = vmatpush.msra.mxu0 %v1270_v22  ;;  %v1571_v11 = vld [vmem:[#allocation17 + $0x1308] sm:$0xff]  ;;  %v1061_v22 = vld [vmem:[#allocation17 + $0x318] sm:$0xff] }
 0x11e   :  { %1654 = vmatpush.msrb.mxu2 %v1039_v5  ;;  %1716 = vmatpush.msrb.mxu1 %v1361_v23  ;;  %v1152_v5 = vld [vmem:[#allocation17 + $0x5f0] sm:$0xff]  ;;  %v1473_v23 = vld [vmem:[#allocation17 + $0xff8] sm:$0xff] }
 0x11f   :  { %1677 = vmatpush.msrb.mxu3 %v1130_v24  ;;  %1694 = vmatpush.msra.mxu0 %v1263_v25  ;;  %v1564_v24 = vld [vmem:[#allocation17 + $0x12d0] sm:$0xff]  ;;  %v1054_v25 = vld [vmem:[#allocation17 + $0x2e0] sm:$0xff] }
 0x120   :  { %1655 = vmatpush.msrb.mxu2 %v1032_v26  ;;  %1717 = vmatpush.msrb.mxu1 %v1354_v27  ;;  %v1145_v26 = vld [vmem:[#allocation17 + $0x5b8] sm:$0xff]  ;;  %v1466_v27 = vld [vmem:[#allocation17 + $0xfc0] sm:$0xff] }
 0x121   :  { %1678 = vmatpush.msrb.mxu3 %v1123_v28  ;;  %1695 = vmatpush.msra.mxu0 %v1256_v29  ;;  %v1557_v28 = vld [vmem:[#allocation17 + $0x1298] sm:$0xff]  ;;  %v1047_v29 = vld [vmem:[#allocation17 + $0x2a8] sm:$0xff] }
 0x122   :  { %1656 = vmatpush.msrb.mxu2 %v1025_v30  ;;  %1718 = vmatpush.msrb.mxu1 %v1347_v31  ;;  %v1138_v30 = vld [vmem:[#allocation17 + $0x580] sm:$0xff]  ;;  %v1459_v31 = vld [vmem:[#allocation17 + $0xf88] sm:$0xff] }
 0x123   :  { %1679 = vmatpush.msrb.mxu3 %v1116_v32  ;;  %1696 = vmatpush.msra.mxu0 %v1249_v33  ;;  %v1550_v32 = vld [vmem:[#allocation17 + $0x1260] sm:$0xff]  ;;  %v1040_v33 = vld [vmem:[#allocation17 + $0x270] sm:$0xff] }
 0x124   :  { %1657 = vmatpush.msrb.mxu2 %v1018_v34  ;;  %1719 = vmatpush.msrb.mxu1 %v1340_v35  ;;  %v1131_v34 = vld [vmem:[#allocation17 + $0x548] sm:$0xff]  ;;  %v1452_v35 = vld [vmem:[#allocation17 + $0xf50] sm:$0xff] }
 0x125   :  { %1680 = vmatpush.msrb.mxu3 %v1109_v36  ;;  %1697 = vmatpush.msra.mxu0 %v1242_v37  ;;  %v1543_v36 = vld [vmem:[#allocation17 + $0x1228] sm:$0xff]  ;;  %v1033_v37 = vld [vmem:[#allocation17 + $0x238] sm:$0xff] }
 0x126   :  { %1658 = vmatpush.msrb.mxu2 %v1011_v38  ;;  %1720 = vmatpush.msrb.mxu1 %v1333_v39  ;;  %v1124_v38 = vld [vmem:[#allocation17 + $0x510] sm:$0xff]  ;;  %v1445_v39 = vld [vmem:[#allocation17 + $0xf18] sm:$0xff] }
 0x127   :  { %1681 = vmatpush.msrb.mxu3 %v1102_v40  ;;  %1698 = vmatpush.msra.mxu0 %v1235_v41  ;;  %v1536_v40 = vld [vmem:[#allocation17 + $0x11f0] sm:$0xff]  ;;  %v1026_v41 = vld [vmem:[#allocation17 + $0x200] sm:$0xff] }
 0x128   :  { %1659 = vmatpush.msrb.mxu2 %v1004_v42  ;;  %1721 = vmatpush.msrb.mxu1 %v1326_v43  ;;  %v1117_v42 = vld [vmem:[#allocation17 + $0x4d8] sm:$0xff]  ;;  %v1438_v43 = vld [vmem:[#allocation17 + $0xee0] sm:$0xff] }
 0x129   :  { %1682 = vmatpush.msrb.mxu3 %v1095_v44  ;;  %1699 = vmatpush.msra.mxu0 %v1228_v45  ;;  %v1529_v44 = vld [vmem:[#allocation17 + $0x11b8] sm:$0xff]  ;;  %v1019_v45 = vld [vmem:[#allocation17 + $0x1c8] sm:$0xff] }
 0x12a   :  { %1660 = vmatpush.msrb.mxu2 %v997_v46  ;;  %1722 = vmatpush.msrb.mxu1 %v1319_v47  ;;  %v1110_v46 = vld [vmem:[#allocation17 + $0x4a0] sm:$0xff]  ;;  %v1431_v47 = vld [vmem:[#allocation17 + $0xea8] sm:$0xff] }
 0x12b   :  { %1683 = vmatpush.msrb.mxu3 %v1088_v48  ;;  %1700 = vmatpush.msra.mxu0 %v1221_v49  ;;  %v1522_v48 = vld [vmem:[#allocation17 + $0x1180] sm:$0xff]  ;;  %v1012_v49 = vld [vmem:[#allocation17 + $0x190] sm:$0xff] }
 0x12c   :  { %1661 = vmatpush.msrb.mxu2 %v990_v50  ;;  %1723 = vmatpush.msrb.mxu1 %v1312_v51  ;;  %v1103_v50 = vld [vmem:[#allocation17 + $0x468] sm:$0xff]  ;;  %v1424_v51 = vld [vmem:[#allocation17 + $0xe70] sm:$0xff] }
 0x12d   :  { %1684 = vmatpush.msrb.mxu3 %v1081_v52  ;;  %1701 = vmatpush.msra.mxu0 %v1214_v53  ;;  %v1005_v52 = vld [vmem:[#allocation17 + $0x158] sm:$0xff]  ;;  %v1096_v53 = vld [vmem:[#allocation17 + $0x430] sm:$0xff] }
 0x12e   :  { %1662 = vmatpush.msrb.mxu2 %v983_v54  ;;  %1724 = vmatpush.msrb.mxu1 %v1305_v56  ;;  %v1417_v54 = vld [vmem:[#allocation17 + $0xe38] sm:$0xff]  ;;  %v998_v56 = vld [vmem:[#allocation17 + $0x120] sm:$0xff] }
 0x12f   :  { %1685 = vmatpush.msrb.mxu3 %v1074_v57  ;;  %1702 = vmatpush.msra.mxu0 %v1207_v1  ;;  %v1089_v57 = vld [vmem:[#allocation17 + $0x3f8] sm:$0xff] }
 0x130   :  { %1663 = vmatpush.msrb.mxu2 %v976_v59  ;;  %1725 = vmatpush.msrb.mxu1 %v1298_v2  ;;  %v991_v59 = vld [vmem:[#allocation17 + $0xe8] sm:$0xff]  ;;  %v4118_v1 = vld [vmem:[#allocation16] sm:$0x3f] }
 0x131   :  { %1750 = vmatpush.msra.mxu3 %v1627_v58  ;;  %1703 = vmatpush.msra.mxu0 %v1200_v7  ;;  %v1410_v58 = vld [vmem:[#allocation17 + $0xe00] sm:$0xff]  ;;  %v705_v2 = vperm.slane %v4118_v1, 1 }
 0x132   :  { %1664 = vmatpush.msrb.mxu2 %v969_v61  ;;  %1790 = vmatpush.msra.mxu1 %v1180_v6  ;;  %v984_v61 = vld [vmem:[#allocation17 + $0xb0] sm:$0xff] }
 0x133   :  { %1751 = vmatpush.msra.mxu3 %v1620_v60  ;;  %1704 = vmatpush.msra.mxu0 %v1193_v13  ;;  %v1082_v60 = vld [vmem:[#allocation17 + $0x3c0] sm:$0xff] }
 0x134   :  { %1665 = vmatpush.msrb.mxu2 %v962_v63  ;;  %1791 = vmatpush.msra.mxu1 %v1173_v12  ;;  %v977_v63 = vld [vmem:[#allocation17 + $0x78] sm:$0xff]  ;;  %v1404_v12 = vld [vmem:[#allocation17 + $0xdd0] sm:$0xff] }
 0x135   :  { %1752 = vmatpush.msra.mxu3 %v1613_v62  ;;  %1705 = vmatpush.msra.mxu0 %v1186_v17  ;;  %v1075_v62 = vld [vmem:[#allocation17 + $0x388] sm:$0xff]  ;;  %v707_v17 = vperm.slane %v4118_v1, 3 }
 0x136   :  { %1730 = vmatpush.msra.mxu2 %v1515_v0  ;;  %1792 = vmatpush.msra.mxu1 %v1166_v16  ;;  %v970_v0 = vld [vmem:[#allocation17 + $0x40] sm:$0xff] }
 0x137   :  { %1753 = vmatpush.msra.mxu3 %v1606_v9  ;;  %1770 = vmatpush.msrb.mxu0 %v1068_v19  ;;  %v963_v9 = vld [vmem:[#allocation17 + $0x8] sm:$0xff] }
 0x138   :  { %1731 = vmatpush.msra.mxu2 %v1508_v3  ;;  %1793 = vmatpush.msra.mxu1 %v1159_v20 }
 0x139   :  { %1754 = vmatpush.msra.mxu3 %v1599_v4  ;;  %1771 = vmatpush.msrb.mxu0 %v1061_v22 }
 0x13a   :  { %1732 = vmatpush.msra.mxu2 %v1501_v55  ;;  %1794 = vmatpush.msra.mxu1 %v1152_v5  ;;  %v704_v55 = vperm.slane %v4118_v1, 0 }
 0x13b   :  { %1755 = vmatpush.msra.mxu3 %v1592_v8  ;;  %1772 = vmatpush.msrb.mxu0 %v1054_v25  ;;  %v1376_v25 = vld [vmem:[#allocation17 + $0xcf0] sm:$0xff] }
 0x13c   :  { %1733 = vmatpush.msra.mxu2 %v1494_v14  ;;  %1795 = vmatpush.msra.mxu1 %v1145_v26 }
 0x13d   :  { %1756 = vmatpush.msra.mxu3 %v1585_v15  ;;  %1773 = vmatpush.msrb.mxu0 %v1047_v29  ;;  %v1397_v15 = vld [vmem:[#allocation17 + $0xd98] sm:$0xff] }
 0x13e   :  { %1734 = vmatpush.msra.mxu2 %v1487_v10  ;;  %1796 = vmatpush.msra.mxu1 %v1138_v30  ;;  %v1628_v30 = vld [vmem:[#allocation17 + $0x14d0] sm:$0xff] }
 0x13f   :  { %1757 = vmatpush.msra.mxu3 %v1578_v18  ;;  %1774 = vmatpush.msrb.mxu0 %v1040_v33  ;;  %v1390_v18 = vld [vmem:[#allocation17 + $0xd60] sm:$0xff]  ;;  %v1271_v33 = vld [vmem:[#allocation17 + $0x9a8] sm:$0xff] }
 0x140   :  { %1735 = vmatpush.msra.mxu2 %v1480_v21  ;;  %1797 = vmatpush.msra.mxu1 %v1131_v34  ;;  %v1292_v21 = vld [vmem:[#allocation17 + $0xa50] sm:$0xff] }
 0x141   :  { %1758 = vmatpush.msra.mxu3 %v1571_v11  ;;  %1775 = vmatpush.msrb.mxu0 %v1033_v37  ;;  %v1383_v11 = vld [vmem:[#allocation17 + $0xd28] sm:$0xff] }
 0x142   :  { %1736 = vmatpush.msra.mxu2 %v1473_v23  ;;  %1798 = vmatpush.msra.mxu1 %v1124_v38  ;;  %v706_v23 = vperm.slane %v4118_v1, 2  ;;  %v1264_v38 = vld [vmem:[#allocation17 + $0x970] sm:$0xff] }
 0x143   :  { %1759 = vmatpush.msra.mxu3 %v1564_v24  ;;  %1776 = vmatpush.msrb.mxu0 %v1026_v41  ;;  %v1285_v24 = vld [vmem:[#allocation17 + $0xa18] sm:$0xff]  ;;  %v1355_v41 = vld [vmem:[#allocation17 + $0xc48] sm:$0xff] }
 0x144   :  { %1737 = vmatpush.msra.mxu2 %v1466_v27  ;;  %1799 = vmatpush.msra.mxu1 %v1117_v42  ;;  %v1278_v27 = vld [vmem:[#allocation17 + $0x9e0] sm:$0xff]  ;;  %v1516_v42 = vld [vmem:[#allocation17 + $0x1150] sm:$0xff] }
 0x145   :  { %1760 = vmatpush.msra.mxu3 %v1557_v28  ;;  %1777 = vmatpush.msrb.mxu0 %v1019_v45  ;;  %v1348_v45 = vld [vmem:[#allocation17 + $0xc10] sm:$0xff] }
 0x146   :  { %1738 = vmatpush.msra.mxu2 %v1459_v31  ;;  %1800 = vmatpush.msra.mxu1 %v1110_v46  ;;  %v1369_v31 = vld [vmem:[#allocation17 + $0xcb8] sm:$0xff] }
 0x147   :  { %1761 = vmatpush.msra.mxu3 %v1550_v32  ;;  %1778 = vmatpush.msrb.mxu0 %v1012_v49  ;;  %v1509_v46 = vld [vmem:[#allocation17 + $0x1118] sm:$0xff] }
 0x148   :  { %1739 = vmatpush.msra.mxu2 %v1452_v35  ;;  %1801 = vmatpush.msra.mxu1 %v1103_v50  ;;  %v1621_v35 = vld [vmem:[#allocation17 + $0x1498] sm:$0xff]  ;;  %v1502_v50 = vld [vmem:[#allocation17 + $0x10e0] sm:$0xff] }
 0x149   :  { %1762 = vmatpush.msra.mxu3 %v1543_v36  ;;  %1779 = vmatpush.msrb.mxu0 %v1005_v52  ;;  %v1362_v36 = vld [vmem:[#allocation17 + $0xc80] sm:$0xff]  ;;  %v1341_v49 = vld [vmem:[#allocation17 + $0xbd8] sm:$0xff]  ;;  %v1243_v52 = vld [vmem:[#allocation17 + $0x8c8] sm:$0xff] }
 0x14a   :  { %1740 = vmatpush.msra.mxu2 %v1445_v39  ;;  %1802 = vmatpush.msra.mxu1 %v1096_v53  ;;  %v1614_v39 = vld [vmem:[#allocation17 + $0x1460] sm:$0xff] }
 0x14b   :  { %1763 = vmatpush.msra.mxu3 %v1536_v40  ;;  %1780 = vmatpush.msrb.mxu0 %v998_v56  ;;  %v1334_v53 = vld [vmem:[#allocation17 + $0xba0] sm:$0xff] }
 0x14c   :  { %1741 = vmatpush.msra.mxu2 %v1438_v43  ;;  %1803 = vmatpush.msra.mxu1 %v1089_v57  ;;  %v1607_v43 = vld [vmem:[#allocation17 + $0x1428] sm:$0xff]  ;;  %v1586_v56 = vld [vmem:[#allocation17 + $0x1380] sm:$0xff]  ;;  %v1236_v57 = vld [vmem:[#allocation17 + $0x890] sm:$0xff] }
 0x14d   :  { %1764 = vmatpush.msra.mxu3 %v1529_v44  ;;  %1781 = vmatpush.msrb.mxu0 %v991_v59  ;;  %v1257_v44 = vld [vmem:[#allocation17 + $0x938] sm:$0xff]  ;;  %v1488_v59 = vld [vmem:[#allocation17 + $0x1070] sm:$0xff] }
 0x14e   :  { %1742 = vmatpush.msra.mxu2 %v1431_v47  ;;  %1804 = vmatpush.msra.mxu1 %v1082_v60  ;;  %v1600_v47 = vld [vmem:[#allocation17 + $0x13f0] sm:$0xff]  ;;  %v1579_v60 = vld [vmem:[#allocation17 + $0x1348] sm:$0xff] }
 0x14f   :  { %1765 = vmatpush.msra.mxu3 %v1522_v48  ;;  %1782 = vmatpush.msrb.mxu0 %v984_v61  ;;  %v1250_v48 = vld [vmem:[#allocation17 + $0x900] sm:$0xff]  ;;  %v1229_v61 = vld [vmem:[#allocation17 + $0x858] sm:$0xff] }
 0x150   :  { %1743 = vmatpush.msra.mxu2 %v1424_v51  ;;  %1805 = vmatpush.msra.mxu1 %v1075_v62  ;;  %v1593_v51 = vld [vmem:[#allocation17 + $0x13b8] sm:$0xff]  ;;  %v1320_v62 = vld [vmem:[#allocation17 + $0xb30] sm:$0xff] }
 0x151   :  { %1783 = vmatpush.msrb.mxu0 %v977_v63  ;;  %v1481_v63 = vld [vmem:[#allocation17 + $0x1038] sm:$0xff] }
 0x152   :  { %1744 = vmatpush.msra.mxu2 %v1417_v54  ;;  %v1495_v54 = vld [vmem:[#allocation17 + $0x10a8] sm:$0xff] }
 0x153   :  { %1784 = vmatpush.msrb.mxu0 %v970_v0  ;;  %v709_v0 = vperm.slane %v4118_v1, 5 }
 0x154   :  { %1745 = vmatpush.msra.mxu2 %v1410_v58  ;;  %v1327_v58 = vld [vmem:[#allocation17 + $0xb68] sm:$0xff] }
 0x155   :  { %1785 = vmatpush.msrb.mxu0 %v963_v9  ;;  %v1572_v9 = vld [vmem:[#allocation17 + $0x1310] sm:$0xff] }
 0x167   :  { %v793_v6 = vpop.f32.mrf.mxu1 }
 0x16d   :  { %v753_v16 = vpop.f32.mrf.mxu3 }
 0x16f   :  { %v773_v3 = vpop.f32.mrf.mxu0 }
 0x170   :  { %v774_v4 = vadd.f32 %v773_v3, %v705_v2  ;;  %v873_v5 = vpop.f32.mrf.mxu1  ;;  %v1222_v2 = vld [vmem:[#allocation17 + $0x820] sm:$0xff]  ;;  %v1313_v3 = vld [vmem:[#allocation17 + $0xaf8] sm:$0xff] }
 0x172   :  { %v794_v7 = vadd.f32 %v793_v6, %v774_v4  ;;  %v1474_v4 = vld [vmem:[#allocation17 + $0x1000] sm:$0xff]  ;;  %v1565_v6 = vld [vmem:[#allocation17 + $0x12d8] sm:$0xff] }
 0x174   :  { %v4122_v8 = vmax.f32 %v794_v7, 0.0  ;;  %v1215_v7 = vld [vmem:[#allocation17 + $0x7e8] sm:$0xff] }
 0x175   :  { %v733_v13 = vpop.f32.mrf.mxu2 }
 0x176   :  { %v734_v14 = vadd.f32 %v733_v13, %v704_v55  ;;  %1686 = vmatmul.f32.vlgmr.msrb.gmra.mxu3 %v4122_v8  ;;  %v833_v34 = vpop.f32.mrf.mxu3  ;;  %v1467_v13 = vld [vmem:[#allocation17 + $0xfc8] sm:$0xff] }
 0x177   :  { %1830 = vmatpush.msrb.mxu3 %v1404_v12  ;;  %v1306_v12 = vld [vmem:[#allocation17 + $0xac0] sm:$0xff] }
 0x178   :  { %v754_v10 = vadd.f32 %v753_v16, %v734_v14  ;;  %v1208_v16 = vld [vmem:[#allocation17 + $0x7b0] sm:$0xff] }
 0x179   :  { %1831 = vmatpush.msrb.mxu3 %v1397_v15  ;;  %v1558_v15 = vld [vmem:[#allocation17 + $0x12a0] sm:$0xff] }
 0x17a   :  { %v4126_v19 = vmax.f32 %v754_v10, 0.0  ;;  %v853_v20 = vpop.f32.mrf.mxu0  ;;  %v708_v10 = vperm.slane %v4118_v1, 4  ;;  %v1194_v1 = vld [vmem:[#allocation17 + $0x740] sm:$0xff] }
 0x17b   :  { %v854_v22 = vadd.f32 %v853_v20, %v707_v17  ;;  %1832 = vmatpush.msrb.mxu3 %v1390_v18  ;;  %v1299_v18 = vld [vmem:[#allocation17 + $0xa88] sm:$0xff]  ;;  %v1460_v20 = vld [vmem:[#allocation17 + $0xf90] sm:$0xff] }
 0x17c   :  { %1666 = vmatmul.f32.vlgmr.msrb.gmra.mxu2 %v4126_v19 }
 0x17d   :  { %v874_v26 = vadd.f32 %v873_v5, %v854_v22  ;;  %1810 = vmatpush.msrb.mxu2 %v1292_v21  ;;  %1833 = vmatpush.msrb.mxu3 %v1383_v11  ;;  %v1551_v11 = vld [vmem:[#allocation17 + $0x1268] sm:$0xff]  ;;  %v1201_v22 = vld [vmem:[#allocation17 + $0x778] sm:$0xff] }
 0x17e   :  { %v1453_v5 = vld [vmem:[#allocation17 + $0xf58] sm:$0xff] }
 0x17f   :  { %v4130_v28 = vmax.f32 %v874_v26, 0.0  ;;  %v813_v29 = vpop.f32.mrf.mxu2  ;;  %1811 = vmatpush.msrb.mxu2 %v1285_v24  ;;  %1834 = vmatpush.msrb.mxu3 %v1376_v25  ;;  %v1181_v25 = vld [vmem:[#allocation17 + $0x6d8] sm:$0xff]  ;;  %v1544_v26 = vld [vmem:[#allocation17 + $0x1230] sm:$0xff] }
 0x180   :  { %v814_v32 = vadd.f32 %v813_v29, %v706_v23  ;;  %v1446_v29 = vld [vmem:[#allocation17 + $0xf20] sm:$0xff] }
 0x181   :  { %1726 = vmatmul.f32.vlgmr.msrb.gmra.mxu1 %v4130_v28  ;;  %1812 = vmatpush.msrb.mxu2 %v1278_v27 }
 0x182   :  { %v834_v37 = vadd.f32 %v833_v34, %v814_v32  ;;  %1870 = vmatpush.msrb.mxu1 %v1628_v30  ;;  %1835 = vmatpush.msrb.mxu3 %v1369_v31  ;;  %v1174_v31 = vld [vmem:[#allocation17 + $0x6a0] sm:$0xff]  ;;  %v1537_v32 = vld [vmem:[#allocation17 + $0x11f8] sm:$0xff]  ;;  %v1187_v34 = vld [vmem:[#allocation17 + $0x708] sm:$0xff] }
 0x183   :  { %1813 = vmatpush.msrb.mxu2 %v1271_v33 }
 0x184   :  { %v4133_v40 = vmax.f32 %v834_v37, 0.0  ;;  %1871 = vmatpush.msrb.mxu1 %v1621_v35  ;;  %1836 = vmatpush.msrb.mxu3 %v1362_v36  ;;  %v1439_v35 = vld [vmem:[#allocation17 + $0xee8] sm:$0xff]  ;;  %v1530_v37 = vld [vmem:[#allocation17 + $0x11c0] sm:$0xff] }
 0x185   :  { %1814 = vmatpush.msrb.mxu2 %v1264_v38  ;;  %v1167_v36 = vld [vmem:[#allocation17 + $0x668] sm:$0xff] }
 0x186   :  { %1872 = vmatpush.msrb.mxu1 %v1614_v39  ;;  %1706 = vmatmul.f32.vlgmr.msra.gmra.mxu0 %v4133_v40  ;;  %v1432_v39 = vld [vmem:[#allocation17 + $0xeb0] sm:$0xff] }
 0x187   :  { %1837 = vmatpush.msrb.mxu3 %v1355_v41  ;;  %1850 = vmatpush.msra.mxu0 %v1516_v42  ;;  %v1069_v41 = vld [vmem:[#allocation17 + $0x358] sm:$0xff]  ;;  %v1160_v42 = vld [vmem:[#allocation17 + $0x630] sm:$0xff] }
 0x188   :  { %1873 = vmatpush.msrb.mxu1 %v1607_v43  ;;  %1815 = vmatpush.msrb.mxu2 %v1257_v44  ;;  %v1523_v43 = vld [vmem:[#allocation17 + $0x1188] sm:$0xff]  ;;  %v1062_v44 = vld [vmem:[#allocation17 + $0x320] sm:$0xff] }
 0x189   :  { %1806 = vmatmul.f32.vlgmr.msra.gmra.mxu1 %v4122_v8  ;;  %1838 = vmatpush.msrb.mxu3 %v1348_v45  ;;  %v1153_v45 = vld [vmem:[#allocation17 + $0x5f8] sm:$0xff] }
 0x18a   :  { %1851 = vmatpush.msra.mxu0 %v1509_v46  ;;  %1874 = vmatpush.msrb.mxu1 %v1600_v47  ;;  %v1405_v46 = vld [vmem:[#allocation17 + $0xdd8] sm:$0xff] }
 0x18b   :  { %1816 = vmatpush.msrb.mxu2 %v1250_v48  ;;  %1839 = vmatpush.msrb.mxu3 %v1341_v49  ;;  %v953_v17 = vpop.f32.mrf.mxu1  ;;  %v1425_v47 = vld [vmem:[#allocation17 + $0xe78] sm:$0xff]  ;;  %v1055_v48 = vld [vmem:[#allocation17 + $0x2e8] sm:$0xff]  ;;  %v1146_v49 = vld [vmem:[#allocation17 + $0x5c0] sm:$0xff] }
 0x18c   :  { %1852 = vmatpush.msra.mxu0 %v1502_v50  ;;  %1875 = vmatpush.msrb.mxu1 %v1593_v51  ;;  %v1398_v50 = vld [vmem:[#allocation17 + $0xda0] sm:$0xff] }
 0x18d   :  { %1817 = vmatpush.msrb.mxu2 %v1243_v52  ;;  %1840 = vmatpush.msrb.mxu3 %v1334_v53  ;;  %v1418_v51 = vld [vmem:[#allocation17 + $0xe40] sm:$0xff]  ;;  %v1048_v52 = vld [vmem:[#allocation17 + $0x2b0] sm:$0xff]  ;;  %v1139_v53 = vld [vmem:[#allocation17 + $0x588] sm:$0xff] }
 0x18e   :  { %1853 = vmatpush.msra.mxu0 %v1495_v54  ;;  %1876 = vmatpush.msrb.mxu1 %v1586_v56  ;;  %v1391_v54 = vld [vmem:[#allocation17 + $0xd68] sm:$0xff] }
 0x18f   :  { %1786 = vmatmul.f32.vlgmr.msrb.gmra.mxu0 %v4126_v19  ;;  %1818 = vmatpush.msrb.mxu2 %v1236_v57  ;;  %v1411_v56 = vld [vmem:[#allocation17 + $0xe08] sm:$0xff]  ;;  %v1041_v57 = vld [vmem:[#allocation17 + $0x278] sm:$0xff] }
 0x190   :  { %1841 = vmatpush.msrb.mxu3 %v1327_v58  ;;  %1854 = vmatpush.msra.mxu0 %v1488_v59  ;;  %v913_v30 = vpop.f32.mrf.mxu3  ;;  %v1132_v58 = vld [vmem:[#allocation17 + $0x550] sm:$0xff]  ;;  %v1293_v59 = vld [vmem:[#allocation17 + $0xa58] sm:$0xff] }
 0x191   :  { %1877 = vmatpush.msrb.mxu1 %v1579_v60  ;;  %1819 = vmatpush.msrb.mxu2 %v1229_v61  ;;  %v1384_v60 = vld [vmem:[#allocation17 + $0xd30] sm:$0xff]  ;;  %v1034_v61 = vld [vmem:[#allocation17 + $0x240] sm:$0xff] }
 0x192   :  { %1842 = vmatpush.msrb.mxu3 %v1320_v62  ;;  %1855 = vmatpush.msra.mxu0 %v1481_v63  ;;  %v1125_v62 = vld [vmem:[#allocation17 + $0x518] sm:$0xff]  ;;  %v1286_v63 = vld [vmem:[#allocation17 + $0xa20] sm:$0xff] }
 0x193   :  { %v933_v55 = vpop.f32.mrf.mxu0  ;;  %1878 = vmatpush.msrb.mxu1 %v1572_v9  ;;  %1820 = vmatpush.msrb.mxu2 %v1222_v2  ;;  %v1027_v9 = vld [vmem:[#allocation17 + $0x208] sm:$0xff]  ;;  %v1118_v2 = vld [vmem:[#allocation17 + $0x4e0] sm:$0xff] }
 0x194   :  { %v934_v14 = vadd.f32 %v933_v55, %v709_v0  ;;  %1843 = vmatpush.msrb.mxu3 %v1313_v3  ;;  %1856 = vmatpush.msra.mxu0 %v1474_v4  ;;  %v1377_v0 = vld [vmem:[#allocation17 + $0xcf8] sm:$0xff]  ;;  %v1279_v3 = vld [vmem:[#allocation17 + $0x9e8] sm:$0xff]  ;;  %v1370_v4 = vld [vmem:[#allocation17 + $0xcc0] sm:$0xff] }
 0x195   :  { %1879 = vmatpush.msrb.mxu1 %v1565_v6  ;;  %1821 = vmatpush.msrb.mxu2 %v1215_v7  ;;  %v1020_v6 = vld [vmem:[#allocation17 + $0x1d0] sm:$0xff]  ;;  %v1111_v7 = vld [vmem:[#allocation17 + $0x4a8] sm:$0xff] }
 0x196   :  { %v954_v21 = vadd.f32 %v953_v17, %v934_v14  ;;  %1844 = vmatpush.msrb.mxu3 %v1306_v12  ;;  %1857 = vmatpush.msra.mxu0 %v1467_v13  ;;  %v1272_v55 = vld [vmem:[#allocation17 + $0x9b0] sm:$0xff]  ;;  %v1363_v12 = vld [vmem:[#allocation17 + $0xc88] sm:$0xff]  ;;  %v1013_v13 = vld [vmem:[#allocation17 + $0x198] sm:$0xff] }
 0x197   :  { %1880 = vmatpush.msrb.mxu1 %v1558_v15  ;;  %1822 = vmatpush.msrb.mxu2 %v1208_v16  ;;  %v1104_v14 = vld [vmem:[#allocation17 + $0x470] sm:$0xff]  ;;  %v1265_v15 = vld [vmem:[#allocation17 + $0x978] sm:$0xff]  ;;  %v1006_v17 = vld [vmem:[#allocation17 + $0x160] sm:$0xff] }
 0x198   :  { %v4140_v23 = vmax.f32 %v954_v21, 0.0  ;;  %v893_v24 = vpop.f32.mrf.mxu2  ;;  %1845 = vmatpush.msrb.mxu3 %v1299_v18  ;;  %1858 = vmatpush.msra.mxu0 %v1460_v20  ;;  %v1356_v16 = vld [vmem:[#allocation17 + $0xc50] sm:$0xff]  ;;  %v1258_v18 = vld [vmem:[#allocation17 + $0x940] sm:$0xff]  ;;  %v1349_v20 = vld [vmem:[#allocation17 + $0xc18] sm:$0xff] }
 0x199   :  { %v894_v27 = vadd.f32 %v893_v24, %v708_v10  ;;  %1881 = vmatpush.msrb.mxu1 %v1551_v11  ;;  %1823 = vmatpush.msrb.mxu2 %v1201_v22  ;;  %v1097_v10 = vld [vmem:[#allocation17 + $0x438] sm:$0xff]  ;;  %v999_v21 = vld [vmem:[#allocation17 + $0x128] sm:$0xff]  ;;  %v1090_v11 = vld [vmem:[#allocation17 + $0x400] sm:$0xff] }
 0x19a   :  { %1766 = vmatmul.f32.vlgmr.msra.gmra.mxu3 %v4140_v23  ;;  %1859 = vmatpush.msra.mxu0 %v1453_v5  ;;  %v1251_v22 = vld [vmem:[#allocation17 + $0x908] sm:$0xff]  ;;  %v1342_v5 = vld [vmem:[#allocation17 + $0xbe0] sm:$0xff]  ;;  %v992_v24 = vld [vmem:[#allocation17 + $0xf0] sm:$0xff] }
 0x19b   :  { %v914_v33 = vadd.f32 %v913_v30, %v894_v27  ;;  %1910 = vmatpush.msra.mxu3 %v1181_v25  ;;  %1882 = vmatpush.msrb.mxu1 %v1544_v26  ;;  %v1083_v25 = vld [vmem:[#allocation17 + $0x3c8] sm:$0xff]  ;;  %v1244_v26 = vld [vmem:[#allocation17 + $0x8d0] sm:$0xff]  ;;  %v1237_v30 = vld [vmem:[#allocation17 + $0x898] sm:$0xff] }
 0x19c   :  { %1824 = vmatpush.msrb.mxu2 %v1194_v1  ;;  %1860 = vmatpush.msra.mxu0 %v1446_v29  ;;  %v1335_v27 = vld [vmem:[#allocation17 + $0xba8] sm:$0xff]  ;;  %v985_v1 = vld [vmem:[#allocation17 + $0xb8] sm:$0xff]  ;;  %v1076_v29 = vld [vmem:[#allocation17 + $0x390] sm:$0xff] }
 0x19d   :  { %v4143_v38 = vmax.f32 %v914_v33, 0.0  ;;  %1911 = vmatpush.msra.mxu3 %v1174_v31  ;;  %1883 = vmatpush.msrb.mxu1 %v1537_v32  ;;  %v1328_v31 = vld [vmem:[#allocation17 + $0xb70] sm:$0xff]  ;;  %v1629_v32 = vld [vmem:[#allocation17 + $0x14d8] sm:$0xff]  ;;  %v978_v33 = vld [vmem:[#allocation17 + $0x80] sm:$0xff] }
 0x19e   :  { %1825 = vmatpush.msrb.mxu2 %v1187_v34  ;;  %1861 = vmatpush.msra.mxu0 %v1439_v35  ;;  %v1230_v34 = vld [vmem:[#allocation17 + $0x860] sm:$0xff]  ;;  %v1321_v35 = vld [vmem:[#allocation17 + $0xb38] sm:$0xff] }
 0x19f   :  { %1912 = vmatpush.msra.mxu3 %v1167_v36  ;;  %1884 = vmatpush.msrb.mxu1 %v1530_v37  ;;  %v1622_v36 = vld [vmem:[#allocation17 + $0x14a0] sm:$0xff]  ;;  %v971_v37 = vld [vmem:[#allocation17 + $0x48] sm:$0xff] }
 0x1a0   :  { %1746 = vmatmul.f32.vlgmr.msra.gmra.mxu2 %v4143_v38  ;;  %1862 = vmatpush.msra.mxu0 %v1432_v39  ;;  %v1223_v39 = vld [vmem:[#allocation17 + $0x828] sm:$0xff] }
 0x1a1   :  { %1890 = vmatpush.msra.mxu2 %v1069_v41  ;;  %1913 = vmatpush.msra.mxu3 %v1160_v42  ;;  %v1314_v41 = vld [vmem:[#allocation17 + $0xb00] sm:$0xff]  ;;  %v1615_v42 = vld [vmem:[#allocation17 + $0x1468] sm:$0xff] }
 0x1a2   :  { %1885 = vmatpush.msrb.mxu1 %v1523_v43  ;;  %1846 = vmatmul.f32.vlgmr.msrb.gmra.mxu3 %v4130_v28  ;;  %v964_v43 = vld [vmem:[#allocation17 + $0x10] sm:$0xff] }
 0x1a3   :  { %1886 = vmatmul.f32.vlgmr.msrb.gmra.mxu1 %v4140_v23  ;;  %1891 = vmatpush.msra.mxu2 %v1062_v44  ;;  %v1216_v44 = vld [vmem:[#allocation17 + $0x7f0] sm:$0xff] }
 0x1a4   :  { %1914 = vmatpush.msra.mxu3 %v1153_v45  ;;  %1950 = vmatpush.msra.mxu1 %v1405_v46  ;;  %v1307_v45 = vld [vmem:[#allocation17 + $0xac8] sm:$0xff]  ;;  %v1608_v46 = vld [vmem:[#allocation17 + $0x1430] sm:$0xff] }
 0x1a5   :  { %1863 = vmatpush.msra.mxu0 %v1425_v47  ;;  %1892 = vmatpush.msra.mxu2 %v1055_v48  ;;  %v1517_v47 = vld [vmem:[#allocation17 + $0x1158] sm:$0xff] }
 0x1a6   :  { %1915 = vmatpush.msra.mxu3 %v1146_v49  ;;  %1951 = vmatpush.msra.mxu1 %v1398_v50  ;;  %v1209_v48 = vld [vmem:[#allocation17 + $0x7b8] sm:$0xff]  ;;  %v1300_v49 = vld [vmem:[#allocation17 + $0xa90] sm:$0xff] }
 0x1a7   :  { %1864 = vmatpush.msra.mxu0 %v1418_v51  ;;  %1893 = vmatpush.msra.mxu2 %v1048_v52  ;;  %v1601_v50 = vld [vmem:[#allocation17 + $0x13f8] sm:$0xff]  ;;  %v1510_v51 = vld [vmem:[#allocation17 + $0x1120] sm:$0xff] }
 0x1a8   :  { %1916 = vmatpush.msra.mxu3 %v1139_v53  ;;  %1952 = vmatpush.msra.mxu1 %v1391_v54  ;;  %v1182_v52 = vld [vmem:[#allocation17 + $0x6e0] sm:$0xff]  ;;  %v1503_v54 = vld [vmem:[#allocation17 + $0x10e8] sm:$0xff] }
 0x1a9   :  { %1865 = vmatpush.msra.mxu0 %v1411_v56  ;;  %1826 = vmatmul.f32.vlgmr.msrb.gmra.mxu2 %v4133_v40  ;;  %v1202_v53 = vld [vmem:[#allocation17 + $0x780] sm:$0xff] }
 0x1aa   :  { %1866 = vmatmul.f32.vlgmr.msra.gmra.mxu0 %v4143_v38  ;;  %1894 = vmatpush.msra.mxu2 %v1041_v57  ;;  %v1594_v56 = vld [vmem:[#allocation17 + $0x13c0] sm:$0xff]  ;;  %v1175_v57 = vld [vmem:[#allocation17 + $0x6a8] sm:$0xff] }
 0x1ab   :  { %1917 = vmatpush.msra.mxu3 %v1132_v58  ;;  %1930 = vmatpush.msrb.mxu0 %v1293_v59  ;;  %v1195_v58 = vld [vmem:[#allocation17 + $0x748] sm:$0xff]  ;;  %v1496_v59 = vld [vmem:[#allocation17 + $0x10b0] sm:$0xff] }
 0x1ac   :  { %1953 = vmatpush.msra.mxu1 %v1384_v60  ;;  %1895 = vmatpush.msra.mxu2 %v1034_v61  ;;  %v1587_v60 = vld [vmem:[#allocation17 + $0x1388] sm:$0xff]  ;;  %v1168_v61 = vld [vmem:[#allocation17 + $0x670] sm:$0xff] }
 0x1ad   :  { %1918 = vmatpush.msra.mxu3 %v1125_v62  ;;  %1931 = vmatpush.msrb.mxu0 %v1286_v63  ;;  %v1188_v62 = vld [vmem:[#allocation17 + $0x710] sm:$0xff]  ;;  %v1489_v63 = vld [vmem:[#allocation17 + $0x1078] sm:$0xff] }
 0x1ae   :  { %1954 = vmatpush.msra.mxu1 %v1377_v0  ;;  %1896 = vmatpush.msra.mxu2 %v1027_v9  ;;  %v1580_v0 = vld [vmem:[#allocation17 + $0x1350] sm:$0xff]  ;;  %v1070_v9 = vld [vmem:[#allocation17 + $0x360] sm:$0xff] }
 0x1af   :  { %1919 = vmatpush.msra.mxu3 %v1118_v2  ;;  %1932 = vmatpush.msrb.mxu0 %v1279_v3  ;;  %v1161_v2 = vld [vmem:[#allocation17 + $0x638] sm:$0xff]  ;;  %v1482_v3 = vld [vmem:[#allocation17 + $0x1040] sm:$0xff] }
 0x1b0   :  { %1955 = vmatpush.msra.mxu1 %v1370_v4  ;;  %1897 = vmatpush.msra.mxu2 %v1020_v6  ;;  %v1573_v4 = vld [vmem:[#allocation17 + $0x1318] sm:$0xff]  ;;  %v1063_v6 = vld [vmem:[#allocation17 + $0x328] sm:$0xff] }
 0x1b1   :  { %1920 = vmatpush.msra.mxu3 %v1111_v7  ;;  %1933 = vmatpush.msrb.mxu0 %v1272_v55  ;;  %v1154_v7 = vld [vmem:[#allocation17 + $0x600] sm:$0xff]  ;;  %v1475_v55 = vld [vmem:[#allocation17 + $0x1008] sm:$0xff] }
 0x1b2   :  { %1956 = vmatpush.msra.mxu1 %v1363_v12  ;;  %1898 = vmatpush.msra.mxu2 %v1013_v13  ;;  %v1566_v12 = vld [vmem:[#allocation17 + $0x12e0] sm:$0xff]  ;;  %v1056_v13 = vld [vmem:[#allocation17 + $0x2f0] sm:$0xff] }
 0x1b3   :  { %1921 = vmatpush.msra.mxu3 %v1104_v14  ;;  %1934 = vmatpush.msrb.mxu0 %v1265_v15  ;;  %v1147_v14 = vld [vmem:[#allocation17 + $0x5c8] sm:$0xff]  ;;  %v1468_v15 = vld [vmem:[#allocation17 + $0xfd0] sm:$0xff] }
 0x1b4   :  { %1957 = vmatpush.msra.mxu1 %v1356_v16  ;;  %1899 = vmatpush.msra.mxu2 %v1006_v17  ;;  %v1559_v16 = vld [vmem:[#allocation17 + $0x12a8] sm:$0xff]  ;;  %v1049_v17 = vld [vmem:[#allocation17 + $0x2b8] sm:$0xff] }
 0x1b5   :  { %1922 = vmatpush.msra.mxu3 %v1097_v10  ;;  %1935 = vmatpush.msrb.mxu0 %v1258_v18  ;;  %v1140_v10 = vld [vmem:[#allocation17 + $0x590] sm:$0xff]  ;;  %v1461_v18 = vld [vmem:[#allocation17 + $0xf98] sm:$0xff] }
 0x1b6   :  { %1958 = vmatpush.msra.mxu1 %v1349_v20  ;;  %1900 = vmatpush.msra.mxu2 %v999_v21  ;;  %v1552_v20 = vld [vmem:[#allocation17 + $0x1270] sm:$0xff]  ;;  %v1042_v21 = vld [vmem:[#allocation17 + $0x280] sm:$0xff] }
 0x1b7   :  { %1923 = vmatpush.msra.mxu3 %v1090_v11  ;;  %1936 = vmatpush.msrb.mxu0 %v1251_v22  ;;  %v1133_v11 = vld [vmem:[#allocation17 + $0x558] sm:$0xff]  ;;  %v1454_v22 = vld [vmem:[#allocation17 + $0xf60] sm:$0xff] }
 0x1b8   :  { %1959 = vmatpush.msra.mxu1 %v1342_v5  ;;  %1901 = vmatpush.msra.mxu2 %v992_v24  ;;  %v1545_v5 = vld [vmem:[#allocation17 + $0x1238] sm:$0xff]  ;;  %v1035_v24 = vld [vmem:[#allocation17 + $0x248] sm:$0xff] }
 0x1b9   :  { %1924 = vmatpush.msra.mxu3 %v1083_v25  ;;  %1937 = vmatpush.msrb.mxu0 %v1244_v26  ;;  %v1126_v25 = vld [vmem:[#allocation17 + $0x520] sm:$0xff]  ;;  %v1447_v26 = vld [vmem:[#allocation17 + $0xf28] sm:$0xff] }
 0x1ba   :  { %1960 = vmatpush.msra.mxu1 %v1335_v27  ;;  %1902 = vmatpush.msra.mxu2 %v985_v1  ;;  %v1538_v27 = vld [vmem:[#allocation17 + $0x1200] sm:$0xff]  ;;  %v1028_v1 = vld [vmem:[#allocation17 + $0x210] sm:$0xff] }
 0x1bb   :  { %1925 = vmatpush.msra.mxu3 %v1076_v29  ;;  %1938 = vmatpush.msrb.mxu0 %v1237_v30  ;;  %v1119_v29 = vld [vmem:[#allocation17 + $0x4e8] sm:$0xff]  ;;  %v1440_v30 = vld [vmem:[#allocation17 + $0xef0] sm:$0xff] }
 0x1bc   :  { %1961 = vmatpush.msra.mxu1 %v1328_v31  ;;  %1926 = vmatmul.f32.vlgmr.msra.gmra.mxu3 %v4122_v8  ;;  %v1531_v31 = vld [vmem:[#allocation17 + $0x11c8] sm:$0xff] }
 0x1bd   :  { %1990 = vmatpush.msrb.mxu3 %v1629_v32  ;;  %1903 = vmatpush.msra.mxu2 %v978_v33  ;;  %v1021_v32 = vld [vmem:[#allocation17 + $0x1d8] sm:$0xff]  ;;  %v1112_v33 = vld [vmem:[#allocation17 + $0x4b0] sm:$0xff] }
 0x1be   :  { %1939 = vmatpush.msrb.mxu0 %v1230_v34  ;;  %1962 = vmatpush.msra.mxu1 %v1321_v35  ;;  %v1433_v34 = vld [vmem:[#allocation17 + $0xeb8] sm:$0xff]  ;;  %v1524_v35 = vld [vmem:[#allocation17 + $0x1190] sm:$0xff] }
 0x1bf   :  { %1991 = vmatpush.msrb.mxu3 %v1622_v36  ;;  %1904 = vmatpush.msra.mxu2 %v971_v37  ;;  %v1014_v36 = vld [vmem:[#allocation17 + $0x1a0] sm:$0xff]  ;;  %v1105_v37 = vld [vmem:[#allocation17 + $0x478] sm:$0xff] }
 0x1c0   :  { %1940 = vmatpush.msrb.mxu0 %v1223_v39  ;;  %1963 = vmatpush.msra.mxu1 %v1314_v41  ;;  %v1406_v39 = vld [vmem:[#allocation17 + $0xde0] sm:$0xff] }
 0x1c1   :  { %1992 = vmatpush.msrb.mxu3 %v1615_v42  ;;  %1905 = vmatpush.msra.mxu2 %v964_v43  ;;  %v1426_v41 = vld [vmem:[#allocation17 + $0xe80] sm:$0xff]  ;;  %v1007_v42 = vld [vmem:[#allocation17 + $0x168] sm:$0xff] }
 0x1c2   :  { %1941 = vmatpush.msrb.mxu0 %v1216_v44  ;;  %1964 = vmatpush.msra.mxu1 %v1307_v45  ;;  %v1098_v43 = vld [vmem:[#allocation17 + $0x440] sm:$0xff]  ;;  %v1399_v44 = vld [vmem:[#allocation17 + $0xda8] sm:$0xff] }
 0x1c3   :  { %1906 = vmatmul.f32.vlgmr.msra.gmra.mxu2 %v4126_v19  ;;  %1993 = vmatpush.msrb.mxu3 %v1608_v46  ;;  %v1419_v45 = vld [vmem:[#allocation17 + $0xe48] sm:$0xff]  ;;  %v1000_v46 = vld [vmem:[#allocation17 + $0x130] sm:$0xff] }
 0x1c4   :  { %1970 = vmatpush.msrb.mxu2 %v1517_v47  ;;  %1942 = vmatpush.msrb.mxu0 %v1209_v48  ;;  %v1091_v47 = vld [vmem:[#allocation17 + $0x408] sm:$0xff]  ;;  %v1392_v48 = vld [vmem:[#allocation17 + $0xd70] sm:$0xff] }
 0x1c5   :  { %1965 = vmatpush.msra.mxu1 %v1300_v49  ;;  %1994 = vmatpush.msrb.mxu3 %v1601_v50  ;;  %v1412_v49 = vld [vmem:[#allocation17 + $0xe10] sm:$0xff]  ;;  %v993_v50 = vld [vmem:[#allocation17 + $0xf8] sm:$0xff] }
 0x1c6   :  { %1966 = vmatmul.f32.vlgmr.msra.gmra.mxu1 %v4130_v28  ;;  %1971 = vmatpush.msrb.mxu2 %v1510_v51  ;;  %v1084_v51 = vld [vmem:[#allocation17 + $0x3d0] sm:$0xff] }
 0x1c7   :  { %2030 = vmatpush.msrb.mxu1 %v1182_v52  ;;  %1943 = vmatpush.msrb.mxu0 %v1202_v53  ;;  %v1385_v52 = vld [vmem:[#allocation17 + $0xd38] sm:$0xff]  ;;  %v1294_v53 = vld [vmem:[#allocation17 + $0xa60] sm:$0xff] }
 0x1c8   :  { %1972 = vmatpush.msrb.mxu2 %v1503_v54  ;;  %1995 = vmatpush.msrb.mxu3 %v1594_v56  ;;  %v986_v54 = vld [vmem:[#allocation17 + $0xc0] sm:$0xff]  ;;  %v1077_v56 = vld [vmem:[#allocation17 + $0x398] sm:$0xff] }
 0x1c9   :  { %2031 = vmatpush.msrb.mxu1 %v1175_v57  ;;  %1944 = vmatpush.msrb.mxu0 %v1195_v58  ;;  %v1378_v57 = vld [vmem:[#allocation17 + $0xd00] sm:$0xff]  ;;  %v1287_v58 = vld [vmem:[#allocation17 + $0xa28] sm:$0xff] }
 0x1ca   :  { %1973 = vmatpush.msrb.mxu2 %v1496_v59  ;;  %1996 = vmatpush.msrb.mxu3 %v1587_v60  ;;  %v1630_v59 = vld [vmem:[#allocation17 + $0x14e0] sm:$0xff]  ;;  %v979_v60 = vld [vmem:[#allocation17 + $0x88] sm:$0xff] }
 0x1cb   :  { %2032 = vmatpush.msrb.mxu1 %v1168_v61  ;;  %1945 = vmatpush.msrb.mxu0 %v1188_v62  ;;  %v1280_v61 = vld [vmem:[#allocation17 + $0x9f0] sm:$0xff]  ;;  %v1371_v62 = vld [vmem:[#allocation17 + $0xcc8] sm:$0xff] }
 0x1cc   :  { %1946 = vmatmul.f32.vlgmr.msrb.gmra.mxu0 %v4133_v40  ;;  %1974 = vmatpush.msrb.mxu2 %v1489_v63  ;;  %v1623_v63 = vld [vmem:[#allocation17 + $0x14a8] sm:$0xff] }
 0x1cd   :  { %1997 = vmatpush.msrb.mxu3 %v1580_v0  ;;  %2010 = vmatpush.msra.mxu0 %v1070_v9  ;;  %v972_v0 = vld [vmem:[#allocation17 + $0x50] sm:$0xff]  ;;  %v1273_v9 = vld [vmem:[#allocation17 + $0x9b8] sm:$0xff] }
 0x1ce   :  { %2033 = vmatpush.msrb.mxu1 %v1161_v2  ;;  %1975 = vmatpush.msrb.mxu2 %v1482_v3  ;;  %v1364_v2 = vld [vmem:[#allocation17 + $0xc90] sm:$0xff] }
 0x1cf   :  { %1998 = vmatpush.msrb.mxu3 %v1573_v4  ;;  %2011 = vmatpush.msra.mxu0 %v1063_v6  ;;  %v1616_v3 = vld [vmem:[#allocation17 + $0x1470] sm:$0xff]  ;;  %v965_v4 = vld [vmem:[#allocation17 + $0x18] sm:$0xff]  ;;  %v1266_v6 = vld [vmem:[#allocation17 + $0x980] sm:$0xff] }
 0x1d0   :  { %2034 = vmatpush.msrb.mxu1 %v1154_v7  ;;  %1976 = vmatpush.msrb.mxu2 %v1475_v55  ;;  %v1357_v7 = vld [vmem:[#allocation17 + $0xc58] sm:$0xff]  ;;  %v1518_v55 = vld [vmem:[#allocation17 + $0x1160] sm:$0xff] }
 0x1d1   :  { %1999 = vmatpush.msrb.mxu3 %v1566_v12  ;;  %2012 = vmatpush.msra.mxu0 %v1056_v13  ;;  %v1609_v12 = vld [vmem:[#allocation17 + $0x1438] sm:$0xff]  ;;  %v1259_v13 = vld [vmem:[#allocation17 + $0x948] sm:$0xff] }
 0x1d2   :  { %2035 = vmatpush.msrb.mxu1 %v1147_v14  ;;  %1977 = vmatpush.msrb.mxu2 %v1468_v15  ;;  %v1350_v14 = vld [vmem:[#allocation17 + $0xc20] sm:$0xff]  ;;  %v1511_v15 = vld [vmem:[#allocation17 + $0x1128] sm:$0xff] }
 0x1d3   :  { %2000 = vmatpush.msrb.mxu3 %v1559_v16  ;;  %2013 = vmatpush.msra.mxu0 %v1049_v17  ;;  %v1602_v16 = vld [vmem:[#allocation17 + $0x1400] sm:$0xff]  ;;  %v1252_v17 = vld [vmem:[#allocation17 + $0x910] sm:$0xff] }
 0x1d4   :  { %2036 = vmatpush.msrb.mxu1 %v1140_v10  ;;  %1978 = vmatpush.msrb.mxu2 %v1461_v18  ;;  %v1343_v10 = vld [vmem:[#allocation17 + $0xbe8] sm:$0xff]  ;;  %v1504_v18 = vld [vmem:[#allocation17 + $0x10f0] sm:$0xff] }
 0x1d5   :  { %2001 = vmatpush.msrb.mxu3 %v1552_v20  ;;  %2014 = vmatpush.msra.mxu0 %v1042_v21  ;;  %v1595_v20 = vld [vmem:[#allocation17 + $0x13c8] sm:$0xff]  ;;  %v1245_v21 = vld [vmem:[#allocation17 + $0x8d8] sm:$0xff] }
 0x1d6   :  { %2037 = vmatpush.msrb.mxu1 %v1133_v11  ;;  %1979 = vmatpush.msrb.mxu2 %v1454_v22  ;;  %v1336_v11 = vld [vmem:[#allocation17 + $0xbb0] sm:$0xff]  ;;  %v1497_v22 = vld [vmem:[#allocation17 + $0x10b8] sm:$0xff] }
 0x1d7   :  { %2002 = vmatpush.msrb.mxu3 %v1545_v5  ;;  %2015 = vmatpush.msra.mxu0 %v1035_v24  ;;  %v1588_v5 = vld [vmem:[#allocation17 + $0x1390] sm:$0xff]  ;;  %v1238_v24 = vld [vmem:[#allocation17 + $0x8a0] sm:$0xff] }
 0x1d8   :  { %2038 = vmatpush.msrb.mxu1 %v1126_v25  ;;  %1980 = vmatpush.msrb.mxu2 %v1447_v26  ;;  %v1329_v25 = vld [vmem:[#allocation17 + $0xb78] sm:$0xff]  ;;  %v1490_v26 = vld [vmem:[#allocation17 + $0x1080] sm:$0xff] }
 0x1d9   :  { %2003 = vmatpush.msrb.mxu3 %v1538_v27  ;;  %2016 = vmatpush.msra.mxu0 %v1028_v1  ;;  %v1581_v27 = vld [vmem:[#allocation17 + $0x1358] sm:$0xff]  ;;  %v1231_v1 = vld [vmem:[#allocation17 + $0x868] sm:$0xff] }
 0x1da   :  { %2039 = vmatpush.msrb.mxu1 %v1119_v29  ;;  %1981 = vmatpush.msrb.mxu2 %v1440_v30  ;;  %v1322_v29 = vld [vmem:[#allocation17 + $0xb40] sm:$0xff]  ;;  %v1483_v30 = vld [vmem:[#allocation17 + $0x1048] sm:$0xff] }
 0x1db   :  { %2004 = vmatpush.msrb.mxu3 %v1531_v31  ;;  %2017 = vmatpush.msra.mxu0 %v1021_v32  ;;  %v1574_v31 = vld [vmem:[#allocation17 + $0x1320] sm:$0xff]  ;;  %v1224_v32 = vld [vmem:[#allocation17 + $0x830] sm:$0xff] }
 0x1dc   :  { %2040 = vmatpush.msrb.mxu1 %v1112_v33  ;;  %1982 = vmatpush.msrb.mxu2 %v1433_v34  ;;  %v1315_v33 = vld [vmem:[#allocation17 + $0xb08] sm:$0xff]  ;;  %v1476_v34 = vld [vmem:[#allocation17 + $0x1010] sm:$0xff] }
 0x1dd   :  { %2005 = vmatpush.msrb.mxu3 %v1524_v35  ;;  %2018 = vmatpush.msra.mxu0 %v1014_v36  ;;  %v1567_v35 = vld [vmem:[#allocation17 + $0x12e8] sm:$0xff]  ;;  %v1217_v36 = vld [vmem:[#allocation17 + $0x7f8] sm:$0xff] }
 0x1de   :  { %2041 = vmatpush.msrb.mxu1 %v1105_v37  ;;  %2006 = vmatmul.f32.vlgmr.msrb.gmra.mxu3 %v4140_v23  ;;  %v1308_v37 = vld [vmem:[#allocation17 + $0xad0] sm:$0xff] }
 0x1df   :  { %2070 = vmatpush.msra.mxu3 %v1406_v39  ;;  %1983 = vmatpush.msrb.mxu2 %v1426_v41  ;;  %v1469_v39 = vld [vmem:[#allocation17 + $0xfd8] sm:$0xff]  ;;  %v1560_v41 = vld [vmem:[#allocation17 + $0x12b0] sm:$0xff] }
 0x1e0   :  { %2019 = vmatpush.msra.mxu0 %v1007_v42  ;;  %2042 = vmatpush.msrb.mxu1 %v1098_v43  ;;  %v1210_v42 = vld [vmem:[#allocation17 + $0x7c0] sm:$0xff]  ;;  %v1301_v43 = vld [vmem:[#allocation17 + $0xa98] sm:$0xff] }
 0x1e1   :  { %2071 = vmatpush.msra.mxu3 %v1399_v44  ;;  %1984 = vmatpush.msrb.mxu2 %v1419_v45  ;;  %v1462_v44 = vld [vmem:[#allocation17 + $0xfa0] sm:$0xff]  ;;  %v1553_v45 = vld [vmem:[#allocation17 + $0x1278] sm:$0xff] }
 0x1e2   :  { %2020 = vmatpush.msra.mxu0 %v1000_v46  ;;  %2043 = vmatpush.msrb.mxu1 %v1091_v47  ;;  %v1183_v46 = vld [vmem:[#allocation17 + $0x6e8] sm:$0xff] }
 0x1e3   :  { %2072 = vmatpush.msra.mxu3 %v1392_v48  ;;  %1985 = vmatpush.msrb.mxu2 %v1412_v49  ;;  %v1203_v47 = vld [vmem:[#allocation17 + $0x788] sm:$0xff]  ;;  %v1546_v49 = vld [vmem:[#allocation17 + $0x1240] sm:$0xff] }
 0x1e4   :  { %2021 = vmatpush.msra.mxu0 %v993_v50  ;;  %2044 = vmatpush.msrb.mxu1 %v1084_v51  ;;  %v1455_v48 = vld [vmem:[#allocation17 + $0xf68] sm:$0xff]  ;;  %v1176_v50 = vld [vmem:[#allocation17 + $0x6b0] sm:$0xff] }
 0x1e5   :  { %1986 = vmatmul.f32.vlgmr.msrb.gmra.mxu2 %v4143_v38  ;;  %2073 = vmatpush.msra.mxu3 %v1385_v52  ;;  %v1196_v51 = vld [vmem:[#allocation17 + $0x750] sm:$0xff] }
 0x1e6   :  { %2050 = vmatpush.msra.mxu2 %v1294_v53  ;;  %2022 = vmatpush.msra.mxu0 %v986_v54  ;;  %v1448_v52 = vld [vmem:[#allocation17 + $0xf30] sm:$0xff]  ;;  %v1539_v53 = vld [vmem:[#allocation17 + $0x1208] sm:$0xff]  ;;  %v1169_v54 = vld [vmem:[#allocation17 + $0x678] sm:$0xff] }
 0x1e7   :  { %2045 = vmatpush.msrb.mxu1 %v1077_v56  ;;  %2074 = vmatpush.msra.mxu3 %v1378_v57  ;;  %v1189_v56 = vld [vmem:[#allocation17 + $0x718] sm:$0xff] }
 0x1e8   :  { %2046 = vmatmul.f32.vlgmr.msrb.gmra.mxu1 %v4122_v8  ;;  %2051 = vmatpush.msra.mxu2 %v1287_v58  ;;  %v1441_v57 = vld [vmem:[#allocation17 + $0xef8] sm:$0xff]  ;;  %v1532_v58 = vld [vmem:[#allocation17 + $0x11d0] sm:$0xff] }
 0x1e9   :  { %2110 = vmatpush.msra.mxu1 %v1630_v59  ;;  %2023 = vmatpush.msra.mxu0 %v979_v60  ;;  %v1162_v59 = vld [vmem:[#allocation17 + $0x640] sm:$0xff]  ;;  %v1071_v60 = vld [vmem:[#allocation17 + $0x368] sm:$0xff] }
 0x1ea   :  { %2052 = vmatpush.msra.mxu2 %v1280_v61  ;;  %2075 = vmatpush.msra.mxu3 %v1371_v62  ;;  %v1434_v61 = vld [vmem:[#allocation17 + $0xec0] sm:$0xff]  ;;  %v1525_v62 = vld [vmem:[#allocation17 + $0x1198] sm:$0xff] }
 0x1eb   :  { %2111 = vmatpush.msra.mxu1 %v1623_v63  ;;  %2024 = vmatpush.msra.mxu0 %v972_v0  ;;  %v1155_v63 = vld [vmem:[#allocation17 + $0x608] sm:$0xff]  ;;  %v1064_v0 = vld [vmem:[#allocation17 + $0x330] sm:$0xff] }
 0x1ec   :  { %2053 = vmatpush.msra.mxu2 %v1273_v9  ;;  %2076 = vmatpush.msra.mxu3 %v1364_v2  ;;  %v1407_v9 = vld [vmem:[#allocation17 + $0xde8] sm:$0xff] }
 0x1ed   :  { %2112 = vmatpush.msra.mxu1 %v1616_v3  ;;  %2025 = vmatpush.msra.mxu0 %v965_v4  ;;  %v1427_v2 = vld [vmem:[#allocation17 + $0xe88] sm:$0xff]  ;;  %v1057_v3 = vld [vmem:[#allocation17 + $0x2f8] sm:$0xff]  ;;  %v1148_v4 = vld [vmem:[#allocation17 + $0x5d0] sm:$0xff] }
 0x1ee   :  { %2026 = vmatmul.f32.vlgmr.msra.gmra.mxu0 %v4126_v19  ;;  %2054 = vmatpush.msra.mxu2 %v1266_v6  ;;  %v1400_v6 = vld [vmem:[#allocation17 + $0xdb0] sm:$0xff] }
 0x1ef   :  { %2077 = vmatpush.msra.mxu3 %v1357_v7  ;;  %2090 = vmatpush.msrb.mxu0 %v1518_v55  ;;  %v1420_v7 = vld [vmem:[#allocation17 + $0xe50] sm:$0xff]  ;;  %v1050_v55 = vld [vmem:[#allocation17 + $0x2c0] sm:$0xff] }
 0x1f0   :  { %2113 = vmatpush.msra.mxu1 %v1609_v12  ;;  %2055 = vmatpush.msra.mxu2 %v1259_v13  ;;  %v1141_v12 = vld [vmem:[#allocation17 + $0x598] sm:$0xff] }
 0x1f1   :  { %2078 = vmatpush.msra.mxu3 %v1350_v14  ;;  %2091 = vmatpush.msrb.mxu0 %v1511_v15  ;;  %v1393_v13 = vld [vmem:[#allocation17 + $0xd78] sm:$0xff]  ;;  %v1043_v15 = vld [vmem:[#allocation17 + $0x288] sm:$0xff] }
 0x1f2   :  { %2114 = vmatpush.msra.mxu1 %v1602_v16  ;;  %2056 = vmatpush.msra.mxu2 %v1252_v17  ;;  %v1413_v14 = vld [vmem:[#allocation17 + $0xe18] sm:$0xff]  ;;  %v1134_v16 = vld [vmem:[#allocation17 + $0x560] sm:$0xff]  ;;  %v1295_v17 = vld [vmem:[#allocation17 + $0xa68] sm:$0xff] }
 0x1f3   :  { %2079 = vmatpush.msra.mxu3 %v1343_v10  ;;  %2092 = vmatpush.msrb.mxu0 %v1504_v18  ;;  %v1386_v10 = vld [vmem:[#allocation17 + $0xd40] sm:$0xff]  ;;  %v1036_v18 = vld [vmem:[#allocation17 + $0x250] sm:$0xff] }
 0x1f4   :  { %2115 = vmatpush.msra.mxu1 %v1595_v20  ;;  %2057 = vmatpush.msra.mxu2 %v1245_v21  ;;  %v1127_v20 = vld [vmem:[#allocation17 + $0x528] sm:$0xff]  ;;  %v1288_v21 = vld [vmem:[#allocation17 + $0xa30] sm:$0xff] }
 0x1f5   :  { %2080 = vmatpush.msra.mxu3 %v1336_v11  ;;  %2093 = vmatpush.msrb.mxu0 %v1497_v22  ;;  %v1379_v11 = vld [vmem:[#allocation17 + $0xd08] sm:$0xff]  ;;  %v1029_v22 = vld [vmem:[#allocation17 + $0x218] sm:$0xff] }
 0x1f6   :  { %2116 = vmatpush.msra.mxu1 %v1588_v5  ;;  %2058 = vmatpush.msra.mxu2 %v1238_v24  ;;  %v1120_v5 = vld [vmem:[#allocation17 + $0x4f0] sm:$0xff]  ;;  %v1281_v24 = vld [vmem:[#allocation17 + $0x9f8] sm:$0xff] }
 0x1f7   :  { %2081 = vmatpush.msra.mxu3 %v1329_v25  ;;  %2094 = vmatpush.msrb.mxu0 %v1490_v26  ;;  %v1372_v25 = vld [vmem:[#allocation17 + $0xcd0] sm:$0xff]  ;;  %v1022_v26 = vld [vmem:[#allocation17 + $0x1e0] sm:$0xff] }
 0x1f8   :  { %2117 = vmatpush.msra.mxu1 %v1581_v27  ;;  %2059 = vmatpush.msra.mxu2 %v1231_v1  ;;  %v1113_v27 = vld [vmem:[#allocation17 + $0x4b8] sm:$0xff]  ;;  %v1274_v1 = vld [vmem:[#allocation17 + $0x9c0] sm:$0xff] }
 0x1f9   :  { %2082 = vmatpush.msra.mxu3 %v1322_v29  ;;  %2095 = vmatpush.msrb.mxu0 %v1483_v30  ;;  %v1365_v29 = vld [vmem:[#allocation17 + $0xc98] sm:$0xff]  ;;  %v1015_v30 = vld [vmem:[#allocation17 + $0x1a8] sm:$0xff] }
 0x1fa   :  { %2118 = vmatpush.msra.mxu1 %v1574_v31  ;;  %2060 = vmatpush.msra.mxu2 %v1224_v32  ;;  %v1106_v31 = vld [vmem:[#allocation17 + $0x480] sm:$0xff]  ;;  %v1267_v32 = vld [vmem:[#allocation17 + $0x988] sm:$0xff] }
 0x1fb   :  { %2083 = vmatpush.msra.mxu3 %v1315_v33  ;;  %2096 = vmatpush.msrb.mxu0 %v1476_v34  ;;  %v1358_v33 = vld [vmem:[#allocation17 + $0xc60] sm:$0xff]  ;;  %v1008_v34 = vld [vmem:[#allocation17 + $0x170] sm:$0xff] }
 0x1fc   :  { %2119 = vmatpush.msra.mxu1 %v1567_v35  ;;  %2061 = vmatpush.msra.mxu2 %v1217_v36  ;;  %v1099_v35 = vld [vmem:[#allocation17 + $0x448] sm:$0xff]  ;;  %v1260_v36 = vld [vmem:[#allocation17 + $0x950] sm:$0xff] }
 0x1fd   :  { %2084 = vmatpush.msra.mxu3 %v1308_v37  ;;  %2097 = vmatpush.msrb.mxu0 %v1469_v39  ;;  %v1351_v37 = vld [vmem:[#allocation17 + $0xc28] sm:$0xff]  ;;  %v1001_v39 = vld [vmem:[#allocation17 + $0x138] sm:$0xff] }
 0x1fe   :  { %2120 = vmatpush.msra.mxu1 %v1560_v41  ;;  %2062 = vmatpush.msra.mxu2 %v1210_v42  ;;  %v1092_v41 = vld [vmem:[#allocation17 + $0x410] sm:$0xff]  ;;  %v1253_v42 = vld [vmem:[#allocation17 + $0x918] sm:$0xff] }
 0x1ff   :  { %2085 = vmatpush.msra.mxu3 %v1301_v43  ;;  %2098 = vmatpush.msrb.mxu0 %v1462_v44  ;;  %v1344_v43 = vld [vmem:[#allocation17 + $0xbf0] sm:$0xff]  ;;  %v994_v44 = vld [vmem:[#allocation17 + $0x100] sm:$0xff] }
 0x200   :  { %2121 = vmatpush.msra.mxu1 %v1553_v45  ;;  %2086 = vmatmul.f32.vlgmr.msra.gmra.mxu3 %v4130_v28  ;;  %v1085_v45 = vld [vmem:[#allocation17 + $0x3d8] sm:$0xff] }
 0x201   :  { %2150 = vmatpush.msrb.mxu3 %v1183_v46  ;;  %2063 = vmatpush.msra.mxu2 %v1203_v47  ;;  %v1246_v46 = vld [vmem:[#allocation17 + $0x8e0] sm:$0xff]  ;;  %v1337_v47 = vld [vmem:[#allocation17 + $0xbb8] sm:$0xff] }
 0x202   :  { %2099 = vmatpush.msrb.mxu0 %v1455_v48  ;;  %2122 = vmatpush.msra.mxu1 %v1546_v49  ;;  %v987_v48 = vld [vmem:[#allocation17 + $0xc8] sm:$0xff]  ;;  %v1078_v49 = vld [vmem:[#allocation17 + $0x3a0] sm:$0xff] }
 0x203   :  { %2151 = vmatpush.msrb.mxu3 %v1176_v50  ;;  %2064 = vmatpush.msra.mxu2 %v1196_v51  ;;  %v1239_v50 = vld [vmem:[#allocation17 + $0x8a8] sm:$0xff]  ;;  %v1330_v51 = vld [vmem:[#allocation17 + $0xb80] sm:$0xff] }
 0x204   :  { %2100 = vmatpush.msrb.mxu0 %v1448_v52  ;;  %2123 = vmatpush.msra.mxu1 %v1539_v53  ;;  %v1631_v52 = vld [vmem:[#allocation17 + $0x14e8] sm:$0xff]  ;;  %v980_v53 = vld [vmem:[#allocation17 + $0x90] sm:$0xff] }
 0x205   :  { %2152 = vmatpush.msrb.mxu3 %v1169_v54  ;;  %2065 = vmatpush.msra.mxu2 %v1189_v56  ;;  %v1232_v54 = vld [vmem:[#allocation17 + $0x870] sm:$0xff]  ;;  %v1323_v56 = vld [vmem:[#allocation17 + $0xb48] sm:$0xff] }
 0x206   :  { %2101 = vmatpush.msrb.mxu0 %v1441_v57  ;;  %2124 = vmatpush.msra.mxu1 %v1532_v58  ;;  %v1624_v57 = vld [vmem:[#allocation17 + $0x14b0] sm:$0xff]  ;;  %v973_v58 = vld [vmem:[#allocation17 + $0x58] sm:$0xff] }
 0x207   :  { %2066 = vmatmul.f32.vlgmr.msra.gmra.mxu2 %v4133_v40  ;;  %2153 = vmatpush.msrb.mxu3 %v1162_v59  ;;  %v1225_v59 = vld [vmem:[#allocation17 + $0x838] sm:$0xff] }
 0x208   :  { %2130 = vmatpush.msrb.mxu2 %v1071_v60  ;;  %2102 = vmatpush.msrb.mxu0 %v1434_v61  ;;  %v1316_v60 = vld [vmem:[#allocation17 + $0xb10] sm:$0xff]  ;;  %v1617_v61 = vld [vmem:[#allocation17 + $0x1478] sm:$0xff] }
 0x209   :  { %2125 = vmatpush.msra.mxu1 %v1525_v62  ;;  %2154 = vmatpush.msrb.mxu3 %v1155_v63  ;;  %v966_v62 = vld [vmem:[#allocation17 + $0x20] sm:$0xff] }
 0x20a   :  { %2126 = vmatmul.f32.vlgmr.msra.gmra.mxu1 %v4140_v23  ;;  %2131 = vmatpush.msrb.mxu2 %v1064_v0  ;;  %v1218_v63 = vld [vmem:[#allocation17 + $0x800] sm:$0xff]  ;;  %v1309_v0 = vld [vmem:[#allocation17 + $0xad8] sm:$0xff] }
 0x20b   :  { %2190 = vmatpush.msrb.mxu1 %v1407_v9  ;;  %2103 = vmatpush.msrb.mxu0 %v1427_v2  ;;  %v1610_v9 = vld [vmem:[#allocation17 + $0x1440] sm:$0xff]  ;;  %v1519_v2 = vld [vmem:[#allocation17 + $0x1168] sm:$0xff] }
 0x20c   :  { %2132 = vmatpush.msrb.mxu2 %v1057_v3  ;;  %2155 = vmatpush.msrb.mxu3 %v1148_v4  ;;  %v1211_v3 = vld [vmem:[#allocation17 + $0x7c8] sm:$0xff]  ;;  %v1302_v4 = vld [vmem:[#allocation17 + $0xaa0] sm:$0xff] }
 0x20d   :  { %2191 = vmatpush.msrb.mxu1 %v1400_v6  ;;  %2104 = vmatpush.msrb.mxu0 %v1420_v7  ;;  %v1603_v6 = vld [vmem:[#allocation17 + $0x1408] sm:$0xff]  ;;  %v1512_v7 = vld [vmem:[#allocation17 + $0x1130] sm:$0xff] }
 0x20e   :  { %2133 = vmatpush.msrb.mxu2 %v1050_v55  ;;  %2156 = vmatpush.msrb.mxu3 %v1141_v12  ;;  %v1184_v55 = vld [vmem:[#allocation17 + $0x6f0] sm:$0xff] }
 0x20f   :  { %2192 = vmatpush.msrb.mxu1 %v1393_v13  ;;  %2105 = vmatpush.msrb.mxu0 %v1413_v14  ;;  %v1204_v12 = vld [vmem:[#allocation17 + $0x790] sm:$0xff]  ;;  %v1505_v13 = vld [vmem:[#allocation17 + $0x10f8] sm:$0xff] }
 0x210   :  { %2106 = vmatmul.f32.vlgmr.msrb.gmra.mxu0 %v4143_v38  ;;  %2134 = vmatpush.msrb.mxu2 %v1043_v15  ;;  %v1596_v14 = vld [vmem:[#allocation17 + $0x13d0] sm:$0xff]  ;;  %v1177_v15 = vld [vmem:[#allocation17 + $0x6b8] sm:$0xff] }
 0x211   :  { %2157 = vmatpush.msrb.mxu3 %v1134_v16  ;;  %2170 = vmatpush.msra.mxu0 %v1295_v17  ;;  %v1197_v16 = vld [vmem:[#allocation17 + $0x758] sm:$0xff]  ;;  %v1498_v17 = vld [vmem:[#allocation17 + $0x10c0] sm:$0xff] }
 0x212   :  { %2193 = vmatpush.msrb.mxu1 %v1386_v10  ;;  %2135 = vmatpush.msrb.mxu2 %v1036_v18  ;;  %v1589_v10 = vld [vmem:[#allocation17 + $0x1398] sm:$0xff]  ;;  %v1170_v18 = vld [vmem:[#allocation17 + $0x680] sm:$0xff] }
 0x213   :  { %2158 = vmatpush.msrb.mxu3 %v1127_v20  ;;  %2171 = vmatpush.msra.mxu0 %v1288_v21  ;;  %v1190_v20 = vld [vmem:[#allocation17 + $0x720] sm:$0xff]  ;;  %v1491_v21 = vld [vmem:[#allocation17 + $0x1088] sm:$0xff] }
 0x214   :  { %2194 = vmatpush.msrb.mxu1 %v1379_v11  ;;  %2136 = vmatpush.msrb.mxu2 %v1029_v22  ;;  %v1582_v11 = vld [vmem:[#allocation17 + $0x1360] sm:$0xff]  ;;  %v1072_v22 = vld [vmem:[#allocation17 + $0x370] sm:$0xff] }
 0x215   :  { %2159 = vmatpush.msrb.mxu3 %v1120_v5  ;;  %2172 = vmatpush.msra.mxu0 %v1281_v24  ;;  %v1163_v5 = vld [vmem:[#allocation17 + $0x648] sm:$0xff]  ;;  %v1484_v24 = vld [vmem:[#allocation17 + $0x1050] sm:$0xff] }
 0x216   :  { %2195 = vmatpush.msrb.mxu1 %v1372_v25  ;;  %2137 = vmatpush.msrb.mxu2 %v1022_v26  ;;  %v1575_v25 = vld [vmem:[#allocation17 + $0x1328] sm:$0xff]  ;;  %v1065_v26 = vld [vmem:[#allocation17 + $0x338] sm:$0xff] }
 0x217   :  { %2160 = vmatpush.msrb.mxu3 %v1113_v27  ;;  %2173 = vmatpush.msra.mxu0 %v1274_v1  ;;  %v1156_v27 = vld [vmem:[#allocation17 + $0x610] sm:$0xff]  ;;  %v1477_v1 = vld [vmem:[#allocation17 + $0x1018] sm:$0xff] }
 0x218   :  { %2196 = vmatpush.msrb.mxu1 %v1365_v29  ;;  %2138 = vmatpush.msrb.mxu2 %v1015_v30  ;;  %v1568_v29 = vld [vmem:[#allocation17 + $0x12f0] sm:$0xff]  ;;  %v1058_v30 = vld [vmem:[#allocation17 + $0x300] sm:$0xff] }
 0x219   :  { %2161 = vmatpush.msrb.mxu3 %v1106_v31  ;;  %2174 = vmatpush.msra.mxu0 %v1267_v32  ;;  %v1149_v31 = vld [vmem:[#allocation17 + $0x5d8] sm:$0xff]  ;;  %v1470_v32 = vld [vmem:[#allocation17 + $0xfe0] sm:$0xff] }
 0x21a   :  { %2197 = vmatpush.msrb.mxu1 %v1358_v33  ;;  %2139 = vmatpush.msrb.mxu2 %v1008_v34  ;;  %v1561_v33 = vld [vmem:[#allocation17 + $0x12b8] sm:$0xff]  ;;  %v1051_v34 = vld [vmem:[#allocation17 + $0x2c8] sm:$0xff] }
 0x21b   :  { %2162 = vmatpush.msrb.mxu3 %v1099_v35  ;;  %2175 = vmatpush.msra.mxu0 %v1260_v36  ;;  %v1142_v35 = vld [vmem:[#allocation17 + $0x5a0] sm:$0xff]  ;;  %v1463_v36 = vld [vmem:[#allocation17 + $0xfa8] sm:$0xff] }
 0x21c   :  { %2198 = vmatpush.msrb.mxu1 %v1351_v37  ;;  %2140 = vmatpush.msrb.mxu2 %v1001_v39  ;;  %v1554_v37 = vld [vmem:[#allocation17 + $0x1280] sm:$0xff]  ;;  %v1044_v39 = vld [vmem:[#allocation17 + $0x290] sm:$0xff] }
 0x21d   :  { %2163 = vmatpush.msrb.mxu3 %v1092_v41  ;;  %2176 = vmatpush.msra.mxu0 %v1253_v42  ;;  %v1135_v41 = vld [vmem:[#allocation17 + $0x568] sm:$0xff]  ;;  %v1456_v42 = vld [vmem:[#allocation17 + $0xf70] sm:$0xff] }
 0x21e   :  { %2199 = vmatpush.msrb.mxu1 %v1344_v43  ;;  %2141 = vmatpush.msrb.mxu2 %v994_v44  ;;  %v1547_v43 = vld [vmem:[#allocation17 + $0x1248] sm:$0xff]  ;;  %v1037_v44 = vld [vmem:[#allocation17 + $0x258] sm:$0xff] }
 0x21f   :  { %2164 = vmatpush.msrb.mxu3 %v1085_v45  ;;  %2177 = vmatpush.msra.mxu0 %v1246_v46  ;;  %v1128_v45 = vld [vmem:[#allocation17 + $0x530] sm:$0xff]  ;;  %v1449_v46 = vld [vmem:[#allocation17 + $0xf38] sm:$0xff] }
 0x220   :  { %2200 = vmatpush.msrb.mxu1 %v1337_v47  ;;  %2142 = vmatpush.msrb.mxu2 %v987_v48  ;;  %v1540_v47 = vld [vmem:[#allocation17 + $0x1210] sm:$0xff]  ;;  %v1030_v48 = vld [vmem:[#allocation17 + $0x220] sm:$0xff] }
 0x221   :  { %2165 = vmatpush.msrb.mxu3 %v1078_v49  ;;  %2178 = vmatpush.msra.mxu0 %v1239_v50  ;;  %v1121_v49 = vld [vmem:[#allocation17 + $0x4f8] sm:$0xff]  ;;  %v1442_v50 = vld [vmem:[#allocation17 + $0xf00] sm:$0xff] }
 0x222   :  { %2201 = vmatpush.msrb.mxu1 %v1330_v51  ;;  %2166 = vmatmul.f32.vlgmr.msrb.gmra.mxu3 %v4122_v8  ;;  %v1533_v51 = vld [vmem:[#allocation17 + $0x11d8] sm:$0xff] }
 0x223   :  { %2230 = vmatpush.msra.mxu3 %v1631_v52  ;;  %2143 = vmatpush.msrb.mxu2 %v980_v53  ;;  %v1023_v52 = vld [vmem:[#allocation17 + $0x1e8] sm:$0xff]  ;;  %v1114_v53 = vld [vmem:[#allocation17 + $0x4c0] sm:$0xff] }
 0x224   :  { %2179 = vmatpush.msra.mxu0 %v1232_v54  ;;  %2202 = vmatpush.msrb.mxu1 %v1323_v56  ;;  %v1435_v54 = vld [vmem:[#allocation17 + $0xec8] sm:$0xff]  ;;  %v1526_v56 = vld [vmem:[#allocation17 + $0x11a0] sm:$0xff] }
 0x225   :  { %2231 = vmatpush.msra.mxu3 %v1624_v57  ;;  %2144 = vmatpush.msrb.mxu2 %v973_v58  ;;  %v1016_v57 = vld [vmem:[#allocation17 + $0x1b0] sm:$0xff]  ;;  %v1107_v58 = vld [vmem:[#allocation17 + $0x488] sm:$0xff] }
 0x226   :  { %2180 = vmatpush.msra.mxu0 %v1225_v59  ;;  %2203 = vmatpush.msrb.mxu1 %v1316_v60  ;;  %v1408_v59 = vld [vmem:[#allocation17 + $0xdf0] sm:$0xff] }
 0x227   :  { %2232 = vmatpush.msra.mxu3 %v1617_v61  ;;  %2145 = vmatpush.msrb.mxu2 %v966_v62  ;;  %v1428_v60 = vld [vmem:[#allocation17 + $0xe90] sm:$0xff]  ;;  %v1009_v61 = vld [vmem:[#allocation17 + $0x178] sm:$0xff] }
 0x228   :  { %2181 = vmatpush.msra.mxu0 %v1218_v63  ;;  %2204 = vmatpush.msrb.mxu1 %v1309_v0  ;;  %v1100_v62 = vld [vmem:[#allocation17 + $0x450] sm:$0xff]  ;;  %v1401_v63 = vld [vmem:[#allocation17 + $0xdb8] sm:$0xff] }
 0x229   :  { %2146 = vmatmul.f32.vlgmr.msrb.gmra.mxu2 %v4126_v19  ;;  %2233 = vmatpush.msra.mxu3 %v1610_v9  ;;  %v1421_v0 = vld [vmem:[#allocation17 + $0xe58] sm:$0xff]  ;;  %v1002_v9 = vld [vmem:[#allocation17 + $0x140] sm:$0xff] }
 0x22a   :  { %2210 = vmatpush.msra.mxu2 %v1519_v2  ;;  %2182 = vmatpush.msra.mxu0 %v1211_v3  ;;  %v1093_v2 = vld [vmem:[#allocation17 + $0x418] sm:$0xff]  ;;  %v1394_v3 = vld [vmem:[#allocation17 + $0xd80] sm:$0xff] }
 0x22b   :  { %2205 = vmatpush.msrb.mxu1 %v1302_v4  ;;  %2234 = vmatpush.msra.mxu3 %v1603_v6  ;;  %v1414_v4 = vld [vmem:[#allocation17 + $0xe20] sm:$0xff]  ;;  %v995_v6 = vld [vmem:[#allocation17 + $0x108] sm:$0xff] }
 0x22c   :  { %2206 = vmatmul.f32.vlgmr.msrb.gmra.mxu1 %v4130_v28  ;;  %2211 = vmatpush.msra.mxu2 %v1512_v7  ;;  %v1086_v7 = vld [vmem:[#allocation17 + $0x3e0] sm:$0xff] }
 0x22d   :  { %2270 = vmatpush.msra.mxu1 %v1184_v55  ;;  %2183 = vmatpush.msra.mxu0 %v1204_v12  ;;  %v1387_v55 = vld [vmem:[#allocation17 + $0xd48] sm:$0xff]  ;;  %v1296_v12 = vld [vmem:[#allocation17 + $0xa70] sm:$0xff] }
 0x22e   :  { %2212 = vmatpush.msra.mxu2 %v1505_v13  ;;  %2235 = vmatpush.msra.mxu3 %v1596_v14  ;;  %v988_v13 = vld [vmem:[#allocation17 + $0xd0] sm:$0xff]  ;;  %v1079_v14 = vld [vmem:[#allocation17 + $0x3a8] sm:$0xff] }
 0x22f   :  { %2271 = vmatpush.msra.mxu1 %v1177_v15  ;;  %2184 = vmatpush.msra.mxu0 %v1197_v16  ;;  %v1380_v15 = vld [vmem:[#allocation17 + $0xd10] sm:$0xff]  ;;  %v1289_v16 = vld [vmem:[#allocation17 + $0xa38] sm:$0xff] }
 0x230   :  { %2213 = vmatpush.msra.mxu2 %v1498_v17  ;;  %2236 = vmatpush.msra.mxu3 %v1589_v10  ;;  %v1632_v17 = vld [vmem:[#allocation17 + $0x14f0] sm:$0xff]  ;;  %v981_v10 = vld [vmem:[#allocation17 + $0x98] sm:$0xff] }
 0x231   :  { %2272 = vmatpush.msra.mxu1 %v1170_v18  ;;  %2185 = vmatpush.msra.mxu0 %v1190_v20  ;;  %v1282_v18 = vld [vmem:[#allocation17 + $0xa00] sm:$0xff]  ;;  %v1373_v20 = vld [vmem:[#allocation17 + $0xcd8] sm:$0xff] }
 0x232   :  { %2186 = vmatmul.f32.vlgmr.msra.gmra.mxu0 %v4133_v40  ;;  %2214 = vmatpush.msra.mxu2 %v1491_v21  ;;  %v1625_v21 = vld [vmem:[#allocation17 + $0x14b8] sm:$0xff] }
 0x233   :  { %2237 = vmatpush.msra.mxu3 %v1582_v11  ;;  %2250 = vmatpush.msrb.mxu0 %v1072_v22  ;;  %v974_v11 = vld [vmem:[#allocation17 + $0x60] sm:$0xff]  ;;  %v1275_v22 = vld [vmem:[#allocation17 + $0x9c8] sm:$0xff] }
 0x234   :  { %2273 = vmatpush.msra.mxu1 %v1163_v5  ;;  %2215 = vmatpush.msra.mxu2 %v1484_v24  ;;  %v1366_v5 = vld [vmem:[#allocation17 + $0xca0] sm:$0xff] }
 0x235   :  { %2238 = vmatpush.msra.mxu3 %v1575_v25  ;;  %2251 = vmatpush.msrb.mxu0 %v1065_v26  ;;  %v1618_v24 = vld [vmem:[#allocation17 + $0x1480] sm:$0xff]  ;;  %v967_v25 = vld [vmem:[#allocation17 + $0x28] sm:$0xff]  ;;  %v1268_v26 = vld [vmem:[#allocation17 + $0x990] sm:$0xff] }
 0x236   :  { %2274 = vmatpush.msra.mxu1 %v1156_v27  ;;  %2216 = vmatpush.msra.mxu2 %v1477_v1  ;;  %v1359_v27 = vld [vmem:[#allocation17 + $0xc68] sm:$0xff]  ;;  %v1520_v1 = vld [vmem:[#allocation17 + $0x1170] sm:$0xff] }
 0x237   :  { %2239 = vmatpush.msra.mxu3 %v1568_v29  ;;  %2252 = vmatpush.msrb.mxu0 %v1058_v30  ;;  %v1611_v29 = vld [vmem:[#allocation17 + $0x1448] sm:$0xff]  ;;  %v1261_v30 = vld [vmem:[#allocation17 + $0x958] sm:$0xff] }
 0x238   :  { %2275 = vmatpush.msra.mxu1 %v1149_v31  ;;  %2217 = vmatpush.msra.mxu2 %v1470_v32  ;;  %v1352_v31 = vld [vmem:[#allocation17 + $0xc30] sm:$0xff]  ;;  %v1513_v32 = vld [vmem:[#allocation17 + $0x1138] sm:$0xff] }
 0x239   :  { %2240 = vmatpush.msra.mxu3 %v1561_v33  ;;  %2253 = vmatpush.msrb.mxu0 %v1051_v34  ;;  %v1604_v33 = vld [vmem:[#allocation17 + $0x1410] sm:$0xff]  ;;  %v1254_v34 = vld [vmem:[#allocation17 + $0x920] sm:$0xff] }
 0x23a   :  { %2276 = vmatpush.msra.mxu1 %v1142_v35  ;;  %2218 = vmatpush.msra.mxu2 %v1463_v36  ;;  %v1345_v35 = vld [vmem:[#allocation17 + $0xbf8] sm:$0xff]  ;;  %v1506_v36 = vld [vmem:[#allocation17 + $0x1100] sm:$0xff] }
 0x23b   :  { %2241 = vmatpush.msra.mxu3 %v1554_v37  ;;  %2254 = vmatpush.msrb.mxu0 %v1044_v39  ;;  %v1597_v37 = vld [vmem:[#allocation17 + $0x13d8] sm:$0xff]  ;;  %v1247_v39 = vld [vmem:[#allocation17 + $0x8e8] sm:$0xff] }
 0x23c   :  { %2277 = vmatpush.msra.mxu1 %v1135_v41  ;;  %2219 = vmatpush.msra.mxu2 %v1456_v42  ;;  %v1338_v41 = vld [vmem:[#allocation17 + $0xbc0] sm:$0xff]  ;;  %v1499_v42 = vld [vmem:[#allocation17 + $0x10c8] sm:$0xff] }
 0x23d   :  { %2242 = vmatpush.msra.mxu3 %v1547_v43  ;;  %2255 = vmatpush.msrb.mxu0 %v1037_v44  ;;  %v1590_v43 = vld [vmem:[#allocation17 + $0x13a0] sm:$0xff]  ;;  %v1240_v44 = vld [vmem:[#allocation17 + $0x8b0] sm:$0xff] }
 0x23e   :  { %2278 = vmatpush.msra.mxu1 %v1128_v45  ;;  %2220 = vmatpush.msra.mxu2 %v1449_v46  ;;  %v1331_v45 = vld [vmem:[#allocation17 + $0xb88] sm:$0xff]  ;;  %v1492_v46 = vld [vmem:[#allocation17 + $0x1090] sm:$0xff] }
 0x23f   :  { %2243 = vmatpush.msra.mxu3 %v1540_v47  ;;  %2256 = vmatpush.msrb.mxu0 %v1030_v48  ;;  %v1583_v47 = vld [vmem:[#allocation17 + $0x1368] sm:$0xff]  ;;  %v1233_v48 = vld [vmem:[#allocation17 + $0x878] sm:$0xff] }
 0x240   :  { %2279 = vmatpush.msra.mxu1 %v1121_v49  ;;  %2221 = vmatpush.msra.mxu2 %v1442_v50  ;;  %v1324_v49 = vld [vmem:[#allocation17 + $0xb50] sm:$0xff]  ;;  %v1485_v50 = vld [vmem:[#allocation17 + $0x1058] sm:$0xff] }
 0x241   :  { %2244 = vmatpush.msra.mxu3 %v1533_v51  ;;  %2257 = vmatpush.msrb.mxu0 %v1023_v52  ;;  %v1576_v51 = vld [vmem:[#allocation17 + $0x1330] sm:$0xff]  ;;  %v1226_v52 = vld [vmem:[#allocation17 + $0x840] sm:$0xff] }
 0x242   :  { %2280 = vmatpush.msra.mxu1 %v1114_v53  ;;  %2222 = vmatpush.msra.mxu2 %v1435_v54  ;;  %v1317_v53 = vld [vmem:[#allocation17 + $0xb18] sm:$0xff]  ;;  %v1478_v54 = vld [vmem:[#allocation17 + $0x1020] sm:$0xff] }
 0x243   :  { %2245 = vmatpush.msra.mxu3 %v1526_v56  ;;  %2258 = vmatpush.msrb.mxu0 %v1016_v57  ;;  %v1569_v56 = vld [vmem:[#allocation17 + $0x12f8] sm:$0xff]  ;;  %v1219_v57 = vld [vmem:[#allocation17 + $0x808] sm:$0xff] }
 0x244   :  { %2281 = vmatpush.msra.mxu1 %v1107_v58  ;;  %2246 = vmatmul.f32.vlgmr.msra.gmra.mxu3 %v4140_v23  ;;  %v1310_v58 = vld [vmem:[#allocation17 + $0xae0] sm:$0xff] }
 0x245   :  { %2310 = vmatpush.msrb.mxu3 %v1408_v59  ;;  %2223 = vmatpush.msra.mxu2 %v1428_v60  ;;  %v1471_v59 = vld [vmem:[#allocation17 + $0xfe8] sm:$0xff]  ;;  %v1562_v60 = vld [vmem:[#allocation17 + $0x12c0] sm:$0xff] }
 0x246   :  { %2259 = vmatpush.msrb.mxu0 %v1009_v61  ;;  %2282 = vmatpush.msra.mxu1 %v1100_v62  ;;  %v1212_v61 = vld [vmem:[#allocation17 + $0x7d0] sm:$0xff]  ;;  %v1303_v62 = vld [vmem:[#allocation17 + $0xaa8] sm:$0xff] }
 0x247   :  { %2311 = vmatpush.msrb.mxu3 %v1401_v63  ;;  %2224 = vmatpush.msra.mxu2 %v1421_v0  ;;  %v1464_v63 = vld [vmem:[#allocation17 + $0xfb0] sm:$0xff]  ;;  %v1555_v0 = vld [vmem:[#allocation17 + $0x1288] sm:$0xff] }
 0x248   :  { %2260 = vmatpush.msrb.mxu0 %v1002_v9  ;;  %2283 = vmatpush.msra.mxu1 %v1093_v2  ;;  %v1185_v9 = vld [vmem:[#allocation17 + $0x6f8] sm:$0xff] }
 0x249   :  { %2312 = vmatpush.msrb.mxu3 %v1394_v3  ;;  %2225 = vmatpush.msra.mxu2 %v1414_v4  ;;  %v1205_v2 = vld [vmem:[#allocation17 + $0x798] sm:$0xff]  ;;  %v1548_v4 = vld [vmem:[#allocation17 + $0x1250] sm:$0xff] }
 0x24a   :  { %2261 = vmatpush.msrb.mxu0 %v995_v6  ;;  %2284 = vmatpush.msra.mxu1 %v1086_v7  ;;  %v1457_v3 = vld [vmem:[#allocation17 + $0xf78] sm:$0xff]  ;;  %v1178_v6 = vld [vmem:[#allocation17 + $0x6c0] sm:$0xff] }
 0x24b   :  { %2226 = vmatmul.f32.vlgmr.msra.gmra.mxu2 %v4143_v38  ;;  %2313 = vmatpush.msrb.mxu3 %v1387_v55  ;;  %v1198_v7 = vld [vmem:[#allocation17 + $0x760] sm:$0xff] }
 0x24c   :  { %2290 = vmatpush.msrb.mxu2 %v1296_v12  ;;  %2262 = vmatpush.msrb.mxu0 %v988_v13  ;;  %v1450_v55 = vld [vmem:[#allocation17 + $0xf40] sm:$0xff]  ;;  %v1541_v12 = vld [vmem:[#allocation17 + $0x1218] sm:$0xff]  ;;  %v1171_v13 = vld [vmem:[#allocation17 + $0x688] sm:$0xff] }
 0x24d   :  { %2285 = vmatpush.msra.mxu1 %v1079_v14  ;;  %2314 = vmatpush.msrb.mxu3 %v1380_v15  ;;  %v1191_v14 = vld [vmem:[#allocation17 + $0x728] sm:$0xff] }
 0x24e   :  { %2286 = vmatmul.f32.vlgmr.msra.gmra.mxu1 %v4122_v8  ;;  %2291 = vmatpush.msrb.mxu2 %v1289_v16  ;;  %v1443_v15 = vld [vmem:[#allocation17 + $0xf08] sm:$0xff]  ;;  %v1534_v16 = vld [vmem:[#allocation17 + $0x11e0] sm:$0xff] }
 0x24f   :  { %2350 = vmatpush.msrb.mxu1 %v1632_v17  ;;  %2263 = vmatpush.msrb.mxu0 %v981_v10  ;;  %v1164_v17 = vld [vmem:[#allocation17 + $0x650] sm:$0xff]  ;;  %v1073_v10 = vld [vmem:[#allocation17 + $0x378] sm:$0xff] }
 0x250   :  { %2292 = vmatpush.msrb.mxu2 %v1282_v18  ;;  %2315 = vmatpush.msrb.mxu3 %v1373_v20  ;;  %v1436_v18 = vld [vmem:[#allocation17 + $0xed0] sm:$0xff]  ;;  %v1527_v20 = vld [vmem:[#allocation17 + $0x11a8] sm:$0xff] }
 0x251   :  { %2351 = vmatpush.msrb.mxu1 %v1625_v21  ;;  %2264 = vmatpush.msrb.mxu0 %v974_v11  ;;  %v1157_v21 = vld [vmem:[#allocation17 + $0x618] sm:$0xff]  ;;  %v1066_v11 = vld [vmem:[#allocation17 + $0x340] sm:$0xff] }
 0x252   :  { %2293 = vmatpush.msrb.mxu2 %v1275_v22  ;;  %2316 = vmatpush.msrb.mxu3 %v1366_v5  ;;  %v1409_v22 = vld [vmem:[#allocation17 + $0xdf8] sm:$0xff] }
 0x253   :  { %2352 = vmatpush.msrb.mxu1 %v1618_v24  ;;  %2265 = vmatpush.msrb.mxu0 %v967_v25  ;;  %v1429_v5 = vld [vmem:[#allocation17 + $0xe98] sm:$0xff]  ;;  %v1059_v24 = vld [vmem:[#allocation17 + $0x308] sm:$0xff]  ;;  %v1150_v25 = vld [vmem:[#allocation17 + $0x5e0] sm:$0xff] }
 0x254   :  { %2266 = vmatmul.f32.vlgmr.msrb.gmra.mxu0 %v4126_v19  ;;  %2294 = vmatpush.msrb.mxu2 %v1268_v26  ;;  %v1402_v26 = vld [vmem:[#allocation17 + $0xdc0] sm:$0xff] }
 0x255   :  { %2317 = vmatpush.msrb.mxu3 %v1359_v27  ;;  %2330 = vmatpush.msra.mxu0 %v1520_v1  ;;  %v1422_v27 = vld [vmem:[#allocation17 + $0xe60] sm:$0xff]  ;;  %v1052_v1 = vld [vmem:[#allocation17 + $0x2d0] sm:$0xff] }
 0x256   :  { %2353 = vmatpush.msrb.mxu1 %v1611_v29  ;;  %2295 = vmatpush.msrb.mxu2 %v1261_v30  ;;  %v1143_v29 = vld [vmem:[#allocation17 + $0x5a8] sm:$0xff] }
 0x257   :  { %2318 = vmatpush.msrb.mxu3 %v1352_v31  ;;  %2331 = vmatpush.msra.mxu0 %v1513_v32  ;;  %v1395_v30 = vld [vmem:[#allocation17 + $0xd88] sm:$0xff]  ;;  %v1045_v32 = vld [vmem:[#allocation17 + $0x298] sm:$0xff] }
 0x258   :  { %2354 = vmatpush.msrb.mxu1 %v1604_v33  ;;  %2296 = vmatpush.msrb.mxu2 %v1254_v34  ;;  %v1415_v31 = vld [vmem:[#allocation17 + $0xe28] sm:$0xff]  ;;  %v1136_v33 = vld [vmem:[#allocation17 + $0x570] sm:$0xff]  ;;  %v1297_v34 = vld [vmem:[#allocation17 + $0xa78] sm:$0xff] }
 0x259   :  { %2319 = vmatpush.msrb.mxu3 %v1345_v35  ;;  %2332 = vmatpush.msra.mxu0 %v1506_v36  ;;  %v1388_v35 = vld [vmem:[#allocation17 + $0xd50] sm:$0xff]  ;;  %v1038_v36 = vld [vmem:[#allocation17 + $0x260] sm:$0xff] }
 0x25a   :  { %2355 = vmatpush.msrb.mxu1 %v1597_v37  ;;  %2297 = vmatpush.msrb.mxu2 %v1247_v39  ;;  %v1129_v37 = vld [vmem:[#allocation17 + $0x538] sm:$0xff]  ;;  %v1290_v39 = vld [vmem:[#allocation17 + $0xa40] sm:$0xff] }
 0x25b   :  { %2320 = vmatpush.msrb.mxu3 %v1338_v41  ;;  %2333 = vmatpush.msra.mxu0 %v1499_v42  ;;  %v1381_v41 = vld [vmem:[#allocation17 + $0xd18] sm:$0xff]  ;;  %v1031_v42 = vld [vmem:[#allocation17 + $0x228] sm:$0xff] }
 0x25c   :  { %2356 = vmatpush.msrb.mxu1 %v1590_v43  ;;  %2298 = vmatpush.msrb.mxu2 %v1240_v44  ;;  %v1122_v43 = vld [vmem:[#allocation17 + $0x500] sm:$0xff]  ;;  %v1283_v44 = vld [vmem:[#allocation17 + $0xa08] sm:$0xff] }
 0x25d   :  { %2321 = vmatpush.msrb.mxu3 %v1331_v45  ;;  %2334 = vmatpush.msra.mxu0 %v1492_v46  ;;  %v1374_v45 = vld [vmem:[#allocation17 + $0xce0] sm:$0xff]  ;;  %v1024_v46 = vld [vmem:[#allocation17 + $0x1f0] sm:$0xff] }
 0x25e   :  { %2357 = vmatpush.msrb.mxu1 %v1583_v47  ;;  %2299 = vmatpush.msrb.mxu2 %v1233_v48  ;;  %v1115_v47 = vld [vmem:[#allocation17 + $0x4c8] sm:$0xff]  ;;  %v1276_v48 = vld [vmem:[#allocation17 + $0x9d0] sm:$0xff] }
 0x25f   :  { %2322 = vmatpush.msrb.mxu3 %v1324_v49  ;;  %2335 = vmatpush.msra.mxu0 %v1485_v50  ;;  %v1367_v49 = vld [vmem:[#allocation17 + $0xca8] sm:$0xff]  ;;  %v1017_v50 = vld [vmem:[#allocation17 + $0x1b8] sm:$0xff] }
 0x260   :  { %2358 = vmatpush.msrb.mxu1 %v1576_v51  ;;  %2300 = vmatpush.msrb.mxu2 %v1226_v52  ;;  %v1108_v51 = vld [vmem:[#allocation17 + $0x490] sm:$0xff]  ;;  %v1269_v52 = vld [vmem:[#allocation17 + $0x998] sm:$0xff] }
 0x261   :  { %2323 = vmatpush.msrb.mxu3 %v1317_v53  ;;  %2336 = vmatpush.msra.mxu0 %v1478_v54  ;;  %v1360_v53 = vld [vmem:[#allocation17 + $0xc70] sm:$0xff]  ;;  %v1010_v54 = vld [vmem:[#allocation17 + $0x180] sm:$0xff] }
 0x262   :  { %2359 = vmatpush.msrb.mxu1 %v1569_v56  ;;  %2301 = vmatpush.msrb.mxu2 %v1219_v57  ;;  %v1101_v56 = vld [vmem:[#allocation17 + $0x458] sm:$0xff]  ;;  %v1262_v57 = vld [vmem:[#allocation17 + $0x960] sm:$0xff] }
 0x263   :  { %2324 = vmatpush.msrb.mxu3 %v1310_v58  ;;  %2337 = vmatpush.msra.mxu0 %v1471_v59  ;;  %v1353_v58 = vld [vmem:[#allocation17 + $0xc38] sm:$0xff]  ;;  %v1003_v59 = vld [vmem:[#allocation17 + $0x148] sm:$0xff] }
 0x264   :  { %2360 = vmatpush.msrb.mxu1 %v1562_v60  ;;  %2302 = vmatpush.msrb.mxu2 %v1212_v61  ;;  %v1094_v60 = vld [vmem:[#allocation17 + $0x420] sm:$0xff]  ;;  %v1255_v61 = vld [vmem:[#allocation17 + $0x928] sm:$0xff] }
 0x265   :  { %2325 = vmatpush.msrb.mxu3 %v1303_v62  ;;  %2338 = vmatpush.msra.mxu0 %v1464_v63  ;;  %v1346_v62 = vld [vmem:[#allocation17 + $0xc00] sm:$0xff]  ;;  %v996_v63 = vld [vmem:[#allocation17 + $0x110] sm:$0xff] }
 0x266   :  { %2361 = vmatpush.msrb.mxu1 %v1555_v0  ;;  %2326 = vmatmul.f32.vlgmr.msrb.gmra.mxu3 %v4130_v28  ;;  %v1087_v0 = vld [vmem:[#allocation17 + $0x3e8] sm:$0xff] }
 0x267   :  { %2390 = vmatpush.msra.mxu3 %v1185_v9  ;;  %2303 = vmatpush.msrb.mxu2 %v1205_v2  ;;  %v1248_v9 = vld [vmem:[#allocation17 + $0x8f0] sm:$0xff]  ;;  %v1339_v2 = vld [vmem:[#allocation17 + $0xbc8] sm:$0xff] }
 0x268   :  { %2339 = vmatpush.msra.mxu0 %v1457_v3  ;;  %2362 = vmatpush.msrb.mxu1 %v1548_v4  ;;  %v989_v3 = vld [vmem:[#allocation17 + $0xd8] sm:$0xff]  ;;  %v1080_v4 = vld [vmem:[#allocation17 + $0x3b0] sm:$0xff] }
 0x269   :  { %2391 = vmatpush.msra.mxu3 %v1178_v6  ;;  %2304 = vmatpush.msrb.mxu2 %v1198_v7  ;;  %v1241_v6 = vld [vmem:[#allocation17 + $0x8b8] sm:$0xff]  ;;  %v1332_v7 = vld [vmem:[#allocation17 + $0xb90] sm:$0xff] }
 0x26a   :  { %2340 = vmatpush.msra.mxu0 %v1450_v55  ;;  %2363 = vmatpush.msrb.mxu1 %v1541_v12  ;;  %v1633_v55 = vld [vmem:[#allocation17 + $0x14f8] sm:$0xff]  ;;  %v982_v12 = vld [vmem:[#allocation17 + $0xa0] sm:$0xff] }
 0x26b   :  { %2392 = vmatpush.msra.mxu3 %v1171_v13  ;;  %2305 = vmatpush.msrb.mxu2 %v1191_v14  ;;  %v1234_v13 = vld [vmem:[#allocation17 + $0x880] sm:$0xff]  ;;  %v1325_v14 = vld [vmem:[#allocation17 + $0xb58] sm:$0xff] }
 0x26c   :  { %2341 = vmatpush.msra.mxu0 %v1443_v15  ;;  %2364 = vmatpush.msrb.mxu1 %v1534_v16  ;;  %v1626_v15 = vld [vmem:[#allocation17 + $0x14c0] sm:$0xff]  ;;  %v975_v16 = vld [vmem:[#allocation17 + $0x68] sm:$0xff] }
 0x26d   :  { %2306 = vmatmul.f32.vlgmr.msrb.gmra.mxu2 %v4133_v40  ;;  %2393 = vmatpush.msra.mxu3 %v1164_v17  ;;  %v1227_v17 = vld [vmem:[#allocation17 + $0x848] sm:$0xff] }
 0x26e   :  { %2370 = vmatpush.msra.mxu2 %v1073_v10  ;;  %2342 = vmatpush.msra.mxu0 %v1436_v18  ;;  %v1318_v10 = vld [vmem:[#allocation17 + $0xb20] sm:$0xff]  ;;  %v1619_v18 = vld [vmem:[#allocation17 + $0x1488] sm:$0xff] }
 0x26f   :  { %2365 = vmatpush.msrb.mxu1 %v1527_v20  ;;  %2394 = vmatpush.msra.mxu3 %v1157_v21  ;;  %v968_v20 = vld [vmem:[#allocation17 + $0x30] sm:$0xff]  ;;  %v4175_v21 = vpop.f32.mrf.mxu2 }
 0x270   :  { %2366 = vmatmul.f32.vlgmr.msrb.gmra.mxu1 %v4140_v23  ;;  %2371 = vmatpush.msra.mxu2 %v1066_v11  ;;  %v1220_v11 = vld [vmem:[#allocation17 + $0x810] sm:$0xff] }
 0x271   :  { %2430 = vmatpush.msra.mxu1 %v1409_v22  ;;  %2343 = vmatpush.msra.mxu0 %v1429_v5  ;;  %v1311_v22 = vld [vmem:[#allocation17 + $0xae8] sm:$0xff]  ;;  %v1612_v5 = vld [vmem:[#allocation17 + $0x1450] sm:$0xff] }
 0x272   :  { %2372 = vmatpush.msra.mxu2 %v1059_v24  ;;  %2395 = vmatpush.msra.mxu3 %v1150_v25  ;;  %v1521_v24 = vld [vmem:[#allocation17 + $0x1178] sm:$0xff] }
 0x273   :  { %2431 = vmatpush.msra.mxu1 %v1402_v26  ;;  %2344 = vmatpush.msra.mxu0 %v1422_v27  ;;  %v1213_v25 = vld [vmem:[#allocation17 + $0x7d8] sm:$0xff]  ;;  %v1304_v26 = vld [vmem:[#allocation17 + $0xab0] sm:$0xff] }
 0x274   :  { %2373 = vmatpush.msra.mxu2 %v1052_v1  ;;  %2396 = vmatpush.msra.mxu3 %v1143_v29  ;;  %v1605_v27 = vld [vmem:[#allocation17 + $0x1418] sm:$0xff]  ;;  %v1514_v1 = vld [vmem:[#allocation17 + $0x1140] sm:$0xff]  ;;  %v2590_v29 = vld [vmem:[#allocation20 + $0x2e8] sm:$0xff] }
 0x275   :  { %2432 = vmatpush.msra.mxu1 %v1395_v30  ;;  %2345 = vmatpush.msra.mxu0 %v1415_v31  ;;  %v1206_v30 = vld [vmem:[#allocation17 + $0x7a0] sm:$0xff]  ;;  %v4180_v31 = vpop.f32.mrf.mxu3 }
 0x276   :  { %2346 = vmatmul.f32.vlgmr.msra.gmra.mxu0 %v4143_v38  ;;  %2374 = vmatpush.msra.mxu2 %v1045_v32  ;;  %v1507_v32 = vld [vmem:[#allocation17 + $0x1108] sm:$0xff] }
 0x277   :  { %2397 = vmatpush.msra.mxu3 %v1136_v33  ;;  %2410 = vmatpush.msrb.mxu0 %v1297_v34  ;;  %v1598_v33 = vld [vmem:[#allocation17 + $0x13e0] sm:$0xff]  ;;  %v2587_v34 = vld [vmem:[#allocation20 + $0x2d0] sm:$0xff] }
 0x278   :  { %2433 = vmatpush.msra.mxu1 %v1388_v35  ;;  %2375 = vmatpush.msra.mxu2 %v1038_v36  ;;  %v1199_v35 = vld [vmem:[#allocation17 + $0x768] sm:$0xff]  ;;  %v4183_v36 = vpop.f32.mrf.mxu1 }
 0x279   :  { %2398 = vmatpush.msra.mxu3 %v1129_v37  ;;  %2411 = vmatpush.msrb.mxu0 %v1290_v39  ;;  %v1500_v37 = vld [vmem:[#allocation17 + $0x10d0] sm:$0xff]  ;;  %v1591_v39 = vld [vmem:[#allocation17 + $0x13a8] sm:$0xff] }
 0x27a   :  { %2434 = vmatpush.msra.mxu1 %v1381_v41  ;;  %2376 = vmatpush.msra.mxu2 %v1031_v42  ;;  %v2584_v41 = vld [vmem:[#allocation20 + $0x2b8] sm:$0xff]  ;;  %v1192_v42 = vld [vmem:[#allocation17 + $0x730] sm:$0xff] }
 0x27b   :  { %2399 = vmatpush.msra.mxu3 %v1122_v43  ;;  %2412 = vmatpush.msrb.mxu0 %v1283_v44  ;;  %v1493_v43 = vld [vmem:[#allocation17 + $0x1098] sm:$0xff]  ;;  %v2542_v44 = vld [vmem:[#allocation20 + $0x168] sm:$0xff] }
 0x27c   :  { %2435 = vmatpush.msra.mxu1 %v1374_v45  ;;  %2377 = vmatpush.msra.mxu2 %v1024_v46  ;;  %v4187_v45 = vld [vmem:[#allocation19] sm:$0xff] }
 0x27d   :  { %2400 = vmatpush.msra.mxu3 %v1115_v47  ;;  %2413 = vmatpush.msrb.mxu0 %v1276_v48  ;;  %v2581_v47 = vld [vmem:[#allocation20 + $0x2a0] sm:$0xff]  ;;  %v1486_v48 = vld [vmem:[#allocation17 + $0x1060] sm:$0xff] }
 0x27e   :  { %2436 = vmatpush.msra.mxu1 %v1367_v49  ;;  %2378 = vmatpush.msra.mxu2 %v1017_v50  ;;  %v1637_v49 = vperm.slane %v4187_v45, 1  ;;  %v1577_v50 = vld [vmem:[#allocation17 + $0x1338] sm:$0xff] }
 0x27f   :  { %2401 = vmatpush.msra.mxu3 %v1108_v51  ;;  %2414 = vmatpush.msrb.mxu0 %v1269_v52  ;;  %v2539_v51 = vld [vmem:[#allocation20 + $0x150] sm:$0xff]  ;;  %v4191_v52 = vpop.f32.mrf.mxu3 }
 0x280   :  { %2437 = vmatpush.msra.mxu1 %v1360_v53  ;;  %2379 = vmatpush.msra.mxu2 %v1010_v54  ;;  %v2578_v53 = vld [vmem:[#allocation20 + $0x288] sm:$0xff]  ;;  %v1479_v54 = vld [vmem:[#allocation17 + $0x1028] sm:$0xff] }
 0x281   :  { %2402 = vmatpush.msra.mxu3 %v1101_v56  ;;  %2415 = vmatpush.msrb.mxu0 %v1262_v57  ;;  %v1570_v56 = vld [vmem:[#allocation17 + $0x1300] sm:$0xff] }
 0x282   :  { %2438 = vmatpush.msra.mxu1 %v1353_v58  ;;  %2380 = vmatpush.msra.mxu2 %v1003_v59  ;;  %v2536_v57 = vld [vmem:[#allocation20 + $0x138] sm:$0xff]  ;;  %v2575_v58 = vld [vmem:[#allocation20 + $0x270] sm:$0xff]  ;;  %v1472_v59 = vld [vmem:[#allocation17 + $0xff0] sm:$0xff] }
 0x283   :  { %2403 = vmatpush.msra.mxu3 %v1094_v60  ;;  %2416 = vmatpush.msrb.mxu0 %v1255_v61  ;;  %v2533_v61 = vld [vmem:[#allocation20 + $0x120] sm:$0xff] }
 0x284   :  { %2439 = vmatpush.msra.mxu1 %v1346_v62  ;;  %2381 = vmatpush.msra.mxu2 %v996_v63  ;;  %v1807_v62 = vpop.f32.mrf.mxu1 }
 0x285   :  { %2404 = vmatpush.msra.mxu3 %v1087_v0  ;;  %2417 = vmatpush.msrb.mxu0 %v1248_v9  ;;  %v2572_v0 = vld [vmem:[#allocation20 + $0x258] sm:$0xff]  ;;  %v1465_v9 = vld [vmem:[#allocation17 + $0xfb8] sm:$0xff] }
 0x286   :  { %2440 = vmatpush.msra.mxu1 %v1339_v2  ;;  %2382 = vmatpush.msra.mxu2 %v989_v3  ;;  %v1636_v2 = vperm.slane %v4187_v45, 0  ;;  %v1556_v3 = vld [vmem:[#allocation17 + $0x1290] sm:$0xff] }
 0x287   :  { %2405 = vmatpush.msra.mxu3 %v1080_v4  ;;  %2418 = vmatpush.msrb.mxu0 %v1241_v6  ;;  %v2530_v4 = vld [vmem:[#allocation20 + $0x108] sm:$0xff] }
 0x288   :  { %2441 = vmatpush.msra.mxu1 %v1332_v7  ;;  %2406 = vmatmul.f32.vlgmr.msra.gmra.mxu3 %v4122_v8  ;;  %v4177_v8 = vpop.f32.mrf.mxu0  ;;  %v2569_v7 = vld [vmem:[#allocation20 + $0x240] sm:$0xff] }
 0x289   :  { %2470 = vmatpush.msrb.mxu3 %v1633_v55  ;;  %2383 = vmatpush.msra.mxu2 %v982_v12  ;;  %v1458_v55 = vld [vmem:[#allocation17 + $0xf80] sm:$0xff] }
 0x28a   :  { %2419 = vmatpush.msrb.mxu0 %v1234_v13  ;;  %2442 = vmatpush.msra.mxu1 %v1325_v14  ;;  %v1549_v13 = vld [vmem:[#allocation17 + $0x1258] sm:$0xff] }
 0x28b   :  { %2471 = vmatpush.msrb.mxu3 %v1626_v15  ;;  %2384 = vmatpush.msra.mxu2 %v975_v16  ;;  %v2527_v14 = vld [vmem:[#allocation20 + $0xf0] sm:$0xff]  ;;  %v2566_v15 = vld [vmem:[#allocation20 + $0x228] sm:$0xff]  ;;  %v1451_v16 = vld [vmem:[#allocation17 + $0xf48] sm:$0xff] }
 0x28c   :  { %2420 = vmatpush.msrb.mxu0 %v1227_v17  ;;  %2443 = vmatpush.msra.mxu1 %v1318_v10  ;;  %v1668_v17 = vadd.f32 %v4175_v21, %v1636_v2  ;;  %v2560_v21 = vld [vmem:[#allocation20 + $0x1f8] sm:$0xff]  ;;  %v2503_v2 = vld [vmem:[#allocation20 + $0x30] sm:$0xff] }
 0x28d   :  { %2472 = vmatpush.msrb.mxu3 %v1619_v18  ;;  %2385 = vmatpush.msra.mxu2 %v968_v20  ;;  %v1542_v18 = vld [vmem:[#allocation17 + $0x1220] sm:$0xff] }
 0x28e   :  { %2421 = vmatpush.msrb.mxu0 %v1220_v11  ;;  %2444 = vmatpush.msra.mxu1 %v1311_v22  ;;  %v2524_v20 = vld [vmem:[#allocation20 + $0xd8] sm:$0xff]  ;;  %v1847_v11 = vpop.f32.mrf.mxu3  ;;  %v2563_v22 = vld [vmem:[#allocation20 + $0x210] sm:$0xff] }
 0x28f   :  { %2386 = vmatmul.f32.vlgmr.msra.gmra.mxu2 %v4126_v19  ;;  %2473 = vmatpush.msrb.mxu3 %v1612_v5  ;;  %v4185_v19 = vpop.f32.mrf.mxu2  ;;  %v1444_v5 = vld [vmem:[#allocation17 + $0xf10] sm:$0xff] }
 0x290   :  { %2450 = vmatpush.msrb.mxu2 %v1521_v24  ;;  %2422 = vmatpush.msrb.mxu0 %v1213_v25  ;;  %v1787_v46 = vpop.f32.mrf.mxu0  ;;  %v1535_v24 = vld [vmem:[#allocation17 + $0x11e8] sm:$0xff] }
 0x291   :  { %2445 = vmatpush.msra.mxu1 %v1304_v26  ;;  %2474 = vmatpush.msrb.mxu3 %v1605_v27  ;;  %v1788_v60 = vadd.f32 %v1787_v46, %v1637_v49  ;;  %v2521_v25 = vld [vmem:[#allocation20 + $0xc0] sm:$0xff]  ;;  %v1887_v26 = vpop.f32.mrf.mxu1  ;;  %v2680_v49 = vld [vmem:[#allocation20 + $0x5b8] sm:$0xff] }
 0x292   :  { %2446 = vmatmul.f32.vlgmr.msra.gmra.mxu1 %v4130_v28  ;;  %2451 = vmatpush.msrb.mxu2 %v1514_v1  ;;  %v1584_v28 = vld [vmem:[#allocation17 + $0x1370] sm:$0xff]  ;;  %v1437_v1 = vld [vmem:[#allocation17 + $0xed8] sm:$0xff] }
 0x293   :  { %2861 = vmatpush.msrb.mxu1 %v2590_v29  ;;  %2423 = vmatpush.msrb.mxu0 %v1206_v30  ;;  %v1808_v12 = vadd.f32 %v1807_v62, %v1788_v60  ;;  %v1688_v29 = vadd.f32 %v4180_v31, %v1668_v17  ;;  %v2638_v60 = vld [vmem:[#allocation20 + $0x468] sm:$0xff]  ;;  %v2545_v62 = vld [vmem:[#allocation20 + $0x180] sm:$0xff] }
 0x294   :  { %2452 = vmatpush.msrb.mxu2 %v1507_v32  ;;  %2475 = vmatpush.msrb.mxu3 %v1598_v33  ;;  %v1528_v32 = vld [vmem:[#allocation17 + $0x11b0] sm:$0xff] }
 0x295   :  { %2862 = vmatpush.msrb.mxu1 %v2587_v34  ;;  %2424 = vmatpush.msrb.mxu0 %v1199_v35  ;;  %v2518_v33 = vld [vmem:[#allocation20 + $0xa8] sm:$0xff]  ;;  %v2557_v35 = vld [vmem:[#allocation20 + $0x1e0] sm:$0xff]  ;;  %v1708_v31 = vadd.f32 %v4177_v8, %v1688_v29 }
 0x296   :  { %2453 = vmatpush.msrb.mxu2 %v1500_v37  ;;  %2476 = vmatpush.msrb.mxu3 %v1591_v39  ;;  %v2686_v37 = vld [vmem:[#allocation20 + $0x5e8] sm:$0xff]  ;;  %v1430_v39 = vld [vmem:[#allocation17 + $0xea0] sm:$0xff]  ;;  %v4202_v46 = vpop.f32.mrf.mxu3  ;;  %v2509_v8 = vld [vmem:[#allocation20 + $0x60] sm:$0xff] }
 0x297   :  { %2863 = vmatpush.msrb.mxu1 %v2584_v41  ;;  %2425 = vmatpush.msrb.mxu0 %v1192_v42  ;;  %v1827_v63 = vpop.f32.mrf.mxu2  ;;  %v2515_v41 = vld [vmem:[#allocation20 + $0x90] sm:$0xff]  ;;  %v2554_v42 = vld [vmem:[#allocation20 + $0x1c8] sm:$0xff] }
 0x298   :  { %2426 = vmatmul.f32.vlgmr.msrb.gmra.mxu0 %v4133_v40  ;;  %2454 = vmatpush.msrb.mxu2 %v1493_v43  ;;  %v1563_v40 = vld [vmem:[#allocation17 + $0x12c8] sm:$0xff]  ;;  %v1867_v6 = vpop.f32.mrf.mxu0  ;;  %v1828_v10 = vadd.f32 %v1827_v63, %v1808_v12  ;;  %v2674_v63 = vld [vmem:[#allocation20 + $0x588] sm:$0xff]  ;;  %v1638_v12 = vperm.slane %v4187_v45, 2 }
 0x299   :  { %2477 = vmatpush.msrb.mxu3 %v1584_v28  ;;  %2841 = vmatpush.msra.mxu0 %v2542_v44  ;;  %v2683_v28 = vld [vmem:[#allocation20 + $0x5d0] sm:$0xff]  ;;  %v1423_v44 = vld [vmem:[#allocation17 + $0xe68] sm:$0xff] }
 0x29a   :  { %2864 = vmatpush.msrb.mxu1 %v2581_v47  ;;  %2455 = vmatpush.msrb.mxu2 %v1486_v48  ;;  %v1848_v30 = vadd.f32 %v1847_v11, %v1828_v10  ;;  %v2512_v47 = vld [vmem:[#allocation20 + $0x78] sm:$0xff]  ;;  %v2551_v48 = vld [vmem:[#allocation20 + $0x1b0] sm:$0xff]  ;;  %v2497_v10 = vld [vmem:[#allocation20] sm:$0xff] }
 0x29b   :  { %2478 = vmatpush.msrb.mxu3 %v1577_v50  ;;  %2842 = vmatpush.msra.mxu0 %v2539_v51  ;;  %v1416_v50 = vld [vmem:[#allocation17 + $0xe30] sm:$0xff]  ;;  %v4204_v51 = vpop.f32.mrf.mxu1 }
 0x29c   :  { %2865 = vmatpush.msrb.mxu1 %v2578_v53  ;;  %2456 = vmatpush.msrb.mxu2 %v1479_v54  ;;  %v1868_v43 = vadd.f32 %v1867_v6, %v1848_v30  ;;  %v1728_v54 = vadd.f32 %v4183_v36, %v1708_v31  ;;  %v2635_v36 = vld [vmem:[#allocation20 + $0x450] sm:$0xff]  ;;  %v2782_v6 = vld [vmem:[#allocation20 + $0x8e8] sm:$0xff]  ;;  %v2620_v30 = vld [vmem:[#allocation20 + $0x3d8] sm:$0xff] }
 0x29d   :  { %2479 = vmatpush.msrb.mxu3 %v1570_v56  ;;  %2843 = vmatpush.msra.mxu0 %v2536_v57  ;;  %v1639_v57 = vperm.slane %v4187_v45, 3 }
 0x29e   :  { %2866 = vmatpush.msrb.mxu1 %v2575_v58  ;;  %2457 = vmatpush.msrb.mxu2 %v1472_v59  ;;  %v1888_v56 = vadd.f32 %v1887_v26, %v1868_v43  ;;  %v2677_v58 = vld [vmem:[#allocation20 + $0x5a0] sm:$0xff]  ;;  %v2776_v26 = vld [vmem:[#allocation20 + $0x8b8] sm:$0xff] }
 0x29f   :  { %2480 = vmatpush.msrb.mxu3 %v1563_v40  ;;  %2844 = vmatpush.msra.mxu0 %v2533_v61  ;;  %v4195_v27 = vpop.f32.mrf.mxu2  ;;  %v2506_v40 = vld [vmem:[#allocation20 + $0x48] sm:$0xff]  ;;  %v1748_v61 = vadd.f32 %v4185_v19, %v1728_v54  ;;  %v2632_v19 = vld [vmem:[#allocation20 + $0x438] sm:$0xff]  ;;  %v2725_v43 = vld [vmem:[#allocation20 + $0x720] sm:$0xff] }
 0x2a0   :  { %2867 = vmatpush.msrb.mxu1 %v2572_v0  ;;  %2458 = vmatpush.msrb.mxu2 %v1465_v9  ;;  %v4198_v34 = vpop.f32.mrf.mxu0  ;;  %v4212_v0 = vmax.f32 %v1888_v56, 0.0  ;;  %v2611_v54 = vld [vmem:[#allocation20 + $0x390] sm:$0xff]  ;;  %v2764_v56 = vld [vmem:[#allocation20 + $0x858] sm:$0xff] }
 0x2a1   :  { %2481 = vmatpush.msrb.mxu3 %v1556_v3  ;;  %2845 = vmatpush.msra.mxu0 %v2530_v4  ;;  %v2671_v3 = vld [vmem:[#allocation20 + $0x570] sm:$0xff]  ;;  %v4214_v4 = vpop.f32.mrf.mxu3 }
 0x2a2   :  { %2868 = vmatpush.msrb.mxu1 %v2569_v7  ;;  %2459 = vmatpush.msrb.mxu2 %v1458_v55  ;;  %v1768_v7 = vadd.f32 %v4191_v52, %v1748_v61  ;;  %v2668_v55 = vld [vmem:[#allocation20 + $0x558] sm:$0xff]  ;;  %v2626_v52 = vld [vmem:[#allocation20 + $0x408] sm:$0xff] }
 0x2a3   :  { %2482 = vmatpush.msrb.mxu3 %v1549_v13  ;;  %2846 = vmatpush.msra.mxu0 %v2527_v14  ;;  %v2047_v13 = vpop.f32.mrf.mxu1 }
 0x2a4   :  { %2869 = vmatpush.msrb.mxu1 %v2566_v15  ;;  %2460 = vmatpush.msrb.mxu2 %v1451_v16  ;;  %v2629_v15 = vld [vmem:[#allocation20 + $0x420] sm:$0xff]  ;;  %v2779_v16 = vld [vmem:[#allocation20 + $0x8d0] sm:$0xff] }
 0x2a5   :  { %2483 = vmatpush.msrb.mxu3 %v1542_v18  ;;  %2847 = vmatpush.msra.mxu0 %v2524_v20  ;;  %v2665_v18 = vld [vmem:[#allocation20 + $0x540] sm:$0xff]  ;;  %v4219_v20 = vmax.f32 %v1768_v7, 0.0 }
 0x2a6   :  { %2870 = vmatpush.msrb.mxu1 %v2563_v22  ;;  %2461 = vmatpush.msrb.mxu2 %v1444_v5  ;;  %v2734_v22 = vld [vmem:[#allocation20 + $0x768] sm:$0xff] }
 0x2a7   :  { %2484 = vmatpush.msrb.mxu3 %v1535_v24  ;;  %2848 = vmatpush.msra.mxu0 %v2521_v25  ;;  %v4206_v53 = vpop.f32.mrf.mxu2  ;;  %v2662_v5 = vld [vmem:[#allocation20 + $0x528] sm:$0xff]  ;;  %v1908_v24 = vadd.f32 %v4195_v27, %v1638_v12  ;;  %v2623_v25 = vld [vmem:[#allocation20 + $0x3f0] sm:$0xff] }
 0x2a8   :  { %2871 = vmatpush.msrb.mxu1 %v2560_v21  ;;  %2462 = vmatpush.msrb.mxu2 %v1437_v1  ;;  %v2027_v59 = vpop.f32.mrf.mxu0  ;;  %v2731_v21 = vld [vmem:[#allocation20 + $0x750] sm:$0xff] }
 0x2a9   :  { %2485 = vmatpush.msrb.mxu3 %v1528_v32  ;;  %2849 = vmatpush.msra.mxu0 %v2518_v33  ;;  %v2028_v9 = vadd.f32 %v2027_v59, %v1639_v57  ;;  %v2659_v1 = vld [vmem:[#allocation20 + $0x510] sm:$0xff]  ;;  %v2087_v29 = vpop.f32.mrf.mxu3  ;;  %v2773_v32 = vld [vmem:[#allocation20 + $0x8a0] sm:$0xff]  ;;  %v1928_v27 = vadd.f32 %v4202_v46, %v1908_v24  ;;  %v2650_v46 = vld [vmem:[#allocation20 + $0x4c8] sm:$0xff] }
 0x2aa   :  { %2872 = vmatpush.msrb.mxu1 %v2557_v35  ;;  %2486 = vmatmul.f32.vlgmr.msrb.gmra.mxu3 %v4140_v23  ;;  %v2548_v23 = vld [vmem:[#allocation20 + $0x198] sm:$0xff]  ;;  %v2719_v57 = vld [vmem:[#allocation20 + $0x6f0] sm:$0xff]  ;;  %v2593_v24 = vld [vmem:[#allocation20 + $0x300] sm:$0xff] }
 0x2ab   :  { %2901 = vmatpush.msra.mxu3 %v2686_v37  ;;  %2463 = vmatpush.msrb.mxu2 %v1430_v39  ;;  %v2048_v17 = vadd.f32 %v2047_v13, %v2028_v9  ;;  %v2728_v35 = vld [vmem:[#allocation20 + $0x738] sm:$0xff]  ;;  %v1640_v39 = vperm.slane %v4187_v45, 4  ;;  %v2127_v59 = vpop.f32.mrf.mxu1  ;;  %v2710_v13 = vld [vmem:[#allocation20 + $0x6a8] sm:$0xff] }
 0x2ac   :  { %2850 = vmatpush.msra.mxu0 %v2515_v41  ;;  %2873 = vmatpush.msrb.mxu1 %v2554_v42  ;;  %v2656_v37 = vld [vmem:[#allocation20 + $0x4f8] sm:$0xff]  ;;  %v2617_v41 = vld [vmem:[#allocation20 + $0x3c0] sm:$0xff]  ;;  %v2770_v42 = vld [vmem:[#allocation20 + $0x888] sm:$0xff] }
 0x2ad   :  { %2902 = vmatpush.msra.mxu3 %v2683_v28  ;;  %2464 = vmatpush.msrb.mxu2 %v1423_v44  ;;  %v2653_v28 = vld [vmem:[#allocation20 + $0x4e0] sm:$0xff] }
 0x2ae   :  { %2851 = vmatpush.msra.mxu0 %v2512_v47  ;;  %2874 = vmatpush.msrb.mxu1 %v2551_v48  ;;  %v2614_v47 = vld [vmem:[#allocation20 + $0x3a8] sm:$0xff]  ;;  %v2767_v48 = vld [vmem:[#allocation20 + $0x870] sm:$0xff] }
 0x2af   :  { %2903 = vmatpush.msra.mxu3 %v2680_v49  ;;  %2465 = vmatpush.msrb.mxu2 %v1416_v50  ;;  %v2067_v14 = vpop.f32.mrf.mxu2  ;;  %v2722_v50 = vld [vmem:[#allocation20 + $0x708] sm:$0xff] }
 0x2b0   :  { %2852 = vmatpush.msra.mxu0 %v2509_v8  ;;  %2875 = vmatpush.msrb.mxu1 %v2548_v23  ;;  %v2068_v11 = vadd.f32 %v2067_v14, %v2048_v17  ;;  %v2107_v44 = vpop.f32.mrf.mxu0  ;;  %v1948_v8 = vadd.f32 %v4198_v34, %v1928_v27  ;;  %v2707_v17 = vld [vmem:[#allocation20 + $0x690] sm:$0xff] }
 0x2b1   :  { %2466 = vmatmul.f32.vlgmr.msrb.gmra.mxu2 %v4143_v38  ;;  %2904 = vmatpush.msra.mxu3 %v2677_v58  ;;  %v2500_v38 = vld [vmem:[#allocation20 + $0x18] sm:$0xff]  ;;  %v2647_v58 = vld [vmem:[#allocation20 + $0x4b0] sm:$0xff] }
 0x2b2   :  { %2881 = vmatpush.msra.mxu2 %v2638_v60  ;;  %2853 = vmatpush.msra.mxu0 %v2506_v40  ;;  %v2088_v33 = vadd.f32 %v2087_v29, %v2068_v11  ;;  %v2608_v60 = vld [vmem:[#allocation20 + $0x378] sm:$0xff]  ;;  %v2761_v40 = vld [vmem:[#allocation20 + $0x840] sm:$0xff]  ;;  %v1968_v34 = vadd.f32 %v4204_v51, %v1948_v8  ;;  %v2543_v51 = vld [vmem:[#allocation20 + $0x170] sm:$0xff] }
 0x2b3   :  { %2876 = vmatpush.msrb.mxu1 %v2545_v62  ;;  %2905 = vmatpush.msra.mxu3 %v2674_v63  ;;  %v2167_v62 = vpop.f32.mrf.mxu3  ;;  %v2716_v63 = vld [vmem:[#allocation20 + $0x6d8] sm:$0xff]  ;;  %v2207_v11 = vpop.f32.mrf.mxu1 }
 0x2b4   :  { %2877 = vmatmul.f32.vlgmr.msrb.gmra.mxu1 %v4212_v0  ;;  %2882 = vmatpush.msra.mxu2 %v2635_v36  ;;  %v2108_v49 = vadd.f32 %v2107_v44, %v2088_v33  ;;  %v2644_v36 = vld [vmem:[#allocation20 + $0x498] sm:$0xff]  ;;  %v1988_v7 = vadd.f32 %v4206_v53, %v1968_v34  ;;  %v2698_v33 = vld [vmem:[#allocation20 + $0x648] sm:$0xff]  ;;  %v2737_v44 = vld [vmem:[#allocation20 + $0x780] sm:$0xff] }
 0x2b5   :  { %2854 = vmatpush.msra.mxu0 %v2503_v2  ;;  %2906 = vmatpush.msra.mxu3 %v2671_v3  ;;  %v2605_v2 = vld [vmem:[#allocation20 + $0x360] sm:$0xff]  ;;  %v2758_v3 = vld [vmem:[#allocation20 + $0x828] sm:$0xff]  ;;  %v2540_v53 = vld [vmem:[#allocation20 + $0x158] sm:$0xff] }
 0x2b6   :  { %2883 = vmatpush.msra.mxu2 %v2632_v19  ;;  %2941 = vmatpush.msra.mxu1 %v2782_v6  ;;  %v2128_v61 = vadd.f32 %v2127_v59, %v2108_v49  ;;  %v2713_v19 = vld [vmem:[#allocation20 + $0x6c0] sm:$0xff]  ;;  %v2636_v8 = vld [vmem:[#allocation20 + $0x458] sm:$0xff]  ;;  %v2630_v59 = vld [vmem:[#allocation20 + $0x428] sm:$0xff] }
 0x2b7   :  { %2855 = vmatpush.msra.mxu0 %v2500_v38  ;;  %2907 = vmatpush.msra.mxu3 %v2668_v55  ;;  %v2147_v31 = vpop.f32.mrf.mxu2  ;;  %v2641_v6 = vld [vmem:[#allocation20 + $0x480] sm:$0xff]  ;;  %v2602_v38 = vld [vmem:[#allocation20 + $0x348] sm:$0xff]  ;;  %v2624_v34 = vld [vmem:[#allocation20 + $0x3f8] sm:$0xff] }
 0x2b8   :  { %2884 = vmatpush.msra.mxu2 %v2629_v15  ;;  %2942 = vmatpush.msra.mxu1 %v2779_v16  ;;  %v2148_v23 = vadd.f32 %v2147_v31, %v1640_v39  ;;  %v4228_v55 = vmax.f32 %v2128_v61, 0.0  ;;  %v2187_v12 = vpop.f32.mrf.mxu0  ;;  %v2599_v15 = vld [vmem:[#allocation20 + $0x330] sm:$0xff]  ;;  %v2740_v31 = vld [vmem:[#allocation20 + $0x798] sm:$0xff] }
 0x2b9   :  { %2856 = vmatpush.msra.mxu0 %v2497_v10  ;;  %2908 = vmatpush.msra.mxu3 %v2665_v18  ;;  %v2755_v16 = vld [vmem:[#allocation20 + $0x810] sm:$0xff]  ;;  %v2008_v10 = vadd.f32 %v4214_v4, %v1988_v7  ;;  %v2596_v18 = vld [vmem:[#allocation20 + $0x318] sm:$0xff]  ;;  %v2534_v4 = vld [vmem:[#allocation20 + $0x128] sm:$0xff] }
 0x2ba   :  { %2857 = vmatmul.f32.vlgmr.msra.gmra.mxu0 %v4219_v20  ;;  %2885 = vmatpush.msra.mxu2 %v2626_v52  ;;  %v2168_v9 = vadd.f32 %v2167_v62, %v2148_v23  ;;  %v2752_v52 = vld [vmem:[#allocation20 + $0x7f8] sm:$0xff]  ;;  %v2695_v39 = vld [vmem:[#allocation20 + $0x630] sm:$0xff]  ;;  %v2830_v62 = vld [vmem:[#allocation20 + $0xa68] sm:$0xff] }
 0x2bb   :  { %2921 = vmatpush.msrb.mxu0 %v2734_v22  ;;  %2909 = vmatpush.msra.mxu3 %v2662_v5  ;;  %v2704_v22 = vld [vmem:[#allocation20 + $0x678] sm:$0xff]  ;;  %v2537_v5 = vld [vmem:[#allocation20 + $0x140] sm:$0xff]  ;;  %v4232_v29 = vmax.f32 %v2008_v10, 0.0  ;;  %v2519_v23 = vld [vmem:[#allocation20 + $0xb0] sm:$0xff] }
 0x2bc   :  { %2886 = vmatpush.msra.mxu2 %v2623_v25  ;;  %2943 = vmatpush.msra.mxu1 %v2776_v26  ;;  %v2188_v14 = vadd.f32 %v2187_v12, %v2168_v9  ;;  %v2749_v26 = vld [vmem:[#allocation20 + $0x7e0] sm:$0xff]  ;;  %v2627_v61 = vld [vmem:[#allocation20 + $0x410] sm:$0xff]  ;;  %v2504_v7 = vld [vmem:[#allocation20 + $0x38] sm:$0xff] }
 0x2bd   :  { %2922 = vmatpush.msrb.mxu0 %v2731_v21  ;;  %2910 = vmatpush.msra.mxu3 %v2659_v1  ;;  %v2701_v21 = vld [vmem:[#allocation20 + $0x660] sm:$0xff]  ;;  %v2827_v9 = vld [vmem:[#allocation20 + $0xa50] sm:$0xff]  ;;  %v2618_v12 = vld [vmem:[#allocation20 + $0x3c8] sm:$0xff] }
 0x2be   :  { %2887 = vmatpush.msra.mxu2 %v2620_v30  ;;  %2944 = vmatpush.msra.mxu1 %v2773_v32  ;;  %v2208_v25 = vadd.f32 %v2207_v11, %v2188_v14  ;;  %v2746_v32 = vld [vmem:[#allocation20 + $0x7c8] sm:$0xff]  ;;  %v2567_v10 = vld [vmem:[#allocation20 + $0x230] sm:$0xff] }
 0x2bf   :  { %2923 = vmatpush.msrb.mxu0 %v2728_v35  ;;  %2911 = vmatpush.msra.mxu3 %v2656_v37  ;;  %v2531_v35 = vld [vmem:[#allocation20 + $0x110] sm:$0xff]  ;;  %v2570_v14 = vld [vmem:[#allocation20 + $0x248] sm:$0xff] }
 0x2c0   :  { %2888 = vmatpush.msra.mxu2 %v2617_v41  ;;  %2945 = vmatpush.msra.mxu1 %v2770_v42  ;;  %v2743_v37 = vld [vmem:[#allocation20 + $0x7b0] sm:$0xff]  ;;  %v2528_v41 = vld [vmem:[#allocation20 + $0xf8] sm:$0xff] }
 0x2c1   :  { %2924 = vmatpush.msrb.mxu0 %v2725_v43  ;;  %2912 = vmatpush.msra.mxu3 %v2653_v28  ;;  %v2692_v43 = vld [vmem:[#allocation20 + $0x618] sm:$0xff]  ;;  %v2525_v28 = vld [vmem:[#allocation20 + $0xe0] sm:$0xff]  ;;  %v2815_v11 = vld [vmem:[#allocation20 + $0x9f0] sm:$0xff] }
 0x2c2   :  { %2889 = vmatpush.msra.mxu2 %v2614_v47  ;;  %2946 = vmatpush.msra.mxu1 %v2767_v48  ;;  %v2689_v47 = vld [vmem:[#allocation20 + $0x600] sm:$0xff]  ;;  %v2639_v48 = vld [vmem:[#allocation20 + $0x470] sm:$0xff] }
 0x2c3   :  { %2925 = vmatpush.msrb.mxu0 %v2722_v50  ;;  %2913 = vmatpush.msra.mxu3 %v2650_v46  ;;  %v2522_v50 = vld [vmem:[#allocation20 + $0xc8] sm:$0xff]  ;;  %v2591_v46 = vld [vmem:[#allocation20 + $0x2f0] sm:$0xff] }
 0x2c4   :  { %2890 = vmatpush.msra.mxu2 %v2611_v54  ;;  %2947 = vmatpush.msra.mxu1 %v2764_v56  ;;  %v2588_v54 = vld [vmem:[#allocation20 + $0x2d8] sm:$0xff]  ;;  %v2633_v56 = vld [vmem:[#allocation20 + $0x440] sm:$0xff] }
 0x2c5   :  { %2926 = vmatpush.msrb.mxu0 %v2719_v57  ;;  %2914 = vmatpush.msra.mxu3 %v2647_v58  ;;  %v2516_v57 = vld [vmem:[#allocation20 + $0x98] sm:$0xff]  ;;  %v2585_v58 = vld [vmem:[#allocation20 + $0x2c0] sm:$0xff] }
 0x2c6   :  { %2891 = vmatpush.msra.mxu2 %v2608_v60  ;;  %2948 = vmatpush.msra.mxu1 %v2761_v40  ;;  %v2513_v60 = vld [vmem:[#allocation20 + $0x80] sm:$0xff]  ;;  %v2582_v40 = vld [vmem:[#allocation20 + $0x2a8] sm:$0xff] }
 0x2c7   :  { %2927 = vmatpush.msrb.mxu0 %v2716_v63  ;;  %2915 = vmatpush.msra.mxu3 %v2644_v36  ;;  %v2247_v27 = vpop.f32.mrf.mxu3  ;;  %v2510_v63 = vld [vmem:[#allocation20 + $0x68] sm:$0xff]  ;;  %v2579_v36 = vld [vmem:[#allocation20 + $0x290] sm:$0xff] }
 0x2c8   :  { %2892 = vmatpush.msra.mxu2 %v2605_v2  ;;  %2949 = vmatpush.msra.mxu1 %v2758_v3  ;;  %v2507_v2 = vld [vmem:[#allocation20 + $0x50] sm:$0xff]  ;;  %v2576_v3 = vld [vmem:[#allocation20 + $0x278] sm:$0xff] }
 0x2c9   :  { %2928 = vmatpush.msrb.mxu0 %v2713_v19  ;;  %2916 = vmatpush.msra.mxu3 %v2641_v6  ;;  %v2621_v19 = vld [vmem:[#allocation20 + $0x3e0] sm:$0xff]  ;;  %v2824_v6 = vld [vmem:[#allocation20 + $0xa38] sm:$0xff] }
 0x2ca   :  { %2893 = vmatpush.msra.mxu2 %v2602_v38  ;;  %2917 = vmatmul.f32.vlgmr.msra.gmra.mxu3 %v4228_v55  ;;  %v2573_v38 = vld [vmem:[#allocation20 + $0x260] sm:$0xff] }
 0x2cb   :  { %2929 = vmatpush.msrb.mxu0 %v2710_v13  ;;  %2981 = vmatpush.msrb.mxu3 %v2543_v51  ;;  %v2821_v13 = vld [vmem:[#allocation20 + $0xa20] sm:$0xff] }
 0x2cc   :  { %2894 = vmatpush.msra.mxu2 %v2599_v15  ;;  %2950 = vmatpush.msra.mxu1 %v2755_v16  ;;  %v2501_v51 = vld [vmem:[#allocation20 + $0x20] sm:$0xff]  ;;  %v2615_v15 = vld [vmem:[#allocation20 + $0x3b0] sm:$0xff]  ;;  %v2818_v16 = vld [vmem:[#allocation20 + $0xa08] sm:$0xff] }
 0x2cd   :  { %2930 = vmatpush.msrb.mxu0 %v2707_v17  ;;  %2982 = vmatpush.msrb.mxu3 %v2540_v53  ;;  %v1641_v17 = vperm.slane %v4187_v45, 5  ;;  %v2498_v53 = vld [vmem:[#allocation20 + $0x8] sm:$0xff]  ;;  %v2732_v45 = vld [vmem:[#allocation20 + $0x758] sm:$0xff] }
 0x2ce   :  { %2895 = vmatpush.msra.mxu2 %v2596_v18  ;;  %v2227_v1 = vpop.f32.mrf.mxu2  ;;  %2951 = vmatpush.msra.mxu1 %v2752_v52  ;;  %v2612_v52 = vld [vmem:[#allocation20 + $0x398] sm:$0xff] }
 0x2cf   :  { %2931 = vmatpush.msrb.mxu0 %v2704_v22  ;;  %2983 = vmatpush.msrb.mxu3 %v2537_v5  ;;  %v2228_v30 = vadd.f32 %v2227_v1, %v2208_v25  ;;  %v2735_v22 = vld [vmem:[#allocation20 + $0x770] sm:$0xff]  ;;  %v2564_v5 = vld [vmem:[#allocation20 + $0x218] sm:$0xff] }
 0x2d0   :  { %2896 = vmatpush.msra.mxu2 %v2593_v24  ;;  %2952 = vmatpush.msra.mxu1 %v2749_v26  ;;  %v2609_v24 = vld [vmem:[#allocation20 + $0x380] sm:$0xff]  ;;  %v2812_v1 = vld [vmem:[#allocation20 + $0x9d8] sm:$0xff] }
 0x2d1   :  { %2932 = vmatpush.msrb.mxu0 %v2701_v21  ;;  %2897 = vmatmul.f32.vlgmr.msra.gmra.mxu2 %v4232_v29  ;;  %v2248_v42 = vadd.f32 %v2247_v27, %v2228_v30  ;;  %v2267_v18 = vpop.f32.mrf.mxu0  ;;  %v2561_v26 = vld [vmem:[#allocation20 + $0x200] sm:$0xff]  ;;  %v2606_v21 = vld [vmem:[#allocation20 + $0x368] sm:$0xff]  ;;  %v2555_v27 = vld [vmem:[#allocation20 + $0x1d0] sm:$0xff] }
 0x2d2   :  { %2984 = vmatpush.msrb.mxu3 %v2534_v4  ;;  %2953 = vmatpush.msra.mxu1 %v2746_v32  ;;  %v2268_v25 = vadd.f32 %v2267_v18, %v1641_v17  ;;  %v2729_v4 = vld [vmem:[#allocation20 + $0x740] sm:$0xff]  ;;  %v2558_v30 = vld [vmem:[#allocation20 + $0x1e8] sm:$0xff]  ;;  %v2287_v32 = vpop.f32.mrf.mxu1  ;;  %v2687_v17 = vld [vmem:[#allocation20 + $0x5f0] sm:$0xff] }
 0x2d3   :  { %2933 = vmatpush.msrb.mxu0 %v2698_v33  ;;  %v4235_v49 = vmax.f32 %v2248_v42, 0.0  ;;  %2961 = vmatpush.msrb.mxu2 %v2830_v62  ;;  %v2603_v33 = vld [vmem:[#allocation20 + $0x350] sm:$0xff]  ;;  %v2600_v42 = vld [vmem:[#allocation20 + $0x338] sm:$0xff]  ;;  %v2714_v62 = vld [vmem:[#allocation20 + $0x6c8] sm:$0xff] }
 0x2d4   :  { %2985 = vmatpush.msrb.mxu3 %v2531_v35  ;;  %2954 = vmatpush.msra.mxu1 %v2743_v37  ;;  %v2809_v35 = vld [vmem:[#allocation20 + $0x9c0] sm:$0xff]  ;;  %v2726_v37 = vld [vmem:[#allocation20 + $0x728] sm:$0xff]  ;;  %v2684_v18 = vld [vmem:[#allocation20 + $0x5d8] sm:$0xff] }
 0x2d5   :  { %2934 = vmatpush.msrb.mxu0 %v2695_v39  ;;  %2962 = vmatpush.msrb.mxu2 %v2827_v9  ;;  %v2288_v39 = vadd.f32 %v2287_v32, %v2268_v25  ;;  %v2765_v25 = vld [vmem:[#allocation20 + $0x860] sm:$0xff]  ;;  %v2675_v32 = vld [vmem:[#allocation20 + $0x590] sm:$0xff] }
 0x2d6   :  { %2986 = vmatpush.msrb.mxu3 %v2528_v41  ;;  %2955 = vmatpush.msra.mxu1 %v2740_v31  ;;  %v2806_v31 = vld [vmem:[#allocation20 + $0x9a8] sm:$0xff] }
 0x2d7   :  { %2935 = vmatpush.msrb.mxu0 %v2692_v43  ;;  %2963 = vmatpush.msrb.mxu2 %v2824_v6  ;;  %v2723_v43 = vld [vmem:[#allocation20 + $0x710] sm:$0xff] }
 0x2d8   :  { %2987 = vmatpush.msrb.mxu3 %v2525_v28  ;;  %2956 = vmatpush.msra.mxu1 %v2737_v44  ;;  %v2552_v28 = vld [vmem:[#allocation20 + $0x1b8] sm:$0xff]  ;;  %v2791_v6 = vld [vmem:[#allocation20 + $0x930] sm:$0xff] }
 0x2d9   :  { %2936 = vmatpush.msrb.mxu0 %v2689_v47  ;;  %2964 = vmatpush.msrb.mxu2 %v2821_v13  ;;  %v2788_v13 = vld [vmem:[#allocation20 + $0x918] sm:$0xff] }
 0x2da   :  { %3021 = vmatpush.msrb.mxu1 %v2639_v48  ;;  %2988 = vmatpush.msrb.mxu3 %v2522_v50  ;;  %v2597_v48 = vld [vmem:[#allocation20 + $0x320] sm:$0xff]  ;;  %v2803_v50 = vld [vmem:[#allocation20 + $0x990] sm:$0xff] }
 0x2db   :  { %3001 = vmatpush.msra.mxu0 %v2591_v46  ;;  %2965 = vmatpush.msrb.mxu2 %v2818_v16  ;;  %v2720_v46 = vld [vmem:[#allocation20 + $0x6f8] sm:$0xff]  ;;  %v2785_v16 = vld [vmem:[#allocation20 + $0x900] sm:$0xff] }
 0x2dc   :  { %2937 = vmatmul.f32.vlgmr.msrb.gmra.mxu0 %v4235_v49  ;;  %3022 = vmatpush.msrb.mxu1 %v2636_v8  ;;  %v2549_v8 = vld [vmem:[#allocation20 + $0x1a0] sm:$0xff] }
 0x2dd   :  { %2989 = vmatpush.msrb.mxu3 %v2519_v23  ;;  %3002 = vmatpush.msra.mxu0 %v2588_v54 }
 0x2de   :  { %3023 = vmatpush.msrb.mxu1 %v2633_v56  ;;  %2966 = vmatpush.msrb.mxu2 %v2815_v11  ;;  %v2594_v56 = vld [vmem:[#allocation20 + $0x308] sm:$0xff]  ;;  %v2768_v11 = vld [vmem:[#allocation20 + $0x878] sm:$0xff] }
 0x2df   :  { %2990 = vmatpush.msrb.mxu3 %v2516_v57  ;;  %3003 = vmatpush.msra.mxu0 %v2585_v58  ;;  %v2800_v57 = vld [vmem:[#allocation20 + $0x978] sm:$0xff]  ;;  %v2717_v58 = vld [vmem:[#allocation20 + $0x6e0] sm:$0xff] }
 0x2e0   :  { %3024 = vmatpush.msrb.mxu1 %v2630_v59  ;;  %2967 = vmatpush.msrb.mxu2 %v2812_v1  ;;  %v2546_v59 = vld [vmem:[#allocation20 + $0x188] sm:$0xff]  ;;  %v2693_v1 = vld [vmem:[#allocation20 + $0x620] sm:$0xff] }
 0x2e1   :  { %2991 = vmatpush.msrb.mxu3 %v2513_v60  ;;  %3004 = vmatpush.msra.mxu0 %v2582_v40 }
 0x2e2   :  { %3025 = vmatpush.msrb.mxu1 %v2627_v61  ;;  %2968 = vmatpush.msrb.mxu2 %v2809_v35  ;;  %v2797_v61 = vld [vmem:[#allocation20 + $0x960] sm:$0xff]  ;;  %v2759_v35 = vld [vmem:[#allocation20 + $0x830] sm:$0xff] }
 0x2e3   :  { %2992 = vmatpush.msrb.mxu3 %v2510_v63  ;;  %3005 = vmatpush.msra.mxu0 %v2579_v36  ;;  %v2783_v63 = vld [vmem:[#allocation20 + $0x8f0] sm:$0xff] }
 0x2e4   :  { %3026 = vmatpush.msrb.mxu1 %v2624_v34  ;;  %2969 = vmatpush.msrb.mxu2 %v2806_v31  ;;  %v2794_v34 = vld [vmem:[#allocation20 + $0x948] sm:$0xff]  ;;  %v2589_v31 = vld [vmem:[#allocation20 + $0x2e0] sm:$0xff] }
 0x2e5   :  { %2993 = vmatpush.msrb.mxu3 %v2507_v2  ;;  %3006 = vmatpush.msra.mxu0 %v2576_v3  ;;  %v2711_v2 = vld [vmem:[#allocation20 + $0x6b0] sm:$0xff]  ;;  %v2780_v3 = vld [vmem:[#allocation20 + $0x8d8] sm:$0xff] }
 0x2e6   :  { %3027 = vmatpush.msrb.mxu1 %v2621_v19  ;;  %2970 = vmatpush.msrb.mxu2 %v2803_v50  ;;  %v2831_v19 = vld [vmem:[#allocation20 + $0xa70] sm:$0xff] }
 0x2e7   :  { %2994 = vmatpush.msrb.mxu3 %v2504_v7  ;;  %3007 = vmatpush.msra.mxu0 %v2573_v38  ;;  %v2708_v7 = vld [vmem:[#allocation20 + $0x698] sm:$0xff]  ;;  %v2777_v38 = vld [vmem:[#allocation20 + $0x8c0] sm:$0xff] }
 0x2e8   :  { %3028 = vmatpush.msrb.mxu1 %v2618_v12  ;;  %2971 = vmatpush.msrb.mxu2 %v2800_v57  ;;  %v2828_v12 = vld [vmem:[#allocation20 + $0xa58] sm:$0xff]  ;;  %v2663_v57 = vld [vmem:[#allocation20 + $0x530] sm:$0xff] }
 0x2e9   :  { %2995 = vmatpush.msrb.mxu3 %v2501_v51  ;;  %3008 = vmatpush.msra.mxu0 %v2570_v14  ;;  %v2327_v47 = vpop.f32.mrf.mxu3  ;;  %v2705_v51 = vld [vmem:[#allocation20 + $0x680] sm:$0xff]  ;;  %v2774_v14 = vld [vmem:[#allocation20 + $0x8a8] sm:$0xff] }
 0x2ea   :  { %3029 = vmatpush.msrb.mxu1 %v2615_v15  ;;  %2972 = vmatpush.msrb.mxu2 %v2797_v61  ;;  %v2825_v15 = vld [vmem:[#allocation20 + $0xa40] sm:$0xff]  ;;  %v2660_v61 = vld [vmem:[#allocation20 + $0x518] sm:$0xff] }
 0x2eb   :  { %2996 = vmatpush.msrb.mxu3 %v2498_v53  ;;  %3009 = vmatpush.msra.mxu0 %v2567_v10  ;;  %v2702_v53 = vld [vmem:[#allocation20 + $0x668] sm:$0xff]  ;;  %v2771_v10 = vld [vmem:[#allocation20 + $0x890] sm:$0xff] }
 0x2ec   :  { %2997 = vmatmul.f32.vlgmr.msrb.gmra.mxu3 %v4219_v20  ;;  %3030 = vmatpush.msrb.mxu1 %v2612_v52  ;;  %v2699_v52 = vld [vmem:[#allocation20 + $0x650] sm:$0xff] }
 0x2ed   :  { %3061 = vmatpush.msra.mxu3 %v2735_v22  ;;  %3010 = vmatpush.msra.mxu0 %v2564_v5  ;;  %v2367_v40 = vpop.f32.mrf.mxu1  ;;  %v2822_v22 = vld [vmem:[#allocation20 + $0xa28] sm:$0xff]  ;;  %v2681_v5 = vld [vmem:[#allocation20 + $0x5c0] sm:$0xff] }
 0x2ee   :  { %3031 = vmatpush.msrb.mxu1 %v2609_v24  ;;  %2973 = vmatpush.msrb.mxu2 %v2794_v34  ;;  %v2696_v24 = vld [vmem:[#allocation20 + $0x638] sm:$0xff]  ;;  %v2795_v34 = vld [vmem:[#allocation20 + $0x950] sm:$0xff] }
 0x2ef   :  { %3062 = vmatpush.msra.mxu3 %v2732_v45  ;;  %3011 = vmatpush.msra.mxu0 %v2561_v26  ;;  %v347_v45 = vpop.xlane.xlu0 %346  ;;  %v2819_v26 = vld [vmem:[#allocation20 + $0xa10] sm:$0xff] }
 0x2f0   :  { %3032 = vmatpush.msrb.mxu1 %v2606_v21  ;;  %v2307_v41 = vpop.f32.mrf.mxu2  ;;  %2974 = vmatpush.msrb.mxu2 %v2791_v6  ;;  %v2678_v21 = vld [vmem:[#allocation20 + $0x5a8] sm:$0xff]  ;;  %v2792_v6 = vld [vmem:[#allocation20 + $0x938] sm:$0xff] }
 0x2f1   :  { %3063 = vmatpush.msra.mxu3 %v2729_v4  ;;  %3012 = vmatpush.msra.mxu0 %v2558_v30  ;;  %v2308_v44 = vadd.f32 %v2307_v41, %v2288_v39  ;;  %v2762_v4 = vld [vmem:[#allocation20 + $0x848] sm:$0xff]  ;;  %v2816_v30 = vld [vmem:[#allocation20 + $0x9f8] sm:$0xff] }
 0x2f2   :  { %3033 = vmatpush.msrb.mxu1 %v2603_v33  ;;  %2975 = vmatpush.msrb.mxu2 %v2788_v13  ;;  %v2690_v33 = vld [vmem:[#allocation20 + $0x608] sm:$0xff]  ;;  %v2756_v39 = vld [vmem:[#allocation20 + $0x818] sm:$0xff] }
 0x2f3   :  { %3064 = vmatpush.msra.mxu3 %v2726_v37  ;;  %3013 = vmatpush.msra.mxu0 %v2555_v27  ;;  %v2328_v23 = vadd.f32 %v2327_v47, %v2308_v44  ;;  %v2347_v54 = vpop.f32.mrf.mxu0  ;;  %v2813_v37 = vld [vmem:[#allocation20 + $0x9e0] sm:$0xff]  ;;  %v2592_v27 = vld [vmem:[#allocation20 + $0x2f8] sm:$0xff]  ;;  %v2810_v41 = vld [vmem:[#allocation20 + $0x9c8] sm:$0xff] }
 0x2f4   :  { %3034 = vmatpush.msrb.mxu1 %v2600_v42  ;;  %2976 = vmatpush.msrb.mxu2 %v2785_v16  ;;  %v2672_v42 = vld [vmem:[#allocation20 + $0x578] sm:$0xff]  ;;  %v2669_v44 = vld [vmem:[#allocation20 + $0x560] sm:$0xff]  ;;  %v2586_v47 = vld [vmem:[#allocation20 + $0x2c8] sm:$0xff] }
 0x2f5   :  { %3065 = vmatpush.msra.mxu3 %v2723_v43  ;;  %3014 = vmatpush.msra.mxu0 %v2552_v28  ;;  %v2348_v60 = vadd.f32 %v2347_v54, %v2328_v23  ;;  %v2753_v43 = vld [vmem:[#allocation20 + $0x800] sm:$0xff]  ;;  %v2807_v28 = vld [vmem:[#allocation20 + $0x9b0] sm:$0xff]  ;;  %v2654_v13 = vld [vmem:[#allocation20 + $0x4e8] sm:$0xff] }
 0x2f6   :  { %3035 = vmatpush.msrb.mxu1 %v2597_v48  ;;  %3041 = vmatpush.msra.mxu2 %v2687_v17  ;;  %v2750_v48 = vld [vmem:[#allocation20 + $0x7e8] sm:$0xff]  ;;  %v2583_v23 = vld [vmem:[#allocation20 + $0x2b0] sm:$0xff] }
 0x2f7   :  { %3066 = vmatpush.msra.mxu3 %v2720_v46  ;;  %3015 = vmatpush.msra.mxu0 %v2549_v8  ;;  %v2368_v36 = vadd.f32 %v2367_v40, %v2348_v60  ;;  %v350_v50 = vpop.xlane.xlu0 %349  ;;  %v2804_v46 = vld [vmem:[#allocation20 + $0x998] sm:$0xff]  ;;  %v2666_v8 = vld [vmem:[#allocation20 + $0x548] sm:$0xff]  ;;  %v2747_v54 = vld [vmem:[#allocation20 + $0x7d0] sm:$0xff] }
 0x2f8   :  { %3036 = vmatpush.msrb.mxu1 %v2594_v56  ;;  %3042 = vmatpush.msra.mxu2 %v2684_v18  ;;  %v2801_v56 = vld [vmem:[#allocation20 + $0x980] sm:$0xff]  ;;  %v2744_v60 = vld [vmem:[#allocation20 + $0x7b8] sm:$0xff]  ;;  %v2798_v40 = vld [vmem:[#allocation20 + $0x968] sm:$0xff] }
 0x2f9   :  { %3067 = vmatpush.msra.mxu3 %v2717_v58  ;;  %3016 = vmatpush.msra.mxu0 %v2546_v59  ;;  %v4241_v9 = vmax.f32 %v2368_v36, 0.0  ;;  %v3459_v58 = vmul.f32 -1.442695, %v350_v50  ;;  %v2580_v59 = vld [vmem:[#allocation20 + $0x298] sm:$0xff]  ;;  %v2741_v36 = vld [vmem:[#allocation20 + $0x7a0] sm:$0xff]  ;;  %v2651_v16 = vld [vmem:[#allocation20 + $0x4d0] sm:$0xff] }
 0x2fa   :  { %3017 = vmatmul.f32.vlgmr.msra.gmra.mxu0 %v4212_v0  ;;  %3043 = vmatpush.msra.mxu2 %v2681_v5  ;;  %v2688_v18 = vld [vmem:[#allocation20 + $0x5f8] sm:$0xff]  ;;  %v2631_v5 = vld [vmem:[#allocation20 + $0x430] sm:$0xff] }
 0x2fb   :  { %3068 = vmatpush.msra.mxu3 %v2714_v62  ;;  %3081 = vmatpush.msrb.mxu0 %v2783_v63  ;;  %v3458_v62 = vmul.f32 -1.442695, %v347_v45  ;;  %v2577_v63 = vld [vmem:[#allocation20 + $0x280] sm:$0xff]  ;;  %3498 = vpow2.f32 %v3459_v58  ;;  %v2616_v50 = vld [vmem:[#allocation20 + $0x3b8] sm:$0xff]  ;;  %v2667_v58 = vld [vmem:[#allocation20 + $0x550] sm:$0xff] }
 0x2fc   :  { %2957 = vmatmul.f32.vlgmr.msra.gmra.mxu1 %v4241_v9  ;;  %3044 = vmatpush.msra.mxu2 %v2678_v21  ;;  %v2645_v45 = vld [vmem:[#allocation20 + $0x4a0] sm:$0xff]  ;;  %v2628_v21 = vld [vmem:[#allocation20 + $0x418] sm:$0xff] }
 0x2fd   :  { %3069 = vmatpush.msra.mxu3 %v2711_v2  ;;  %3082 = vmatpush.msrb.mxu0 %v2780_v3  ;;  %v2657_v2 = vld [vmem:[#allocation20 + $0x500] sm:$0xff]  ;;  %v2574_v3 = vld [vmem:[#allocation20 + $0x268] sm:$0xff]  ;;  %3500 = vpow2.f32 %v3458_v62  ;;  %v2664_v62 = vld [vmem:[#allocation20 + $0x538] sm:$0xff] }
 0x2fe   :  { %3101 = vmatpush.msra.mxu1 %v2831_v19  ;;  %3045 = vmatpush.msra.mxu2 %v2675_v32  ;;  %v2738_v19 = vld [vmem:[#allocation20 + $0x788] sm:$0xff]  ;;  %v2556_v32 = vld [vmem:[#allocation20 + $0x1d8] sm:$0xff] }
 0x2ff   :  { %3070 = vmatpush.msra.mxu3 %v2708_v7  ;;  %3083 = vmatpush.msrb.mxu0 %v2777_v38  ;;  %v2571_v7 = vld [vmem:[#allocation20 + $0x250] sm:$0xff]  ;;  %v2640_v38 = vld [vmem:[#allocation20 + $0x478] sm:$0xff] }
 0x300   :  { %3102 = vmatpush.msra.mxu1 %v2828_v12  ;;  %3046 = vmatpush.msra.mxu2 %v2672_v42  ;;  %v2789_v12 = vld [vmem:[#allocation20 + $0x920] sm:$0xff] }
 0x301   :  { %3071 = vmatpush.msra.mxu3 %v2705_v51  ;;  %3084 = vmatpush.msrb.mxu0 %v2774_v14  ;;  %v2568_v51 = vld [vmem:[#allocation20 + $0x238] sm:$0xff]  ;;  %v2637_v14 = vld [vmem:[#allocation20 + $0x460] sm:$0xff]  ;;  %v3499_v17 = vpop.eup %3498 }
 0x302   :  { %3103 = vmatpush.msra.mxu1 %v2825_v15  ;;  %3047 = vmatpush.msra.mxu2 %v2669_v44  ;;  %v2786_v15 = vld [vmem:[#allocation20 + $0x908] sm:$0xff]  ;;  %v2673_v44 = vld [vmem:[#allocation20 + $0x580] sm:$0xff] }
 0x303   :  { %3072 = vmatpush.msra.mxu3 %v2702_v53  ;;  %3085 = vmatpush.msrb.mxu0 %v2771_v10  ;;  %v2565_v53 = vld [vmem:[#allocation20 + $0x220] sm:$0xff]  ;;  %v2634_v10 = vld [vmem:[#allocation20 + $0x448] sm:$0xff] }
 0x304   :  { %3037 = vmatmul.f32.vlgmr.msrb.gmra.mxu1 %v4232_v29  ;;  %3048 = vmatpush.msra.mxu2 %v2666_v8  ;;  %v2670_v8 = vld [vmem:[#allocation20 + $0x568] sm:$0xff] }
 0x305   :  { %3073 = vmatpush.msra.mxu3 %v2699_v52  ;;  %3086 = vmatpush.msrb.mxu0 %v2768_v11  ;;  %v2648_v52 = vld [vmem:[#allocation20 + $0x4b8] sm:$0xff]  ;;  %v3501_v11 = vpop.eup %3500 }
 0x306   :  { %3104 = vmatpush.msra.mxu1 %v2822_v22  ;;  %3049 = vmatpush.msra.mxu2 %v2663_v57  ;;  %v2562_v22 = vld [vmem:[#allocation20 + $0x208] sm:$0xff] }
 0x307   :  { %3074 = vmatpush.msra.mxu3 %v2696_v24  ;;  %3087 = vmatpush.msrb.mxu0 %v2765_v25  ;;  %v4247_v24 = vadd.f32 1.0, %v3499_v17  ;;  %v2685_v25 = vld [vmem:[#allocation20 + $0x5e0] sm:$0xff] }
 0x308   :  { %3105 = vmatpush.msra.mxu1 %v2819_v26  ;;  %3050 = vmatpush.msra.mxu2 %v2660_v61  ;;  %v2559_v26 = vld [vmem:[#allocation20 + $0x1f0] sm:$0xff]  ;;  %v2610_v61 = vld [vmem:[#allocation20 + $0x388] sm:$0xff]  ;;  %v2769_v17 = vld [vmem:[#allocation20 + $0x880] sm:$0xff] }
 0x309   :  { %3075 = vmatpush.msra.mxu3 %v2693_v1  ;;  %3088 = vmatpush.msrb.mxu0 %v2762_v4  ;;  %v4249_v1 = vadd.f32 1.0, %v3501_v11  ;;  %v2682_v4 = vld [vmem:[#allocation20 + $0x5c8] sm:$0xff]  ;;  %3502 = vrcp.f32 %v4247_v24  ;;  %vm379_vm6 = vweird.f32 %v4247_v24 }
 0x30a   :  { %3106 = vmatpush.msra.mxu1 %v2816_v30  ;;  %3051 = vmatpush.msra.mxu2 %v2657_v2  ;;  %v2642_v30 = vld [vmem:[#allocation20 + $0x488] sm:$0xff] }
 0x30b   :  { %3076 = vmatpush.msra.mxu3 %v2690_v33  ;;  %3089 = vmatpush.msrb.mxu0 %v2759_v35  ;;  %v2625_v33 = vld [vmem:[#allocation20 + $0x400] sm:$0xff]  ;;  %v2679_v35 = vld [vmem:[#allocation20 + $0x5b0] sm:$0xff]  ;;  %3504 = vrcp.f32 %v4249_v1  ;;  %v2407_v57 = vpop.f32.mrf.mxu3  ;;  %vm364_vm8 = vweird.f32 %v4249_v1 }
 0x30c   :  { %3077 = vmatmul.f32.vlgmr.msra.gmra.mxu3 %v4235_v49  ;;  %3107 = vmatpush.msra.mxu1 %v2813_v37  ;;  %v3506_v37 = vld [vmem:[#allocation19] sm:$0xff] }
 0x30d   :  { %3141 = vmatpush.msrb.mxu3 %v2592_v27  ;;  %3090 = vmatpush.msrb.mxu0 %v2756_v39  ;;  %v1642_v27 = vperm.slane %v3506_v37, 6  ;;  %v2553_v39 = vld [vmem:[#allocation20 + $0x1c0] sm:$0xff]  ;;  %v383_v37 = vand.u32 2147483647, %v4247_v24 }
 0x30e   :  { %3108 = vmatpush.msra.mxu1 %v2810_v41  ;;  %3052 = vmatpush.msra.mxu2 %v2654_v13  ;;  %v2622_v41 = vld [vmem:[#allocation20 + $0x3e8] sm:$0xff]  ;;  %v2772_v13 = vld [vmem:[#allocation20 + $0x898] sm:$0xff] }
 0x30f   :  { %3142 = vmatpush.msrb.mxu3 %v2589_v31  ;;  %3091 = vmatpush.msrb.mxu0 %v2753_v43  ;;  %v2676_v31 = vld [vmem:[#allocation20 + $0x598] sm:$0xff]  ;;  %v2550_v43 = vld [vmem:[#allocation20 + $0x1a8] sm:$0xff]  ;;  %vm384_vm10 = vcmp.eq.f32.partialorder %v383_v37, 8.507059e+37  ;;  %v2787_v37 = vld [vmem:[#allocation20 + $0x910] sm:$0xff] }
 0x310   :  { %3109 = vmatpush.msra.mxu1 %v2807_v28  ;;  %3053 = vmatpush.msra.mxu2 %v2651_v16  ;;  %v2619_v28 = vld [vmem:[#allocation20 + $0x3d0] sm:$0xff] }
 0x311   :  { %3143 = vmatpush.msrb.mxu3 %v2586_v47  ;;  %3092 = vmatpush.msrb.mxu0 %v2750_v48  ;;  %v2547_v48 = vld [vmem:[#allocation20 + $0x190] sm:$0xff] }
 0x312   :  { %3110 = vmatpush.msra.mxu1 %v2804_v46  ;;  %3054 = vmatpush.msra.mxu2 %v2648_v52  ;;  %v2387_v42 = vpop.f32.mrf.mxu2  ;;  %v4253_v46 = vpop.eup %3502  ;;  %v2652_v52 = vld [vmem:[#allocation20 + $0x4d8] sm:$0xff] }
 0x313   :  { %3144 = vmatpush.msrb.mxu3 %v2583_v23  ;;  %3093 = vmatpush.msrb.mxu0 %v2747_v54  ;;  %v2388_v47 = vadd.f32 %v2387_v42, %v1642_v27  ;;  %v2784_v23 = vld [vmem:[#allocation20 + $0x8f8] sm:$0xff]  ;;  %v2613_v54 = vld [vmem:[#allocation20 + $0x3a0] sm:$0xff]  ;;  %vm380_vm4 = vweird.f32 %v4253_v46  ;;  %v370_v42 = vand.u32 2147483648, %v4249_v1 }
 0x314   :  { %3111 = vmatpush.msra.mxu1 %v2801_v56  ;;  %3055 = vmatpush.msra.mxu2 %v2645_v45  ;;  %v4255_v56 = vpop.eup %3504  ;;  %vm4277_vm7 = vmor %vm379_vm6, %vm380_vm4 }
 0x315   :  { %3145 = vmatpush.msrb.mxu3 %v2580_v59  ;;  %3094 = vmatpush.msrb.mxu0 %v2744_v60  ;;  %v375_v59 = vmul.f32 %v4253_v46, %v4247_v24  ;;  %v2408_v60 = vadd.f32 %v2407_v57, %v2388_v47  ;;  %v2427_v2 = vpop.f32.mrf.mxu0  ;;  %vm365_vm5 = vweird.f32 %v4255_v56  ;;  %v2826_v47 = vld [vmem:[#allocation20 + $0xa48] sm:$0xff]  ;;  %v371_v57 = vor.u32 1.1754944e-38, %v370_v42  ;;  %v3267_v42 = vld [vmem:[#allocation23 + $0x18] sm:$0xff] }
 0x316   :  { %3112 = vmatpush.msra.mxu1 %v2798_v40  ;;  %3056 = vmatpush.msra.mxu2 %v2642_v30  ;;  %v2781_v40 = vld [vmem:[#allocation20 + $0x8e0] sm:$0xff]  ;;  %v2763_v30 = vld [vmem:[#allocation20 + $0x850] sm:$0xff]  ;;  %vm4290_vm9 = vmor %vm364_vm8, %vm365_vm5 }
 0x317   :  { %3146 = vmatpush.msrb.mxu3 %v2577_v63  ;;  %3095 = vmatpush.msrb.mxu0 %v2741_v36  ;;  %v360_v63 = vmul.f32 %v4255_v56, %v4249_v1  ;;  %v2778_v36 = vld [vmem:[#allocation20 + $0x8c8] sm:$0xff] }
 0x318   :  { %3113 = vmatpush.msra.mxu1 %v2795_v34  ;;  %v2607_v34 = vld [vmem:[#allocation20 + $0x370] sm:$0xff] }
 0x319   :  { %3147 = vmatpush.msrb.mxu3 %v2574_v3  ;;  %3096 = vmatpush.msrb.mxu0 %v2738_v19  ;;  %v2661_v3 = vld [vmem:[#allocation20 + $0x520] sm:$0xff]  ;;  %v376_v19 = vsub.f32 1.0, %v375_v59  ;;  %v2538_v59 = vld [vmem:[#allocation20 + $0x148] sm:$0xff] }
 0x31a   :  { %3097 = vmatmul.f32.vlgmr.msrb.gmra.mxu0 %v4241_v9  ;;  %3114 = vmatpush.msra.mxu1 %v2792_v6  ;;  %v2428_v6 = vadd.f32 %v2427_v2, %v2408_v60  ;;  %v2751_v60 = vld [vmem:[#allocation20 + $0x7f0] sm:$0xff]  ;;  %v2745_v2 = vld [vmem:[#allocation20 + $0x7c0] sm:$0xff] }
 0x31b   :  { %3148 = vmatpush.msrb.mxu3 %v2571_v7  ;;  %3161 = vmatpush.msra.mxu0 %v2640_v38  ;;  %v2775_v7 = vld [vmem:[#allocation20 + $0x8b0] sm:$0xff]  ;;  %v2658_v38 = vld [vmem:[#allocation20 + $0x508] sm:$0xff]  ;;  %v377_v16 = vmul.f32 %v4253_v46, %v376_v19  ;;  %v3508_v19 = vld [vmem:[#allocation3] sm:$0xff] }
 0x31c   :  { %3115 = vmatpush.msra.mxu1 %v2789_v12  ;;  %v361_v12 = vsub.f32 1.0, %v360_v63  ;;  %v2817_v63 = vld [vmem:[#allocation20 + $0xa00] sm:$0xff] }
 0x31d   :  { %3149 = vmatpush.msrb.mxu3 %v2568_v51  ;;  %3162 = vmatpush.msra.mxu0 %v2637_v14  ;;  %v2601_v51 = vld [vmem:[#allocation20 + $0x340] sm:$0xff]  ;;  %v2447_v14 = vpop.f32.mrf.mxu1 }
 0x31e   :  { %3116 = vmatpush.msra.mxu1 %v2786_v15  ;;  %v2655_v15 = vld [vmem:[#allocation20 + $0x4f0] sm:$0xff]  ;;  %v362_v11 = vmul.f32 %v4255_v56, %v361_v12 }
 0x31f   :  { %3150 = vmatpush.msrb.mxu3 %v2565_v53  ;;  %3163 = vmatpush.msra.mxu0 %v2634_v10  ;;  %v2598_v53 = vld [vmem:[#allocation20 + $0x328] sm:$0xff]  ;;  %v2448_v10 = vadd.f32 %v2447_v14, %v2428_v6  ;;  %v2808_v14 = vld [vmem:[#allocation20 + $0x9b8] sm:$0xff] }
 0x320   :  { %3181 = vmatpush.msrb.mxu1 %v2688_v18 }
 0x321   :  { %3151 = vmatpush.msrb.mxu3 %v2562_v22  ;;  %3164 = vmatpush.msra.mxu0 %v2631_v5  ;;  %v2766_v22 = vld [vmem:[#allocation20 + $0x868] sm:$0xff] }
 0x322   :  { %3182 = vmatpush.msrb.mxu1 %v2685_v25  ;;  %v2595_v25 = vld [vmem:[#allocation20 + $0x310] sm:$0xff] }
 0x323   :  { %3152 = vmatpush.msrb.mxu3 %v2559_v26  ;;  %3165 = vmatpush.msra.mxu0 %v2628_v21  ;;  %v2649_v26 = vld [vmem:[#allocation20 + $0x4c0] sm:$0xff]  ;;  %v378_v21 = vadd.f32 %v4253_v46, %v377_v16  ;;  %v2526_v16 = vld [vmem:[#allocation20 + $0xe8] sm:$0xff] }
 0x324   :  { %3183 = vmatpush.msrb.mxu1 %v2682_v4 }
 0x325   :  { %3153 = vmatpush.msrb.mxu3 %v2556_v32  ;;  %3166 = vmatpush.msra.mxu0 %v2625_v33  ;;  %v2832_v32 = vld [vmem:[#allocation20 + $0xa78] sm:$0xff]  ;;  %v385_v33 = vand.u32 2147483648, %v4247_v24  ;;  %v368_v24 = vand.u32 2147483647, %v4249_v1  ;;  %v2541_v1 = vld [vmem:[#allocation20 + $0x160] sm:$0xff] }
 0x326   :  { %3184 = vmatpush.msrb.mxu1 %v2679_v35  ;;  %v363_v35 = vadd.f32 %v4255_v56, %v362_v11 }
 0x327   :  { %3154 = vmatpush.msrb.mxu3 %v2553_v39  ;;  %3167 = vmatpush.msra.mxu0 %v2622_v41  ;;  %v2760_v39 = vld [vmem:[#allocation20 + $0x838] sm:$0xff]  ;;  %v2829_v41 = vld [vmem:[#allocation20 + $0xa60] sm:$0xff]  ;;  %vm369_vm11 = vcmp.eq.f32.partialorder %v368_v24, 8.507059e+37  ;;  %v2499_v24 = vld [vmem:[#allocation20 + $0x10] sm:$0xff] }
 0x328   :  { %3185 = vmatpush.msrb.mxu1 %v2676_v31  ;;  %v2502_v31 = vld [vmem:[#allocation20 + $0x28] sm:$0xff] }
 0x329   :  { %3155 = vmatpush.msrb.mxu3 %v2550_v43  ;;  %3168 = vmatpush.msra.mxu0 %v2619_v28  ;;  %v2544_v43 = vld [vmem:[#allocation20 + $0x178] sm:$0xff]  ;;  %v2646_v28 = vld [vmem:[#allocation20 + $0x4a8] sm:$0xff] }
 0x32a   :  { %3186 = vmatpush.msrb.mxu1 %v2673_v44  ;;  %v2757_v44 = vld [vmem:[#allocation20 + $0x820] sm:$0xff] }
 0x32b   :  { %3156 = vmatpush.msrb.mxu3 %v2547_v48  ;;  %3169 = vmatpush.msra.mxu0 %v2616_v50  ;;  %v386_v50 = vor.u32 1.1754944e-38, %v385_v33  ;;  %v2508_v33 = vld [vmem:[#allocation20 + $0x58] sm:$0xff] }
 0x32c   :  { %3157 = vmatmul.f32.vlgmr.msrb.gmra.mxu3 %v4212_v0  ;;  %3187 = vmatpush.msrb.mxu1 %v2670_v8  ;;  %v2604_v0 = vld [vmem:[#allocation20 + $0x358] sm:$0xff]  ;;  %v2643_v8 = vld [vmem:[#allocation20 + $0x490] sm:$0xff] }
 0x32d   :  { %3221 = vmatpush.msra.mxu3 %v2784_v23  ;;  %3170 = vmatpush.msra.mxu0 %v2613_v54  ;;  %v2487_v45 = vpop.f32.mrf.mxu3  ;;  %v2754_v23 = vld [vmem:[#allocation20 + $0x808] sm:$0xff]  ;;  %v2823_v54 = vld [vmem:[#allocation20 + $0xa30] sm:$0xff] }
 0x32e   :  { %3188 = vmatpush.msrb.mxu1 %v2667_v58 }
 0x32f   :  { %3222 = vmatpush.msra.mxu3 %v2781_v40  ;;  %3171 = vmatpush.msra.mxu0 %v2610_v61  ;;  %v2820_v40 = vld [vmem:[#allocation20 + $0xa18] sm:$0xff] }
 0x330   :  { %3189 = vmatpush.msrb.mxu1 %v2664_v62  ;;  %v2535_v62 = vld [vmem:[#allocation20 + $0x130] sm:$0xff] }
 0x331   :  { %3223 = vmatpush.msra.mxu3 %v2778_v36  ;;  %3172 = vmatpush.msra.mxu0 %v2607_v34  ;;  %v3507_v36 = vld [vmem:[#allocation3 + $0x8] sm:$0xff] }
 0x332   :  { %3190 = vmatpush.msrb.mxu1 %v2661_v3  ;;  %v2814_v3 = vld [vmem:[#allocation20 + $0x9e8] sm:$0xff] }
 0x333   :  { %3224 = vmatpush.msra.mxu3 %v2775_v7  ;;  %3173 = vmatpush.msra.mxu0 %v2604_v0  ;;  %v2532_v7 = vld [vmem:[#allocation20 + $0x118] sm:$0xff]  ;;  %v2742_v0 = vld [vmem:[#allocation20 + $0x7a8] sm:$0xff] }
 0x334   :  { %3191 = vmatpush.msrb.mxu1 %v2658_v38  ;;  %v2467_v18 = vpop.f32.mrf.mxu2  ;;  %v2811_v38 = vld [vmem:[#allocation20 + $0x9d0] sm:$0xff] }
 0x335   :  { %3225 = vmatpush.msra.mxu3 %v2772_v13  ;;  %3174 = vmatpush.msra.mxu0 %v2601_v51  ;;  %v2468_v5 = vadd.f32 %v2467_v18, %v2448_v10  ;;  %v2529_v13 = vld [vmem:[#allocation20 + $0x100] sm:$0xff]  ;;  %v2739_v51 = vld [vmem:[#allocation20 + $0x790] sm:$0xff]  ;;  %v2802_v18 = vld [vmem:[#allocation20 + $0x988] sm:$0xff] }
 0x336   :  { %3192 = vmatpush.msrb.mxu1 %v2655_v15 }
 0x337   :  { %3226 = vmatpush.msra.mxu3 %v2769_v17  ;;  %3175 = vmatpush.msra.mxu0 %v2598_v53  ;;  %v2488_v4 = vadd.f32 %v2487_v45, %v2468_v5  ;;  %v2805_v53 = vld [vmem:[#allocation20 + $0x9a0] sm:$0xff]  ;;  %v2796_v45 = vld [vmem:[#allocation20 + $0x958] sm:$0xff] }
 0x338   :  { %3193 = vmatpush.msrb.mxu1 %v2652_v52  ;;  %v2520_v52 = vld [vmem:[#allocation20 + $0xb8] sm:$0xff]  ;;  %v2517_v5 = vld [vmem:[#allocation20 + $0xa0] sm:$0xff] }
 0x339   :  { %3227 = vmatpush.msra.mxu3 %v2766_v22  ;;  %3176 = vmatpush.msra.mxu0 %v2595_v25  ;;  %v4271_v27 = vmax.f32 %v2488_v4, 0.0  ;;  %v2799_v22 = vld [vmem:[#allocation20 + $0x970] sm:$0xff]  ;;  %v2793_v4 = vld [vmem:[#allocation20 + $0x940] sm:$0xff] }
 0x33a   :  { %3177 = vmatmul.f32.vlgmr.msra.gmra.mxu0 %v4232_v29  ;;  %3194 = vmatpush.msrb.mxu1 %v2649_v26  ;;  %v382_v29 = vsel %vm4277_vm7, %v4253_v46, %v378_v21  ;;  %v367_v46 = vsel %vm4290_vm9, %v4255_v56, %v363_v35  ;;  %v2748_v56 = vld [vmem:[#allocation20 + $0x7d8] sm:$0xff]  ;;  %v2514_v26 = vld [vmem:[#allocation20 + $0x88] sm:$0xff] }
 0x33b   :  { %3228 = vmatpush.msra.mxu3 %v2763_v30  ;;  %3241 = vmatpush.msrb.mxu0 %v2832_v32  ;;  %v387_v58 = vsel %vm384_vm10, %v386_v50, %v382_v29  ;;  %v372_v61 = vsel %vm369_vm11, %v371_v57, %v367_v46  ;;  %v2511_v30 = vld [vmem:[#allocation20 + $0x70] sm:$0xff]  ;;  %v2790_v32 = vld [vmem:[#allocation20 + $0x928] sm:$0xff]  ;;  %v2721_v57 = vld [vmem:[#allocation20 + $0x700] sm:$0xff] }
 0x33c   :  { %2977 = vmatmul.f32.vlgmr.msrb.gmra.mxu2 %v4271_v27  ;;  %3117 = vmatmul.f32.vlgmr.msra.gmra.mxu1 %v4271_v27  ;;  %v390_v34 = vmul.f32 %v3507_v36, %v387_v58  ;;  %v389_v6 = vmul.f32 %v3508_v19, %v372_v61  ;;  %v3264_v50 = vld [vmem:[#allocation23] sm:$0xff]  ;;  %v2703_v61 = vld [vmem:[#allocation20 + $0x670] sm:$0xff]  ;;  %v3280_v19 = vld [vmem:[%s4497_s14 + $0x60] sm:$0xff] }
 0x33d   :  { %3229 = vmatpush.msra.mxu3 %v2760_v39  ;;  %3242 = vmatpush.msrb.mxu0 %v2829_v41  ;;  %v2505_v39 = vld [vmem:[#allocation20 + $0x40] sm:$0xff]  ;;  %v2730_v46 = vld [vmem:[#allocation20 + $0x748] sm:$0xff] }
 0x33e   :  { %3121 = vmatpush.msrb.mxu2 %v2544_v43  ;;  %3195 = vmatpush.msrb.mxu1 %v2646_v28  ;;  %v398_v12 = vsel %vm282_vm0, %v390_v34, 0.0  ;;  %v391_v15 = vsel %vm282_vm0, %v389_v6, 0.0  ;;  %v3266_v28 = vld [vmem:[#allocation23 + $0x10] sm:$0xff]  ;;  %v2718_v58 = vld [vmem:[#allocation20 + $0x6e8] sm:$0xff] }
 0x33f   :  { %3230 = vmatpush.msra.mxu3 %v2757_v44  ;;  %3243 = vmatpush.msrb.mxu0 %v2826_v47  ;;  %v399_v17 = vrot.slane %v398_v12, 4  ;;  %v392_v10 = vrot.slane %v391_v15, 4  ;;  %v3265_v44 = vld [vmem:[#allocation23 + $0x8] sm:$0xff]  ;;  %v2736_v47 = vld [vmem:[#allocation20 + $0x778] sm:$0xff] }
 0x340   :  { %3122 = vmatpush.msrb.mxu2 %v2541_v1  ;;  %3196 = vmatpush.msrb.mxu1 %v2643_v8  ;;  %v2733_v1 = vld [vmem:[#allocation20 + $0x760] sm:$0xff]  ;;  %v3282_v36 = vld [vmem:[%s4497_s14 + $0x70] sm:$0xff]  ;;  %v3279_v6 = vld [vmem:[%s4497_s14 + $0x58] sm:$0xff] }
 0x341   :  { %3231 = vmatpush.msra.mxu3 %v2754_v23  ;;  %3244 = vmatpush.msrb.mxu0 %v2823_v54  ;;  %v400_v11 = vadd.f32 %v399_v17, %v398_v12  ;;  %v393_v25 = vadd.f32 %v392_v10, %v391_v15  ;;  %v2727_v23 = vld [vmem:[#allocation20 + $0x730] sm:$0xff]  ;;  %v2724_v54 = vld [vmem:[#allocation20 + $0x718] sm:$0xff]  ;;  %v2694_v34 = vld [vmem:[#allocation20 + $0x628] sm:$0xff] }
 0x342   :  { %3123 = vmatpush.msrb.mxu2 %v2538_v59  ;;  %v2715_v59 = vld [vmem:[#allocation20 + $0x6d0] sm:$0xff]  ;;  %v3273_v15 = vld [vmem:[%s4497_s14 + $0x28] sm:$0xff]  ;;  %v3272_v17 = vld [vmem:[%s4497_s14 + $0x20] sm:$0xff] }
 0x343   :  { %3232 = vmatpush.msra.mxu3 %v2751_v60  ;;  %3245 = vmatpush.msrb.mxu0 %v2820_v40  ;;  %v401_v21 = vrot.slane %v400_v11, 2  ;;  %v2709_v60 = vld [vmem:[#allocation20 + $0x6a0] sm:$0xff]  ;;  %v2706_v40 = vld [vmem:[#allocation20 + $0x688] sm:$0xff]  ;;  %v3275_v12 = vld [vmem:[%s4497_s14 + $0x38] sm:$0xff] }
 0x344   :  { %3124 = vmatpush.msrb.mxu2 %v2535_v62  ;;  %3197 = vmatmul.f32.vlgmr.msrb.gmra.mxu1 %v4228_v55  ;;  %v2700_v62 = vld [vmem:[#allocation20 + $0x658] sm:$0xff]  ;;  %v3294_v10 = vld [vmem:[%s4497_s14 + $0xd0] sm:$0xff] }
 0x345   :  { %3233 = vmatpush.msra.mxu3 %v2748_v56  ;;  %3246 = vmatpush.msrb.mxu0 %v2817_v63  ;;  %v402_v35 = vadd.f32 %v401_v21, %v400_v11  ;;  %v2697_v56 = vld [vmem:[#allocation20 + $0x640] sm:$0xff]  ;;  %v3283_v63 = vld [vmem:[%s4497_s14 + $0x78] sm:$0xff] }
 0x346   :  { %3057 = vmatmul.f32.vlgmr.msra.gmra.mxu2 %v4228_v55  ;;  %v2523_v55 = vld [vmem:[#allocation20 + $0xd0] sm:$0xff]  ;;  %3316 = vmatpush.msra.mxu1 %v3283_v63  ;;  %v3269_v11 = vld [vmem:[%s4497_s14 + $0x8] sm:$0xff] }
 0x347   :  { %3234 = vmatpush.msra.mxu3 %v2745_v2  ;;  %3247 = vmatpush.msrb.mxu0 %v2814_v3  ;;  %v403_v43 = vrot.slane %v402_v35, 1  ;;  %v3281_v2 = vld [vmem:[%s4497_s14 + $0x68] sm:$0xff]  ;;  %v2691_v3 = vld [vmem:[#allocation20 + $0x610] sm:$0xff] }
 0x348   :  { %3125 = vmatpush.msrb.mxu2 %v2532_v7  ;;  %3317 = vmatpush.msra.mxu1 %v3282_v36  ;;  %v3278_v7 = vld [vmem:[%s4497_s14 + $0x50] sm:$0xff]  ;;  %v3289_v21 = vld [vmem:[%s4497_s14 + $0xa8] sm:$0xff]  ;;  %v3311_v36 = vld [vmem:[%s4497_s14 + $0x158] sm:$0xff] }
 0x349   :  { %3235 = vmatpush.msra.mxu3 %v2742_v0  ;;  %3248 = vmatpush.msrb.mxu0 %v2811_v38  ;;  %v404_v48 = vadd.f32 %v403_v43, %v402_v35  ;;  %v3277_v0 = vld [vmem:[%s4497_s14 + $0x48] sm:$0xff]  ;;  %v3299_v38 = vld [vmem:[%s4497_s14 + $0xf8] sm:$0xff]  ;;  %v3286_v35 = vld [vmem:[%s4497_s14 + $0x90] sm:$0xff] }
 0x34a   :  { %3126 = vmatpush.msrb.mxu2 %v2529_v13  ;;  %3318 = vmatpush.msra.mxu1 %v3281_v2  ;;  %v3298_v13 = vld [vmem:[%s4497_s14 + $0xf0] sm:$0xff] }
 0x34b   :  { %3236 = vmatpush.msra.mxu3 %v2739_v51  ;;  %3249 = vmatpush.msrb.mxu0 %v2808_v14  ;;  %v3274_v51 = vld [vmem:[%s4497_s14 + $0x30] sm:$0xff]  ;;  %v3297_v14 = vld [vmem:[%s4497_s14 + $0xe8] sm:$0xff] }
 0x34c   :  { %3237 = vmatmul.f32.vlgmr.msra.gmra.mxu3 %v4241_v9  ;;  %3127 = vmatpush.msrb.mxu2 %v2526_v16  ;;  %v394_v9 = vrot.slane %v393_v25, 2  ;;  %v3296_v16 = vld [vmem:[%s4497_s14 + $0xe0] sm:$0xff] }
 0x34d   :  { %3250 = vmatpush.msrb.mxu0 %v2805_v53  ;;  %3319 = vmatpush.msra.mxu1 %v3280_v19  ;;  %v3295_v53 = vld [vmem:[%s4497_s14 + $0xd8] sm:$0xff] }
 0x34e   :  { %3128 = vmatpush.msrb.mxu2 %v2523_v55  ;;  %v395_v41 = vadd.f32 %v394_v9, %v393_v25  ;;  %v3271_v55 = vld [vmem:[%s4497_s14 + $0x18] sm:$0xff]  ;;  %v3288_v9 = vld [vmem:[%s4497_s14 + $0xa0] sm:$0xff] }
 0x34f   :  { %3251 = vmatpush.msrb.mxu0 %v2802_v18  ;;  %3320 = vmatpush.msra.mxu1 %v3279_v6  ;;  %v3270_v18 = vld [vmem:[%s4497_s14 + $0x10] sm:$0xff]  ;;  %v3291_v25 = vld [vmem:[%s4497_s14 + $0xb8] sm:$0xff] }
 0x350   :  { %3129 = vmatpush.msrb.mxu2 %v2520_v52  ;;  %v396_v29 = vrot.slane %v395_v41, 1  ;;  %v3293_v52 = vld [vmem:[%s4497_s14 + $0xc8] sm:$0xff] }
 0x351   :  { %3252 = vmatpush.msrb.mxu0 %v2799_v22  ;;  %3321 = vmatpush.msra.mxu1 %v3278_v7  ;;  %v3292_v22 = vld [vmem:[%s4497_s14 + $0xc0] sm:$0xff]  ;;  %v3309_v7 = vld [vmem:[%s4497_s14 + $0x148] sm:$0xff] }
 0x352   :  { %3130 = vmatpush.msrb.mxu2 %v2517_v5  ;;  %v397_v8 = vadd.f32 %v396_v29, %v395_v41  ;;  %v3268_v5 = vld [vmem:[%s4497_s14] sm:$0xff] }
 0x353   :  { %3253 = vmatpush.msrb.mxu0 %v2796_v45  ;;  %3322 = vmatpush.msra.mxu1 %v3277_v0  ;;  %v3290_v45 = vld [vmem:[%s4497_s14 + $0xb0] sm:$0xff] }
 0x354   :  { %3131 = vmatpush.msrb.mxu2 %v2514_v26  ;;  %v4385_v26 = vld [vmem:[#allocation22] sm:$0x7]  ;;  %v2898_v41 = vpop.f32.mrf.mxu2 }
 0x355   :  { %3254 = vmatpush.msrb.mxu0 %v2793_v4  ;;  %v2835_v4 = vperm.slane %v4385_v26, 0 }
 0x356   :  { %3132 = vmatpush.msrb.mxu2 %v2511_v30  ;;  %v2858_v30 = vpop.f32.mrf.mxu0 }
 0x357   :  { %3255 = vmatpush.msrb.mxu0 %v2790_v32  ;;  %v3287_v32 = vld [vmem:[%s4497_s14 + $0x98] sm:$0xff] }
 0x358   :  { %3133 = vmatpush.msrb.mxu2 %v2508_v33  ;;  %v2859_v33 = vadd.f32 %v2858_v30, %v2835_v4 }
 0x359   :  { %3256 = vmatpush.msrb.mxu0 %v2787_v37  ;;  %v3285_v37 = vld [vmem:[%s4497_s14 + $0x88] sm:$0xff] }
 0x35a   :  { %3257 = vmatmul.f32.vlgmr.msrb.gmra.mxu0 %v4271_v27  ;;  %3134 = vmatpush.msrb.mxu2 %v2505_v39  ;;  %v3378_v27 = vsel %vm312_vm3, %v404_v48, %v397_v8  ;;  %v2878_v39 = vpop.f32.mrf.mxu1 }
 0x35b   :  { %3393 = vmatpush.msra.mxu0 %v3267_v42  ;;  %v3284_v42 = vld [vmem:[%s4497_s14 + $0x80] sm:$0xff] }
 0x35c   :  { %3135 = vmatpush.msrb.mxu2 %v2502_v31  ;;  %v2879_v31 = vadd.f32 %v2878_v39, %v2859_v33  ;;  %v3412_v39 = vld [vmem:[%s4499_s16 + $0x28] sm:$0xff] }
 0x35d   :  { %3394 = vmatpush.msra.mxu0 %v3266_v28  ;;  %v2918_v28 = vpop.f32.mrf.mxu3 }
 0x35e   :  { %3136 = vmatpush.msrb.mxu2 %v2499_v24  ;;  %v2899_v43 = vadd.f32 %v2898_v41, %v2879_v31  ;;  %v2938_v24 = vpop.f32.mrf.mxu0  ;;  %v3411_v41 = vld [vmem:[%s4499_s16 + $0x20] sm:$0xff]  ;;  %v3409_v31 = vld [vmem:[%s4499_s16 + $0x10] sm:$0xff] }
 0x35f   :  { %3395 = vmatpush.msra.mxu0 %v3265_v44  ;;  %3137 = vmatmul.f32.vlgmr.msrb.gmra.mxu2 %v4219_v20  ;;  %v2712_v20 = vld [vmem:[#allocation20 + $0x6b8] sm:$0xff] }
 0x360   :  { %3201 = vmatpush.msra.mxu2 %v2736_v47  ;;  %v2919_v29 = vadd.f32 %v2918_v28, %v2899_v43  ;;  %v3408_v43 = vld [vmem:[%s4499_s16 + $0x8] sm:$0xff]  ;;  %v3407_v28 = vld [vmem:[%s4499_s16] sm:$0xff] }
 0x361   :  { %3396 = vmatpush.msra.mxu0 %v3264_v50 }
 0x362   :  { %3202 = vmatpush.msra.mxu2 %v2733_v1  ;;  %3464 = vmatmul.msk.f32.vlgmr.msra.gmra.mxu0 %vm282_vm0, %v3378_v27  ;;  %v2939_v47 = vadd.f32 %v2938_v24, %v2919_v29  ;;  %v2836_v1 = vperm.slane %v4385_v26, 1 }
 0x364   :  { %3203 = vmatpush.msra.mxu2 %v2730_v46 }
 0x366   :  { %3204 = vmatpush.msra.mxu2 %v2727_v23 }
 0x368   :  { %3205 = vmatpush.msra.mxu2 %v2724_v54 }
 0x36a   :  { %3206 = vmatpush.msra.mxu2 %v2721_v57 }
 0x36c   :  { %3207 = vmatpush.msra.mxu2 %v2718_v58  ;;  %v3315_v58 = vld [vmem:[%s4497_s14 + $0x178] sm:$0xff] }
 0x36d   :  { %3356 = vmatpush.msrb.mxu3 %v3315_v58 }
 0x36e   :  { %3208 = vmatpush.msra.mxu2 %v2715_v59  ;;  %v3314_v59 = vld [vmem:[%s4497_s14 + $0x170] sm:$0xff] }
 0x36f   :  { %v2998_v27 = vpop.f32.mrf.mxu3  ;;  %3357 = vmatpush.msrb.mxu3 %v3314_v59 }
 0x370   :  { %3209 = vmatpush.msra.mxu2 %v2712_v20  ;;  %v2999_v54 = vadd.f32 %v2998_v27, %v2836_v1 }
 0x372   :  { %3210 = vmatpush.msra.mxu2 %v2709_v60  ;;  %v3313_v60 = vld [vmem:[%s4497_s14 + $0x168] sm:$0xff] }
 0x373   :  { %3358 = vmatpush.msrb.mxu3 %v3313_v60 }
 0x374   :  { %3211 = vmatpush.msra.mxu2 %v2706_v40 }
 0x376   :  { %3212 = vmatpush.msra.mxu2 %v2703_v61 }
 0x377   :  { %v3018_v23 = vpop.f32.mrf.mxu0 }
 0x378   :  { %3213 = vmatpush.msra.mxu2 %v2700_v62  ;;  %v3019_v20 = vadd.f32 %v3018_v23, %v2999_v54  ;;  %v3312_v62 = vld [vmem:[%s4497_s14 + $0x160] sm:$0xff] }
 0x379   :  { %v2958_v44 = vpop.f32.mrf.mxu1  ;;  %3359 = vmatpush.msrb.mxu3 %v3312_v62  ;;  %v3493_v23 = vld [vmem:[#allocation2] ss:$0 sm:$0xff] }
 0x37a   :  { %3214 = vmatpush.msra.mxu2 %v2697_v56  ;;  %v2959_v48 = vadd.f32 %v2958_v44, %v2939_v47 }
 0x37b   :  { %3360 = vmatpush.msrb.mxu3 %v3311_v36 }
 0x37c   :  { %3215 = vmatpush.msra.mxu2 %v2694_v34 }
 0x37e   :  { %3216 = vmatpush.msra.mxu2 %v2691_v3  ;;  %v3310_v3 = vld [vmem:[%s4497_s14 + $0x150] sm:$0xff] }
 0x37f   :  { %3217 = vmatmul.f32.vlgmr.msra.gmra.mxu2 %v4235_v49  ;;  %v3276_v49 = vld [vmem:[%s4497_s14 + $0x40] sm:$0xff]  ;;  %3361 = vmatpush.msrb.mxu3 %v3310_v3 }
 0x380   :  { %3323 = vmatpush.msra.mxu1 %v3276_v49  ;;  %3336 = vmatpush.msrb.mxu2 %v3299_v38  ;;  %v3308_v49 = vld [vmem:[%s4497_s14 + $0x140] sm:$0xff] }
 0x381   :  { %v3038_v57 = vpop.f32.mrf.mxu1  ;;  %3362 = vmatpush.msrb.mxu3 %v3309_v7 }
 0x382   :  { %3324 = vmatpush.msra.mxu1 %v3275_v12  ;;  %3337 = vmatpush.msrb.mxu2 %v3298_v13  ;;  %v3039_v40 = vadd.f32 %v3038_v57, %v3019_v20  ;;  %v3307_v12 = vld [vmem:[%s4497_s14 + $0x138] sm:$0xff]  ;;  %v3306_v13 = vld [vmem:[%s4497_s14 + $0x130] sm:$0xff] }
 0x383   :  { %3363 = vmatpush.msrb.mxu3 %v3308_v49 }
 0x384   :  { %3325 = vmatpush.msra.mxu1 %v3274_v51  ;;  %3338 = vmatpush.msrb.mxu2 %v3297_v14  ;;  %v3305_v51 = vld [vmem:[%s4497_s14 + $0x128] sm:$0xff]  ;;  %v3304_v14 = vld [vmem:[%s4497_s14 + $0x120] sm:$0xff] }
 0x385   :  { %3364 = vmatpush.msrb.mxu3 %v3307_v12 }
 0x386   :  { %3326 = vmatpush.msra.mxu1 %v3273_v15  ;;  %3339 = vmatpush.msrb.mxu2 %v3296_v16  ;;  %v3303_v15 = vld [vmem:[%s4497_s14 + $0x118] sm:$0xff]  ;;  %v3302_v16 = vld [vmem:[%s4497_s14 + $0x110] sm:$0xff] }
 0x387   :  { %3365 = vmatpush.msrb.mxu3 %v3306_v13 }
 0x388   :  { %3327 = vmatpush.msra.mxu1 %v3272_v17  ;;  %3340 = vmatpush.msrb.mxu2 %v3295_v53  ;;  %v3301_v17 = vld [vmem:[%s4497_s14 + $0x108] sm:$0xff]  ;;  %v3300_v53 = vld [vmem:[%s4497_s14 + $0x100] sm:$0xff] }
 0x389   :  { %3366 = vmatpush.msrb.mxu3 %v3305_v51 }
 0x38a   :  { %3328 = vmatpush.msra.mxu1 %v3271_v55  ;;  %3341 = vmatpush.msrb.mxu2 %v3294_v10  ;;  %v2837_v55 = vperm.slane %v4385_v26, 2  ;;  %v3414_v26 = vld [vmem:[%s4499_s16 + $0x38] sm:$0xff] }
 0x38b   :  { %3367 = vmatpush.msrb.mxu3 %v3304_v14 }
 0x38c   :  { %3329 = vmatpush.msra.mxu1 %v3270_v18  ;;  %3342 = vmatpush.msrb.mxu2 %v3293_v52 }
 0x38d   :  { %3368 = vmatpush.msrb.mxu3 %v3303_v15 }
 0x38e   :  { %3330 = vmatpush.msra.mxu1 %v3269_v11  ;;  %3343 = vmatpush.msrb.mxu2 %v3292_v22 }
 0x38f   :  { %v3078_v63 = vpop.f32.mrf.mxu3  ;;  %3369 = vmatpush.msrb.mxu3 %v3302_v16 }
 0x390   :  { %3331 = vmatpush.msra.mxu1 %v3268_v5  ;;  %3344 = vmatpush.msrb.mxu2 %v3291_v25 }
 0x391   :  { %3370 = vmatpush.msrb.mxu3 %v3301_v17 }
 0x392   :  { %3345 = vmatpush.msrb.mxu2 %v3290_v45  ;;  %3431 = vmatpush.msrb.mxu1 %v3414_v26 }
 0x393   :  { %3371 = vmatpush.msrb.mxu3 %v3300_v53 }
 0x394   :  { %3346 = vmatpush.msrb.mxu2 %v3289_v21 }
 0x396   :  { %3347 = vmatpush.msrb.mxu2 %v3288_v9 }
 0x397   :  { %v3098_v2 = vpop.f32.mrf.mxu0 }
 0x398   :  { %3348 = vmatpush.msrb.mxu2 %v3287_v32 }
 0x39a   :  { %3349 = vmatpush.msrb.mxu2 %v3286_v35 }
 0x39c   :  { %3350 = vmatpush.msrb.mxu2 %v3285_v37  ;;  %v3413_v37 = vld [vmem:[%s4499_s16 + $0x30] sm:$0xff] }
 0x39d   :  { %3432 = vmatpush.msrb.mxu1 %v3413_v37 }
 0x39e   :  { %3351 = vmatpush.msrb.mxu2 %v3284_v42  ;;  %v3410_v42 = vld [vmem:[%s4499_s16 + $0x18] sm:$0xff] }
 0x39f   :  { %3433 = vmatpush.msrb.mxu1 %v3412_v39 }
 0x3a1   :  { %3434 = vmatpush.msrb.mxu1 %v3411_v41 }
 0x3a3   :  { %3435 = vmatpush.msrb.mxu1 %v3410_v42 }
 0x3a5   :  { %3436 = vmatpush.msrb.mxu1 %v3409_v31 }
 0x3a7   :  { %3437 = vmatpush.msrb.mxu1 %v3408_v43 }
 0x3a9   :  { %3438 = vmatpush.msrb.mxu1 %v3407_v28 }
 0x3af   :  { %v3158_v52 = vpop.f32.mrf.mxu3 }
 0x3b7   :  { %v3178_v22 = vpop.f32.mrf.mxu0 }
 0x3b9   :  { %v3118_v6 = vpop.f32.mrf.mxu1 }
 0x3bf   :  { %v2978_v50 = vpop.f32.mrf.mxu2 }
 0x3c0   :  { %v2979_v8 = vadd.f32 %v2978_v50, %v2959_v48  ;;  %v3492_v50 = vld [vmem:[#allocation25] ss:$0 sm:$0xff] }
 0x3c1   :  { %v3198_v25 = vpop.f32.mrf.mxu1 }
 0x3c2   :  { %v3261_v46 = vmax.f32 %v2979_v8, 0.0 }
 0x3c4   :  { %3332 = vmatmul.f32.vlgmr.msra.gmra.mxu1 %v3261_v46 }
 0x3c9   :  { %v3058_v61 = vpop.f32.mrf.mxu2 }
 0x3ca   :  { %v3059_v56 = vadd.f32 %v3058_v61, %v3039_v40 }
 0x3cc   :  { %v3079_v34 = vadd.f32 %v3078_v63, %v3059_v56 }
 0x3ce   :  { %v3099_v19 = vadd.f32 %v3098_v2, %v3079_v34 }
 0x3cf   :  { %v3238_v30 = vpop.f32.mrf.mxu3 }
 0x3d0   :  { %v3119_v0 = vadd.f32 %v3118_v6, %v3099_v19 }
 0x3d2   :  { %v3262_v38 = vmax.f32 %v3119_v0, 0.0 }
 0x3d4   :  { %3352 = vmatmul.f32.vlgmr.msrb.gmra.mxu2 %v3262_v38 }
 0x3d7   :  { %v3258_v32 = vpop.f32.mrf.mxu0 }
 0x3df   :  { %v3398_v1 = vpop.f32.mrf.mxu0 }
 0x3e2   :  { %v3138_v10 = vpop.f32.mrf.mxu2 }
 0x3e3   :  { %v3139_v18 = vadd.f32 %v3138_v10, %v2837_v55 }
 0x3e5   :  { %v3159_v11 = vadd.f32 %v3158_v52, %v3139_v18 }
 0x3e7   :  { %v3179_v5 = vadd.f32 %v3178_v22, %v3159_v11 }
 0x3e9   :  { %v3199_v45 = vadd.f32 %v3198_v25, %v3179_v5 }
 0x402   :  { %v3218_v21 = vpop.f32.mrf.mxu2 }
 0x403   :  { %v3219_v4 = vadd.f32 %v3218_v21, %v3199_v45 }
 0x405   :  { %v3239_v9 = vadd.f32 %v3238_v30, %v3219_v4 }
 0x407   :  { %v3259_v33 = vadd.f32 %v3258_v32, %v3239_v9 }
 0x409   :  { %v3263_v35 = vmax.f32 %v3259_v33, 0.0 }
 0x40b   :  { %3372 = vmatmul.f32.vlgmr.msrb.gmra.mxu3 %v3263_v35 }
 0x441   :  { %v3333_v29 = vpop.f32.mrf.mxu1 }
 0x457   :  { %v3353_v24 = vpop.f32.mrf.mxu2 }
 0x458   :  { %v3354_v44 = vadd.f32 %v3353_v24, %v3333_v29 }
 0x48e   :  { %v3373_v47 = vpop.f32.mrf.mxu3 }
 0x48f   :  { %v3374_v48 = vadd.f32 %v3373_v47, %v3354_v44 }
 0x491   :  { %v3399_v8 = vadd.f32 %v3398_v1, %v3374_v48 }
 0x493   :  { %v3405_v27 = vadd.f32 %v3492_v50, %v3399_v8 }
 0x495   :  { %v3406_v46 = vmax.f32 %v3405_v27, 0.0 }
 0x497   :  { %3465 = vmatmul.msk.f32.vlgmr.msrb.gmra.mxu1 %vm3419_vm12, %v3406_v46 }
 0x514   :  { %v3440_v54 = vpop.f32.mrf.mxu1 }
 0x515   :  { %v3441_v57 = vadd.f32 %v3493_v23, %v3440_v54 }
 0x517   :  { %3444 = vst.msk [vmem:[%s4501_s18] sm:$0x3] %vm3443_vm13, %v3441_v57 }
 0x518   :  { %3449 = vsyncpa [#allocation4], 1 }
 0x519   :  { %3450 = vsyncpa [#allocation6], 1 }
 0x51a   :  { %3451 = vsyncpa [#allocation9], 1 }
 0x51b   :  { %3452 = vsyncpa [#allocation12], 1 }
 0x51c   :  { %3453 = vsyncpa [#allocation15], 1 }
 0x51d   :  { %3454 = vsyncpa [#allocation18], 1 }
 0x51e   :  { %3455 = vsyncpa [#allocation21], 1 }
 0x51f   :  { %3456 = vsyncpa [#allocation24], 1 }

</bundles_post_ra>
